<compile_context>
chip_gen: v7x
topology: tpu7x:2x2x1
jax: 0.10.0
libtpu: 0.0.40
codegen_flags: <defaults>
</compile_context>

<pallas_src>
import jax
import jax.numpy as jnp
from jax.experimental import pallas as pl
from jax.experimental.pallas import tpu as pltpu


def _num_tensorcores():
    """Best-effort TensorCores-per-chip (v7x has 2, v5e/v6e have 1)."""
    try:
        info = pltpu.get_tpu_info()
        for attr in ("num_cores", "core_count", "num_tensorcores",
                     "tensorcore_count", "cores_per_chip"):
            v = getattr(info, attr, None)
            if isinstance(v, int) and v > 0:
                return v
    except Exception:
        pass
    try:
        v = getattr(jax.devices()[0], "num_cores", None)
        if isinstance(v, int) and v > 0:
            return v
    except Exception:
        pass
    return 1


def _pick_block_b(batch, t_pad, hidden, num_cores):
    """One grid step per TensorCore when the batch allows it; the per-block
    VMEM footprint at these sizes is a few MiB at most, far under the scoped
    default on v5e/v6e/v7x, so prefer the largest block that divides evenly."""
    per_elem = (t_pad + 8) * max(hidden, 128) * 4 * 8   # rough live-buffer bytes
    cap = max(1, (8 << 20) // per_elem)
    bb = min(batch, cap)
    if batch >= num_cores > 0:
        bb = min(bb, batch // num_cores)
    bb = max(1, bb)
    while batch % bb:
        bb -= 1
    return bb


def _full_spec(a):
    n = a.ndim
    return pl.BlockSpec(a.shape, lambda i, n=n: (0,) * n)


def tempcnn_forward(x, params, *, block_b=None):
    B, T, cin = x.shape
    w1, b1 = params["w1"], params["b1"]
    w2, b2 = params["w2"], params["b2"]
    w3, b3 = params["w3"], params["b3"]
    K, _, H = w1.shape

    # Pad time to a multiple of 8 (free for a causal conv), layer-1 Cin to a
    # sublane-friendly width (padded channels hit zero weight rows).
    Tpad = ((T + 7) // 8) * 8
    cin_pad = max(8, ((cin + 7) // 8) * 8)
    KC = K * cin_pad
    PAD = ((K - 1 + 7) // 8) * 8          # 8-aligned row offset for the scratch

    # Layer-1 causal pad + im2col built once in the wrapper (plain XLA, HBM):
    # x_col[b, t, k*cin_pad + c] = x[b, t + k - (K-1), c] (0 if out of range).
    xp = jnp.pad(x.astype(jnp.float32),
                 ((0, 0), (K - 1, Tpad - T), (0, cin_pad - cin)))
    x_col = jnp.concatenate([xp[:, k:k + Tpad, :] for k in range(K)], axis=-1)
    w1f = jnp.pad(w1, ((0, 0), (0, cin_pad - cin), (0, 0))).reshape(KC, H)

    num_cores = _num_tensorcores()
    if block_b is None:
        block_b = _pick_block_b(B, Tpad, H, num_cores)
    grid = (B // block_b,)
    M = block_b * Tpad

    def kernel(x_ref, w1_ref, b1_ref, w2_ref, b2_ref, w3_ref, b3_ref,
               o_ref, buf_ref):
        # ---- Layer 1: single MXU dot over the K-folded (im2col) contraction.
        h = jnp.dot(x_ref[...].reshape(M, KC), w1_ref[...],
                    preferred_element_type=jnp.float32)
        h = jnp.maximum(h + b1_ref[...], 0.0)                     # (M, H)

        # ---- Layers 2 & 3: causal taps read as Ref-view slices of a padded
        # VMEM scratch; no concat / materialized shifted copies.  Only the
        # (K-1) pad rows actually read are zeroed (tiny, done every step so it
        # is correct under megacore grid sharding).
        buf_ref[:, PAD - (K - 1):PAD, :] = jnp.zeros(
            (block_b, K - 1, H), jnp.float32)
        for w_ref, b_ref in ((w2_ref, b2_ref), (w3_ref, b3_ref)):
            # Previous layer output stored at an 8-aligned row offset.
            buf_ref[:, PAD:, :] = h.reshape(block_b, Tpad, H)
            # Tap K-1 is the un-shifted input: use the in-register value.
            acc = jnp.dot(h, w_ref[K - 1], preferred_element_type=jnp.float32)
            for k in range(K - 1):
                tap = buf_ref[:, pl.ds(PAD - (K - 1) + k, Tpad), :]
                acc = acc + jnp.dot(tap.reshape(M, H), w_ref[k],
                                    preferred_element_type=jnp.float32)
            h = jnp.maximum(acc + b_ref[...], 0.0)

        # TODO(synk): Dropout is eval-mode identity here; train-mode dropout
        # would need pltpu.prng_seed / prng_random_bits masking.
        o_ref[...] = h.reshape(block_b, Tpad, H).astype(o_ref.dtype)

    flops = int(2 * B * Tpad * (KC * H + 2 * K * H * H))
    bytes_accessed = int(4 * (x_col.size + w1f.size + w2.size + w3.size
                              + b1.size + b2.size + b3.size + B * Tpad * H))

    out = pl.pallas_call(
        kernel,
        out_shape=jax.ShapeDtypeStruct((B, Tpad, H), x.dtype),
        grid=grid,
        in_specs=[pl.BlockSpec((block_b, Tpad, KC), lambda i: (i, 0, 0)),
                  _full_spec(w1f), _full_spec(b1),
                  _full_spec(w2), _full_spec(b2),
                  _full_spec(w3), _full_spec(b3)],
        out_specs=pl.BlockSpec((block_b, Tpad, H), lambda i: (i, 0, 0)),
        scratch_shapes=[pltpu.VMEM((block_b, PAD + Tpad, H), jnp.float32)],
        compiler_params=pltpu.CompilerParams(
            dimension_semantics=("parallel",)),
        cost_estimate=pl.CostEstimate(flops=flops, transcendentals=0,
                                      bytes_accessed=bytes_accessed),
    )(x_col, w1f, b1, w2, b2, w3, b3)
    return out[:, :T, :]


def init_params(key, input_dim, hidden, K, eps=1e-5):
    """Deterministic synthetic params; BN (eval) scale folded into the conv
    weights, conv bias + BN shift folded into a per-channel shift."""
    dims = [(input_dim, hidden), (hidden, hidden), (hidden, hidden)]
    keys = jax.random.split(key, 6 * len(dims))
    it = iter(keys)
    params = {}
    for i, (cin, cout) in enumerate(dims, start=1):
        w = 0.1 * jax.random.normal(next(it), (K, cin, cout), jnp.float32)
        bias = 0.1 * jax.random.normal(next(it), (cout,), jnp.float32)
        gamma = 1.0 + 0.1 * jax.random.normal(next(it), (cout,), jnp.float32)
        beta = 0.1 * jax.random.normal(next(it), (cout,), jnp.float32)
        rmean = 0.1 * jax.random.normal(next(it), (cout,), jnp.float32)
        rvar = jnp.abs(jax.random.normal(next(it), (cout,), jnp.float32)) + 0.5
        scale = gamma / jnp.sqrt(rvar + eps)
        params[f"w{i}"] = w * scale[None, None, :]
        params[f"b{i}"] = ((bias - rmean) * scale + beta).reshape(1, cout)
    return params


def reference_forward(x, params, K):
    """Plain-JAX reference matching PyTorch NCW causal-Conv1d semantics."""
    h = jnp.transpose(x, (0, 2, 1))                      # (B, C, T)
    for i in (1, 2, 3):
        w_oik = jnp.transpose(params[f"w{i}"], (2, 1, 0))  # (Cout, Cin, K)
        shift = params[f"b{i}"].reshape(-1)
        hp = jnp.pad(h, ((0, 0), (0, 0), (K - 1, 0)))      # ConstantPad1d((K-1, 0), 0)
        y = jax.lax.conv_general_dilated(
            hp, w_oik, window_strides=(1,), padding="VALID",
            dimension_numbers=("NCH", "OIH", "NCH"), precision="highest")
        y = y + shift[None, :, None]
        h = jnp.maximum(y, 0.0)
    return jnp.transpose(h, (0, 2, 1))


if __name__ == "__main__":
    # Module defaults: input_dim=13, sequencelength=45, kernel_size=7, hidden_dims=128.
    B, T, D, H, K = 8, 45, 13, 128, 7
    key = jax.random.PRNGKey(0)
    kx, kp = jax.random.split(key)
    x = jax.random.normal(kx, (B, T, D), jnp.float32)
    params = init_params(kp, D, H, K)

    out = tempcnn_forward(x, params)
    jax.block_until_ready(out)

    ref = reference_forward(x, params, K)
    assert out.shape == (B, T, H)
    max_err = float(jnp.max(jnp.abs(out - ref)))
    assert jnp.allclose(out, ref, atol=1e-3, rtol=1e-3), max_err
    print("KERNEL_OK")
</pallas_src>

<mosaic_0001>
module attributes {stable_mosaic.version = 11 : i64} {
  func.func @kernel(%arg0: i32, %arg1: memref<8x48x112xf32, #tpu.memory_space<vmem>>, %arg2: memref<112x128xf32, #tpu.memory_space<vmem>>, %arg3: memref<1x128xf32, #tpu.memory_space<vmem>>, %arg4: memref<7x128x128xf32, #tpu.memory_space<vmem>>, %arg5: memref<1x128xf32, #tpu.memory_space<vmem>>, %arg6: memref<7x128x128xf32, #tpu.memory_space<vmem>>, %arg7: memref<1x128xf32, #tpu.memory_space<vmem>>, %arg8: memref<8x48x128xf32, #tpu.memory_space<vmem>>, %arg9: memref<8x56x128xf32, #tpu.memory_space<vmem>>) attributes {dimension_semantics = [#tpu.dimension_semantics<parallel>], iteration_bounds = array<i64: 1>, scalar_prefetch = 0 : i64, scratch_operands = 1 : i64, tpu.core_type = #tpu.core_type<tc>, window_params = [{transform_indices = @transform_0, window_bounds = array<i64: 8, 48, 112>}, {pipeline_mode = #tpu.pipeline_mode<synchronous>, transform_indices = @transform_1, window_bounds = array<i64: 112, 128>}, {pipeline_mode = #tpu.pipeline_mode<synchronous>, transform_indices = @transform_2, window_bounds = array<i64: 1, 128>}, {pipeline_mode = #tpu.pipeline_mode<synchronous>, transform_indices = @transform_3, window_bounds = array<i64: 7, 128, 128>}, {pipeline_mode = #tpu.pipeline_mode<synchronous>, transform_indices = @transform_4, window_bounds = array<i64: 1, 128>}, {pipeline_mode = #tpu.pipeline_mode<synchronous>, transform_indices = @transform_5, window_bounds = array<i64: 7, 128, 128>}, {pipeline_mode = #tpu.pipeline_mode<synchronous>, transform_indices = @transform_6, window_bounds = array<i64: 1, 128>}, {transform_indices = @transform_7, window_bounds = array<i64: 8, 48, 128>}]} {
    %c0 = arith.constant 0 : index
    %c0_0 = arith.constant 0 : index
    %c0_1 = arith.constant 0 : index
    %0 = vector.load %arg1[%c0, %c0_0, %c0_1] : memref<8x48x112xf32, #tpu.memory_space<vmem>>, vector<8x48x112xf32>
    %1 = vector.shape_cast %0 : vector<8x48x112xf32> to vector<384x112xf32>
    %c0_2 = arith.constant 0 : index
    %c0_3 = arith.constant 0 : index
    %2 = vector.load %arg2[%c0_2, %c0_3] : memref<112x128xf32, #tpu.memory_space<vmem>>, vector<112x128xf32>
    %cst = arith.constant dense<0.000000e+00> : vector<384x128xf32>
    %3 = tpu.matmul %1, %2, %cst {dimension_numbers = #tpu.dot_dimension_numbers<[1], [0], [0], [1], [0, 0, 1, 1], [], []>} : vector<384x112xf32>, vector<112x128xf32>, vector<384x128xf32> -> vector<384x128xf32>
    %c0_4 = arith.constant 0 : index
    %c0_5 = arith.constant 0 : index
    %4 = vector.load %arg3[%c0_4, %c0_5] : memref<1x128xf32, #tpu.memory_space<vmem>>, vector<1x128xf32>
    %5 = vector.broadcast %4 : vector<1x128xf32> to vector<384x128xf32>
    %6 = arith.addf %3, %5 : vector<384x128xf32>
    %cst_6 = arith.constant 0.000000e+00 : f32
    %7 = vector.broadcast %cst_6 : f32 to vector<384x128xf32>
    %8 = arith.maximumf %6, %7 : vector<384x128xf32>
    %cst_7 = arith.constant 0.000000e+00 : f32
    %9 = vector.broadcast %cst_7 : f32 to vector<8x6x128xf32>
    %c0_8 = arith.constant 0 : index
    %c2 = arith.constant 2 : index
    %c0_9 = arith.constant 0 : index
    %10 = vector.load %arg9[%c0_8, %c2, %c0_9] : memref<8x56x128xf32, #tpu.memory_space<vmem>>, vector<8x6x128xf32>
    tpu.vector_store %arg9[%c0_8, %c2, %c0_9], %9 {strides = array<i32>} : memref<8x56x128xf32, #tpu.memory_space<vmem>>, vector<8x6x128xf32>,
    %11 = vector.shape_cast %8 : vector<384x128xf32> to vector<8x48x128xf32>
    %c0_10 = arith.constant 0 : index
    %c8 = arith.constant 8 : index
    %c0_11 = arith.constant 0 : index
    %12 = vector.load %arg9[%c0_10, %c8, %c0_11] : memref<8x56x128xf32, #tpu.memory_space<vmem>>, vector<8x48x128xf32>
    tpu.vector_store %arg9[%c0_10, %c8, %c0_11], %11 {strides = array<i32>} : memref<8x56x128xf32, #tpu.memory_space<vmem>>, vector<8x48x128xf32>,
    %c6 = arith.constant 6 : index
    %c0_12 = arith.constant 0 : index
    %c0_13 = arith.constant 0 : index
    %13 = vector.load %arg4[%c6, %c0_12, %c0_13] : memref<7x128x128xf32, #tpu.memory_space<vmem>>, vector<1x128x128xf32>
    %14 = vector.shape_cast %13 : vector<1x128x128xf32> to vector<128x128xf32>
    %cst_14 = arith.constant dense<0.000000e+00> : vector<384x128xf32>
    %15 = tpu.matmul %8, %14, %cst_14 {dimension_numbers = #tpu.dot_dimension_numbers<[1], [0], [0], [1], [0, 0, 1, 1], [], []>} : vector<384x128xf32>, vector<128x128xf32>, vector<384x128xf32> -> vector<384x128xf32>
    %c0_15 = arith.constant 0 : index
    %c2_16 = arith.constant 2 : index
    %c0_17 = arith.constant 0 : index
    %16 = vector.load %arg9[%c0_15, %c2_16, %c0_17] : memref<8x56x128xf32, #tpu.memory_space<vmem>>, vector<8x48x128xf32>
    %17 = vector.shape_cast %16 : vector<8x48x128xf32> to vector<384x128xf32>
    %c0_18 = arith.constant 0 : index
    %c0_19 = arith.constant 0 : index
    %c0_20 = arith.constant 0 : index
    %18 = vector.load %arg4[%c0_18, %c0_19, %c0_20] : memref<7x128x128xf32, #tpu.memory_space<vmem>>, vector<1x128x128xf32>
    %19 = vector.shape_cast %18 : vector<1x128x128xf32> to vector<128x128xf32>
    %cst_21 = arith.constant dense<0.000000e+00> : vector<384x128xf32>
    %20 = tpu.matmul %17, %19, %cst_21 {dimension_numbers = #tpu.dot_dimension_numbers<[1], [0], [0], [1], [0, 0, 1, 1], [], []>} : vector<384x128xf32>, vector<128x128xf32>, vector<384x128xf32> -> vector<384x128xf32>
    %21 = arith.addf %15, %20 : vector<384x128xf32>
    %c0_22 = arith.constant 0 : index
    %c3 = arith.constant 3 : index
    %c0_23 = arith.constant 0 : index
    %22 = vector.load %arg9[%c0_22, %c3, %c0_23] : memref<8x56x128xf32, #tpu.memory_space<vmem>>, vector<8x48x128xf32>
    %23 = vector.shape_cast %22 : vector<8x48x128xf32> to vector<384x128xf32>
    %c1 = arith.constant 1 : index
    %c0_24 = arith.constant 0 : index
    %c0_25 = arith.constant 0 : index
    %24 = vector.load %arg4[%c1, %c0_24, %c0_25] : memref<7x128x128xf32, #tpu.memory_space<vmem>>, vector<1x128x128xf32>
    %25 = vector.shape_cast %24 : vector<1x128x128xf32> to vector<128x128xf32>
    %cst_26 = arith.constant dense<0.000000e+00> : vector<384x128xf32>
    %26 = tpu.matmul %23, %25, %cst_26 {dimension_numbers = #tpu.dot_dimension_numbers<[1], [0], [0], [1], [0, 0, 1, 1], [], []>} : vector<384x128xf32>, vector<128x128xf32>, vector<384x128xf32> -> vector<384x128xf32>
    %27 = arith.addf %21, %26 : vector<384x128xf32>
    %c0_27 = arith.constant 0 : index
    %c4 = arith.constant 4 : index
    %c0_28 = arith.constant 0 : index
    %28 = vector.load %arg9[%c0_27, %c4, %c0_28] : memref<8x56x128xf32, #tpu.memory_space<vmem>>, vector<8x48x128xf32>
    %29 = vector.shape_cast %28 : vector<8x48x128xf32> to vector<384x128xf32>
    %c2_29 = arith.constant 2 : index
    %c0_30 = arith.constant 0 : index
    %c0_31 = arith.constant 0 : index
    %30 = vector.load %arg4[%c2_29, %c0_30, %c0_31] : memref<7x128x128xf32, #tpu.memory_space<vmem>>, vector<1x128x128xf32>
    %31 = vector.shape_cast %30 : vector<1x128x128xf32> to vector<128x128xf32>
    %cst_32 = arith.constant dense<0.000000e+00> : vector<384x128xf32>
    %32 = tpu.matmul %29, %31, %cst_32 {dimension_numbers = #tpu.dot_dimension_numbers<[1], [0], [0], [1], [0, 0, 1, 1], [], []>} : vector<384x128xf32>, vector<128x128xf32>, vector<384x128xf32> -> vector<384x128xf32>
    %33 = arith.addf %27, %32 : vector<384x128xf32>
    %c0_33 = arith.constant 0 : index
    %c5 = arith.constant 5 : index
    %c0_34 = arith.constant 0 : index
    %34 = vector.load %arg9[%c0_33, %c5, %c0_34] : memref<8x56x128xf32, #tpu.memory_space<vmem>>, vector<8x48x128xf32>
    %35 = vector.shape_cast %34 : vector<8x48x128xf32> to vector<384x128xf32>
    %c3_35 = arith.constant 3 : index
    %c0_36 = arith.constant 0 : index
    %c0_37 = arith.constant 0 : index
    %36 = vector.load %arg4[%c3_35, %c0_36, %c0_37] : memref<7x128x128xf32, #tpu.memory_space<vmem>>, vector<1x128x128xf32>
    %37 = vector.shape_cast %36 : vector<1x128x128xf32> to vector<128x128xf32>
    %cst_38 = arith.constant dense<0.000000e+00> : vector<384x128xf32>
    %38 = tpu.matmul %35, %37, %cst_38 {dimension_numbers = #tpu.dot_dimension_numbers<[1], [0], [0], [1], [0, 0, 1, 1], [], []>} : vector<384x128xf32>, vector<128x128xf32>, vector<384x128xf32> -> vector<384x128xf32>
    %39 = arith.addf %33, %38 : vector<384x128xf32>
    %c0_39 = arith.constant 0 : index
    %c6_40 = arith.constant 6 : index
    %c0_41 = arith.constant 0 : index
    %40 = vector.load %arg9[%c0_39, %c6_40, %c0_41] : memref<8x56x128xf32, #tpu.memory_space<vmem>>, vector<8x48x128xf32>
    %41 = vector.shape_cast %40 : vector<8x48x128xf32> to vector<384x128xf32>
    %c4_42 = arith.constant 4 : index
    %c0_43 = arith.constant 0 : index
    %c0_44 = arith.constant 0 : index
    %42 = vector.load %arg4[%c4_42, %c0_43, %c0_44] : memref<7x128x128xf32, #tpu.memory_space<vmem>>, vector<1x128x128xf32>
    %43 = vector.shape_cast %42 : vector<1x128x128xf32> to vector<128x128xf32>
    %cst_45 = arith.constant dense<0.000000e+00> : vector<384x128xf32>
    %44 = tpu.matmul %41, %43, %cst_45 {dimension_numbers = #tpu.dot_dimension_numbers<[1], [0], [0], [1], [0, 0, 1, 1], [], []>} : vector<384x128xf32>, vector<128x128xf32>, vector<384x128xf32> -> vector<384x128xf32>
    %45 = arith.addf %39, %44 : vector<384x128xf32>
    %c0_46 = arith.constant 0 : index
    %c7 = arith.constant 7 : index
    %c0_47 = arith.constant 0 : index
    %46 = vector.load %arg9[%c0_46, %c7, %c0_47] : memref<8x56x128xf32, #tpu.memory_space<vmem>>, vector<8x48x128xf32>
    %47 = vector.shape_cast %46 : vector<8x48x128xf32> to vector<384x128xf32>
    %c5_48 = arith.constant 5 : index
    %c0_49 = arith.constant 0 : index
    %c0_50 = arith.constant 0 : index
    %48 = vector.load %arg4[%c5_48, %c0_49, %c0_50] : memref<7x128x128xf32, #tpu.memory_space<vmem>>, vector<1x128x128xf32>
    %49 = vector.shape_cast %48 : vector<1x128x128xf32> to vector<128x128xf32>
    %cst_51 = arith.constant dense<0.000000e+00> : vector<384x128xf32>
    %50 = tpu.matmul %47, %49, %cst_51 {dimension_numbers = #tpu.dot_dimension_numbers<[1], [0], [0], [1], [0, 0, 1, 1], [], []>} : vector<384x128xf32>, vector<128x128xf32>, vector<384x128xf32> -> vector<384x128xf32>
    %51 = arith.addf %45, %50 : vector<384x128xf32>
    %c0_52 = arith.constant 0 : index
    %c0_53 = arith.constant 0 : index
    %52 = vector.load %arg5[%c0_52, %c0_53] : memref<1x128xf32, #tpu.memory_space<vmem>>, vector<1x128xf32>
    %53 = vector.broadcast %52 : vector<1x128xf32> to vector<384x128xf32>
    %54 = arith.addf %51, %53 : vector<384x128xf32>
    %cst_54 = arith.constant 0.000000e+00 : f32
    %55 = vector.broadcast %cst_54 : f32 to vector<384x128xf32>
    %56 = arith.maximumf %54, %55 : vector<384x128xf32>
    %57 = vector.shape_cast %56 : vector<384x128xf32> to vector<8x48x128xf32>
    %c0_55 = arith.constant 0 : index
    %c8_56 = arith.constant 8 : index
    %c0_57 = arith.constant 0 : index
    %58 = vector.load %arg9[%c0_55, %c8_56, %c0_57] : memref<8x56x128xf32, #tpu.memory_space<vmem>>, vector<8x48x128xf32>
    tpu.vector_store %arg9[%c0_55, %c8_56, %c0_57], %57 {strides = array<i32>} : memref<8x56x128xf32, #tpu.memory_space<vmem>>, vector<8x48x128xf32>,
    %c6_58 = arith.constant 6 : index
    %c0_59 = arith.constant 0 : index
    %c0_60 = arith.constant 0 : index
    %59 = vector.load %arg6[%c6_58, %c0_59, %c0_60] : memref<7x128x128xf32, #tpu.memory_space<vmem>>, vector<1x128x128xf32>
    %60 = vector.shape_cast %59 : vector<1x128x128xf32> to vector<128x128xf32>
    %cst_61 = arith.constant dense<0.000000e+00> : vector<384x128xf32>
    %61 = tpu.matmul %56, %60, %cst_61 {dimension_numbers = #tpu.dot_dimension_numbers<[1], [0], [0], [1], [0, 0, 1, 1], [], []>} : vector<384x128xf32>, vector<128x128xf32>, vector<384x128xf32> -> vector<384x128xf32>
    %c0_62 = arith.constant 0 : index
    %c2_63 = arith.constant 2 : index
    %c0_64 = arith.constant 0 : index
    %62 = vector.load %arg9[%c0_62, %c2_63, %c0_64] : memref<8x56x128xf32, #tpu.memory_space<vmem>>, vector<8x48x128xf32>
    %63 = vector.shape_cast %62 : vector<8x48x128xf32> to vector<384x128xf32>
    %c0_65 = arith.constant 0 : index
    %c0_66 = arith.constant 0 : index
    %c0_67 = arith.constant 0 : index
    %64 = vector.load %arg6[%c0_65, %c0_66, %c0_67] : memref<7x128x128xf32, #tpu.memory_space<vmem>>, vector<1x128x128xf32>
    %65 = vector.shape_cast %64 : vector<1x128x128xf32> to vector<128x128xf32>
    %cst_68 = arith.constant dense<0.000000e+00> : vector<384x128xf32>
    %66 = tpu.matmul %63, %65, %cst_68 {dimension_numbers = #tpu.dot_dimension_numbers<[1], [0], [0], [1], [0, 0, 1, 1], [], []>} : vector<384x128xf32>, vector<128x128xf32>, vector<384x128xf32> -> vector<384x128xf32>
    %67 = arith.addf %61, %66 : vector<384x128xf32>
    %c0_69 = arith.constant 0 : index
    %c3_70 = arith.constant 3 : index
    %c0_71 = arith.constant 0 : index
    %68 = vector.load %arg9[%c0_69, %c3_70, %c0_71] : memref<8x56x128xf32, #tpu.memory_space<vmem>>, vector<8x48x128xf32>
    %69 = vector.shape_cast %68 : vector<8x48x128xf32> to vector<384x128xf32>
    %c1_72 = arith.constant 1 : index
    %c0_73 = arith.constant 0 : index
    %c0_74 = arith.constant 0 : index
    %70 = vector.load %arg6[%c1_72, %c0_73, %c0_74] : memref<7x128x128xf32, #tpu.memory_space<vmem>>, vector<1x128x128xf32>
    %71 = vector.shape_cast %70 : vector<1x128x128xf32> to vector<128x128xf32>
    %cst_75 = arith.constant dense<0.000000e+00> : vector<384x128xf32>
    %72 = tpu.matmul %69, %71, %cst_75 {dimension_numbers = #tpu.dot_dimension_numbers<[1], [0], [0], [1], [0, 0, 1, 1], [], []>} : vector<384x128xf32>, vector<128x128xf32>, vector<384x128xf32> -> vector<384x128xf32>
    %73 = arith.addf %67, %72 : vector<384x128xf32>
    %c0_76 = arith.constant 0 : index
    %c4_77 = arith.constant 4 : index
    %c0_78 = arith.constant 0 : index
    %74 = vector.load %arg9[%c0_76, %c4_77, %c0_78] : memref<8x56x128xf32, #tpu.memory_space<vmem>>, vector<8x48x128xf32>
    %75 = vector.shape_cast %74 : vector<8x48x128xf32> to vector<384x128xf32>
    %c2_79 = arith.constant 2 : index
    %c0_80 = arith.constant 0 : index
    %c0_81 = arith.constant 0 : index
    %76 = vector.load %arg6[%c2_79, %c0_80, %c0_81] : memref<7x128x128xf32, #tpu.memory_space<vmem>>, vector<1x128x128xf32>
    %77 = vector.shape_cast %76 : vector<1x128x128xf32> to vector<128x128xf32>
    %cst_82 = arith.constant dense<0.000000e+00> : vector<384x128xf32>
    %78 = tpu.matmul %75, %77, %cst_82 {dimension_numbers = #tpu.dot_dimension_numbers<[1], [0], [0], [1], [0, 0, 1, 1], [], []>} : vector<384x128xf32>, vector<128x128xf32>, vector<384x128xf32> -> vector<384x128xf32>
    %79 = arith.addf %73, %78 : vector<384x128xf32>
    %c0_83 = arith.constant 0 : index
    %c5_84 = arith.constant 5 : index
    %c0_85 = arith.constant 0 : index
    %80 = vector.load %arg9[%c0_83, %c5_84, %c0_85] : memref<8x56x128xf32, #tpu.memory_space<vmem>>, vector<8x48x128xf32>
    %81 = vector.shape_cast %80 : vector<8x48x128xf32> to vector<384x128xf32>
    %c3_86 = arith.constant 3 : index
    %c0_87 = arith.constant 0 : index
    %c0_88 = arith.constant 0 : index
    %82 = vector.load %arg6[%c3_86, %c0_87, %c0_88] : memref<7x128x128xf32, #tpu.memory_space<vmem>>, vector<1x128x128xf32>
    %83 = vector.shape_cast %82 : vector<1x128x128xf32> to vector<128x128xf32>
    %cst_89 = arith.constant dense<0.000000e+00> : vector<384x128xf32>
    %84 = tpu.matmul %81, %83, %cst_89 {dimension_numbers = #tpu.dot_dimension_numbers<[1], [0], [0], [1], [0, 0, 1, 1], [], []>} : vector<384x128xf32>, vector<128x128xf32>, vector<384x128xf32> -> vector<384x128xf32>
    %85 = arith.addf %79, %84 : vector<384x128xf32>
    %c0_90 = arith.constant 0 : index
    %c6_91 = arith.constant 6 : index
    %c0_92 = arith.constant 0 : index
    %86 = vector.load %arg9[%c0_90, %c6_91, %c0_92] : memref<8x56x128xf32, #tpu.memory_space<vmem>>, vector<8x48x128xf32>
    %87 = vector.shape_cast %86 : vector<8x48x128xf32> to vector<384x128xf32>
    %c4_93 = arith.constant 4 : index
    %c0_94 = arith.constant 0 : index
    %c0_95 = arith.constant 0 : index
    %88 = vector.load %arg6[%c4_93, %c0_94, %c0_95] : memref<7x128x128xf32, #tpu.memory_space<vmem>>, vector<1x128x128xf32>
    %89 = vector.shape_cast %88 : vector<1x128x128xf32> to vector<128x128xf32>
    %cst_96 = arith.constant dense<0.000000e+00> : vector<384x128xf32>
    %90 = tpu.matmul %87, %89, %cst_96 {dimension_numbers = #tpu.dot_dimension_numbers<[1], [0], [0], [1], [0, 0, 1, 1], [], []>} : vector<384x128xf32>, vector<128x128xf32>, vector<384x128xf32> -> vector<384x128xf32>
    %91 = arith.addf %85, %90 : vector<384x128xf32>
    %c0_97 = arith.constant 0 : index
    %c7_98 = arith.constant 7 : index
    %c0_99 = arith.constant 0 : index
    %92 = vector.load %arg9[%c0_97, %c7_98, %c0_99] : memref<8x56x128xf32, #tpu.memory_space<vmem>>, vector<8x48x128xf32>
    %93 = vector.shape_cast %92 : vector<8x48x128xf32> to vector<384x128xf32>
    %c5_100 = arith.constant 5 : index
    %c0_101 = arith.constant 0 : index
    %c0_102 = arith.constant 0 : index
    %94 = vector.load %arg6[%c5_100, %c0_101, %c0_102] : memref<7x128x128xf32, #tpu.memory_space<vmem>>, vector<1x128x128xf32>
    %95 = vector.shape_cast %94 : vector<1x128x128xf32> to vector<128x128xf32>
    %cst_103 = arith.constant dense<0.000000e+00> : vector<384x128xf32>
    %96 = tpu.matmul %93, %95, %cst_103 {dimension_numbers = #tpu.dot_dimension_numbers<[1], [0], [0], [1], [0, 0, 1, 1], [], []>} : vector<384x128xf32>, vector<128x128xf32>, vector<384x128xf32> -> vector<384x128xf32>
    %97 = arith.addf %91, %96 : vector<384x128xf32>
    %c0_104 = arith.constant 0 : index
    %c0_105 = arith.constant 0 : index
    %98 = vector.load %arg7[%c0_104, %c0_105] : memref<1x128xf32, #tpu.memory_space<vmem>>, vector<1x128xf32>
    %99 = vector.broadcast %98 : vector<1x128xf32> to vector<384x128xf32>
    %100 = arith.addf %97, %99 : vector<384x128xf32>
    %cst_106 = arith.constant 0.000000e+00 : f32
    %101 = vector.broadcast %cst_106 : f32 to vector<384x128xf32>
    %102 = arith.maximumf %100, %101 : vector<384x128xf32>
    %103 = vector.shape_cast %102 : vector<384x128xf32> to vector<8x48x128xf32>
    %c0_107 = arith.constant 0 : index
    %c0_108 = arith.constant 0 : index
    %c0_109 = arith.constant 0 : index
    %104 = vector.load %arg8[%c0_107, %c0_108, %c0_109] : memref<8x48x128xf32, #tpu.memory_space<vmem>>, vector<8x48x128xf32>
    tpu.vector_store %arg8[%c0_107, %c0_108, %c0_109], %103 {strides = array<i32>} : memref<8x48x128xf32, #tpu.memory_space<vmem>>, vector<8x48x128xf32>,
    return
  }
  func.func @transform_0(%arg0: i32) -> (i32, i32, i32) {
    %c0_i32 = arith.constant 0 : i32
    %c0_i32_0 = arith.constant 0 : i32
    %c0_i32_1 = arith.constant 0 : i32
    return %arg0, %c0_i32, %c0_i32_0 : i32, i32, i32
  }
  func.func @transform_1(%arg0: i32) -> (i32, i32) {
    %c0_i32 = arith.constant 0 : i32
    %c0_i32_0 = arith.constant 0 : i32
    %c0_i32_1 = arith.constant 0 : i32
    return %c0_i32, %c0_i32_0 : i32, i32
  }
  func.func @transform_2(%arg0: i32) -> (i32, i32) {
    %c0_i32 = arith.constant 0 : i32
    %c0_i32_0 = arith.constant 0 : i32
    %c0_i32_1 = arith.constant 0 : i32
    return %c0_i32, %c0_i32_0 : i32, i32
  }
  func.func @transform_3(%arg0: i32) -> (i32, i32, i32) {
    %c0_i32 = arith.constant 0 : i32
    %c0_i32_0 = arith.constant 0 : i32
    %c0_i32_1 = arith.constant 0 : i32
    %c0_i32_2 = arith.constant 0 : i32
    return %c0_i32, %c0_i32_0, %c0_i32_1 : i32, i32, i32
  }
  func.func @transform_4(%arg0: i32) -> (i32, i32) {
    %c0_i32 = arith.constant 0 : i32
    %c0_i32_0 = arith.constant 0 : i32
    %c0_i32_1 = arith.constant 0 : i32
    return %c0_i32, %c0_i32_0 : i32, i32
  }
  func.func @transform_5(%arg0: i32) -> (i32, i32, i32) {
    %c0_i32 = arith.constant 0 : i32
    %c0_i32_0 = arith.constant 0 : i32
    %c0_i32_1 = arith.constant 0 : i32
    %c0_i32_2 = arith.constant 0 : i32
    return %c0_i32, %c0_i32_0, %c0_i32_1 : i32, i32, i32
  }
  func.func @transform_6(%arg0: i32) -> (i32, i32) {
    %c0_i32 = arith.constant 0 : i32
    %c0_i32_0 = arith.constant 0 : i32
    %c0_i32_1 = arith.constant 0 : i32
    return %c0_i32, %c0_i32_0 : i32, i32
  }
  func.func @transform_7(%arg0: i32) -> (i32, i32, i32) {
    %c0_i32 = arith.constant 0 : i32
    %c0_i32_0 = arith.constant 0 : i32
    %c0_i32_1 = arith.constant 0 : i32
    return %arg0, %c0_i32, %c0_i32_0 : i32, i32, i32
  }
}

</mosaic_0001>

<bundles_post_ra>
// kernel: tpu_custom_call.1
= control target key start
LH: loop header
LB: loop body
LE: loop exit
PB: predicated region body
PF: predicated region fallthrough
CT: control target
= control target key end

     0   :  { %12 = vsyncpa [#allocation4], 0  ;;  %s11397_s0 = inlined_call_operand.hbm [shape: f32[8,48,112], index: 0, kind: input, shape index: {}]   ;;  %s11398_s1 = inlined_call_operand.hbm [shape: f32[112,128], index: 1, kind: input, shape index: {}]   ;;  %s11399_s2 = inlined_call_operand.vmem [shape: f32[1,128], index: 2, kind: input, shape index: {}]   ;;  %s11400_s3 = inlined_call_operand.hbm [shape: f32[7,128,128], index: 3, kind: input, shape index: {}]   ;;  %s11401_s4 = inlined_call_operand.vmem [shape: f32[1,128], index: 4, kind: input, shape index: {}]   ;;  %s11402_s5 = inlined_call_operand.hbm [shape: f32[7,128,128], index: 5, kind: input, shape index: {}]   ;;  %s11403_s6 = inlined_call_operand.vmem [shape: f32[1,128], index: 6, kind: input, shape index: {}]   ;;  %s11404_s7 = inlined_call_operand.hbm [shape: f32[8,48,128], index: 7, kind: output, shape index: {}]  }
   0x1   :  { %13 = vsyncpa [#allocation7], 0 }
   0x2   :  { %14 = vsyncpa [#allocation10], 0 }
   0x3   :  { %15 = vsyncpa [#allocation5], 0  ;;  %s10345_s24 = smov [#allocation6]   ;;  %s10346_s26 = smov [#allocation3]  }
   0x4   :  { %s33_s25 = sshll.u32 %s10345_s24, 4  ;;  %s21_s27 = sshll.u32 %s10346_s26, 4  ;;  %s34_s25 = int_to_ptr.vmem [resolvable:$true] %s33_s25  ;;  %s10393_s27 = int_to_ptr.vmem [resolvable:$true] %s21_s27 }
   0x5   :  { %s10227_s30 = scalar_lea.hbm %s11398_s1, 1792 }
   0x6   :  { %p10228_p0 = scmp.ne.s32.totalorder %s11398_s1, %s10227_s30  ;;  %p10231_p1 = scmp.lt.u32.totalorder %s10227_s30, %s11398_s1 }
   0x8   :  { %p10233_p2 = pnand %p10231_p1, %p10228_p0 }
   0xa   :  { %10236 = shalt.err (!%p10233_p2)
}
   0xb   :  { %s10237_s12 = scalar_lea.vmem %s34_s25, 1792  ;;  %p10242_p4 = scmp.lt.s32.totalorder %s34_s25, %s34_s25 }
   0xc   :  { %p10238_p3 = scmp.ne.s32.totalorder %s34_s25, %s10237_s12  ;;  %p10243_p5 = scmp.lt.s32.totalorder %s10237_s12, %s10237_s12 }
   0xe   :  { %p10244_p6 = por %p10243_p5, %p10242_p4 }
  0x10   :  { %p10245_p7 = pnand %p10244_p6, %p10238_p3 }
  0x12   :  { %10248 = shalt.err (!%p10245_p7)
}
  0x13   :  { %s10347_s13 = smov 128   ;;  %s10348_s14 = smov 8  }
  0x14   :  { %39 = dma.hbm_to_vmem [thread:$0]  %s11398_s1, 1792, %s34_s25, [#allocation7], %s10347_s13, %s10347_s13, %s10348_s14  }
  0x15   :  { %s10249_s19 = scalar_lea.hbm %s11397_s0, 6144 }
  0x16   :  { %p10250_p8 = scmp.ne.s32.totalorder %s11397_s0, %s10249_s19  ;;  %p10253_p9 = scmp.lt.u32.totalorder %s10249_s19, %s11397_s0 }
  0x18   :  { %p10255_p10 = pnand %p10253_p9, %p10250_p8 }
  0x1a   :  { %10258 = shalt.err (!%p10255_p10)
}
  0x1b   :  { %s10259_s24 = scalar_lea.vmem %s10393_s27, 6144  ;;  %p10264_p12 = scmp.lt.s32.totalorder %s10393_s27, %s10393_s27 }
  0x1c   :  { %p10260_p11 = scmp.ne.s32.totalorder %s10393_s27, %s10259_s24  ;;  %p10265_p13 = scmp.lt.s32.totalorder %s10259_s24, %s10259_s24 }
  0x1e   :  { %p10266_p0 = por %p10265_p13, %p10264_p12 }
  0x20   :  { %p10267_p1 = pnand %p10266_p0, %p10260_p11 }
  0x22   :  { %10270 = shalt.err (!%p10267_p1)
}
  0x23   :  { %27 = dma.hbm_to_vmem [thread:$0]  %s11397_s0, 6144, %s10393_s27, [#allocation4], %s10347_s13, %s10347_s13, %s10348_s14  }
  0x24   :  { %s10349_s26 = smov [#allocation8]   ;;  %s10350_s29 = smov [#allocation9]  }
  0x25   :  { %s47_s28 = sshll.u32 %s10349_s26, 4  ;;  %s61_s30 = sshll.u32 %s10350_s29, 4  ;;  %s48_s28 = int_to_ptr.vmem [resolvable:$true] %s47_s28  ;;  %s10430_s30 = int_to_ptr.vmem [resolvable:$true] %s61_s30 }
  0x26   :  { %s10271_s10 = scalar_lea.hbm %s11400_s3, 14336 }
  0x27   :  { %p10272_p2 = scmp.ne.s32.totalorder %s11400_s3, %s10271_s10  ;;  %p10275_p3 = scmp.lt.u32.totalorder %s10271_s10, %s11400_s3 }
  0x29   :  { %p10277_p4 = pnand %p10275_p3, %p10272_p2 }
  0x2b   :  { %10280 = shalt.err (!%p10277_p4)
}
  0x2c   :  { %s10281_s0 = scalar_lea.vmem %s48_s28, 14336  ;;  %p10286_p6 = scmp.lt.s32.totalorder %s48_s28, %s48_s28 }
  0x2d   :  { %p10282_p5 = scmp.ne.s32.totalorder %s48_s28, %s10281_s0  ;;  %p10287_p7 = scmp.lt.s32.totalorder %s10281_s0, %s10281_s0 }
  0x2f   :  { %p10288_p8 = por %p10287_p7, %p10286_p6 }
  0x31   :  { %p10289_p9 = pnand %p10288_p8, %p10282_p5 }
  0x33   :  { %10292 = shalt.err (!%p10289_p9)
}
  0x34   :  { %53 = dma.hbm_to_vmem [thread:$0]  %s11400_s3, 14336, %s48_s28, [#allocation7], %s10347_s13, %s10347_s13, %s10348_s14  }
  0x35   :  { %s10293_s20 = scalar_lea.hbm %s11402_s5, 14336 }
  0x36   :  { %p10294_p10 = scmp.ne.s32.totalorder %s11402_s5, %s10293_s20  ;;  %p10297_p11 = scmp.lt.u32.totalorder %s10293_s20, %s11402_s5 }
  0x38   :  { %p10299_p12 = pnand %p10297_p11, %p10294_p10 }
  0x3a   :  { %10302 = shalt.err (!%p10299_p12)
}
  0x3b   :  { %s10303_s1 = scalar_lea.vmem %s10430_s30, 14336  ;;  %p10308_p0 = scmp.lt.s32.totalorder %s10430_s30, %s10430_s30 }
  0x3c   :  { %p10304_p13 = scmp.ne.s32.totalorder %s10430_s30, %s10303_s1  ;;  %p10309_p1 = scmp.lt.s32.totalorder %s10303_s1, %s10303_s1 }
  0x3e   :  { %p10310_p2 = por %p10309_p1, %p10308_p0 }
  0x40   :  { %p10311_p3 = pnand %p10310_p2, %p10304_p13 }
  0x42   :  { %10314 = shalt.err (!%p10311_p3)
}
  0x43   :  { %67 = dma.hbm_to_vmem [thread:$0]  %s11402_s5, 14336, %s10430_s30, [#allocation10], %s10347_s13, %s10347_s13, %s10348_s14  }
  0x44   :  { %10337 = dma.done.wait [#allocation4], 6144  }
  0x45   :  { %10338 = vsyncadd [#allocation4], 4294961152 }
  0x46   :  { %10339 = dma.done.wait [#allocation7], 16128  }
  0x47   :  { %10340 = vsyncadd [#allocation7], 4294951168 }
  0x48   :  { %10341 = dma.done.wait [#allocation10], 14336  }
  0x49   :  { %10342 = vsyncadd [#allocation10], 4294952960  ;;  %v130_v0 = vld [vmem:[#allocation6] sm:$0xff]  ;;  %v131_v1 = vld [vmem:[#allocation6 + $0x8] sm:$0xff]  ;;  %vm151_vm0 = vcmask 916480  }
  0x4a   :  { %v132_v2 = vld [vmem:[#allocation6 + $0x10] sm:$0xff]  ;;  %v9153_v3 = vpack.c.bf16 %v131_v1, %v130_v0  ;;  %v133_v4 = vld [vmem:[#allocation6 + $0x18] sm:$0xff]  ;;  %v134_v6 = vld [vmem:[#allocation6 + $0x20] sm:$0xff] }
  0x4b   :  { %v9157_v5 = vpack.c.bf16 %v133_v4, %v132_v2  ;;  %v135_v7 = vld [vmem:[#allocation6 + $0x28] sm:$0xff]  ;;  %v82_v8 = vld [vmem:[#allocation3] sm:$0xff]  ;;  %v136_v10 = vld [vmem:[#allocation6 + $0x30] sm:$0xff] }
  0x4c   :  { %9154 = vmatprep.subr.bf16.mxu0 %v9153_v3  ;;  %9629 = vmatprep.subr.bf16.mxu1 %v9153_v3  ;;  %v9161_v9 = vpack.c.bf16 %v135_v7, %v134_v6  ;;  %v137_v11 = vld [vmem:[#allocation6 + $0x38] sm:$0xff]  ;;  %v138_v13 = vld [vmem:[#allocation6 + $0x40] sm:$0xff]  ;;  %v139_v14 = vld [vmem:[#allocation6 + $0x48] sm:$0xff] }
  0x4d   :  { %9156 = vmatpush3.bf16.msra.mxu0 %v9153_v3  ;;  %9636 = vmatpush3.bf16.msra.mxu1 %v9153_v3  ;;  %v9165_v12 = vpack.c.bf16 %v137_v11, %v136_v10  ;;  %v106_v15 = vld [vmem:[#allocation3 + $0xc0] sm:$0xff]  ;;  %v9169_v16 = vpack.c.bf16 %v139_v14, %v138_v13  ;;  %v140_v17 = vld [vmem:[#allocation6 + $0x50] sm:$0xff]  ;;  %v141_v18 = vld [vmem:[#allocation6 + $0x58] sm:$0xff] }
  0x4e   :  { %9158 = vmatprep.subr.bf16.mxu0 %v9157_v5  ;;  %7625 = vmatprep.mubr.msk.f32.mxu0 %vm151_vm0, %v82_v8  ;;  %v9173_v19 = vpack.c.bf16 %v141_v18, %v140_v17  ;;  %v142_v20 = vld [vmem:[#allocation6 + $0x60] sm:$0xff]  ;;  %v143_v21 = vld [vmem:[#allocation6 + $0x68] sm:$0xff]  ;;  %v770_v23 = vld [vmem:[#allocation8] sm:$0xff] }
  0x4f   :  { %9630 = vmatprep.subr.bf16.mxu1 %v9157_v5  ;;  %7661 = vmatprep.mubr.msk.f32.mxu1 %vm151_vm0, %v106_v15  ;;  %v9177_v22 = vpack.c.bf16 %v143_v21, %v142_v20  ;;  %v771_v24 = vld [vmem:[#allocation8 + $0x8] sm:$0xff]  ;;  %v772_v26 = vld [vmem:[#allocation8 + $0x10] sm:$0xff]  ;;  %v773_v27 = vld [vmem:[#allocation8 + $0x18] sm:$0xff] }
  0x50   :  { %v9181_v25 = vpack.c.bf16 %v771_v24, %v770_v23  ;;  %v83_v28 = vld [vmem:[#allocation3 + $0x8] sm:$0xff]  ;;  %v84_v30 = vld [vmem:[#allocation3 + $0x10] sm:$0xff]  ;;  %v9185_v32 = vpack.c.bf16 %v773_v27, %v772_v26  ;;  %v775_v34 = vld [vmem:[#allocation8 + $0x28] sm:$0xff]  ;;  %v10351_v26 = vmov 0.0  }
  0x51   :  { %9160 = vmatpush3.bf16.msra.mxu0 %v9157_v5  ;;  %9637 = vmatpush3.bf16.msra.mxu1 %v9157_v5  ;;  %v107_v29 = vld [vmem:[#allocation3 + $0xc8] sm:$0xff]  ;;  %v108_v31 = vld [vmem:[#allocation3 + $0xd0] sm:$0xff]  ;;  %v85_v35 = vld [vmem:[#allocation3 + $0x18] sm:$0xff]  ;;  %649 = vst [vmem:[#allocation2 + $0x2] sm:$0x3f] %v10351_v26 }
  0x52   :  { %9162 = vmatprep.subr.bf16.mxu0 %v9161_v9  ;;  %9631 = vmatprep.subr.bf16.mxu1 %v9161_v9  ;;  %v774_v33 = vld [vmem:[#allocation8 + $0x20] sm:$0xff]  ;;  %v109_v36 = vld [vmem:[#allocation3 + $0xd8] sm:$0xff]  ;;  %v86_v37 = vld [vmem:[#allocation3 + $0x20] sm:$0xff]  ;;  %650 = vst [vmem:[#allocation2 + $0x3a] sm:$0x3f] %v10351_v26 }
  0x53   :  { %v110_v38 = vld [vmem:[#allocation3 + $0xe0] sm:$0xff]  ;;  %v9189_v39 = vpack.c.bf16 %v775_v34, %v774_v33  ;;  %v777_v41 = vld [vmem:[#allocation8 + $0x38] sm:$0xff]  ;;  %v88_v44 = vld [vmem:[#allocation3 + $0x30] sm:$0xff]  ;;  %651 = vst [vmem:[#allocation2 + $0x72] sm:$0x3f] %v10351_v26 }
  0x54   :  { %v776_v40 = vld [vmem:[#allocation8 + $0x30] sm:$0xff]  ;;  %v87_v42 = vld [vmem:[#allocation3 + $0x28] sm:$0xff]  ;;  %v112_v45 = vld [vmem:[#allocation3 + $0xf0] sm:$0xff]  ;;  %652 = vst [vmem:[#allocation2 + $0xaa] sm:$0x3f] %v10351_v26 }
  0x55   :  { %9164 = vmatpush3.bf16.msra.mxu0 %v9161_v9  ;;  %9638 = vmatpush3.bf16.msra.mxu1 %v9161_v9  ;;  %v111_v43 = vld [vmem:[#allocation3 + $0xe8] sm:$0xff]  ;;  %v9193_v46 = vpack.c.bf16 %v777_v41, %v776_v40  ;;  %v778_v47 = vld [vmem:[#allocation8 + $0x40] sm:$0xff]  ;;  %v779_v48 = vld [vmem:[#allocation8 + $0x48] sm:$0xff]  ;;  %653 = vst [vmem:[#allocation2 + $0xe2] sm:$0x3f] %v10351_v26 }
  0x56   :  { %9166 = vmatprep.subr.bf16.mxu0 %v9165_v12  ;;  %9632 = vmatprep.subr.bf16.mxu1 %v9165_v12  ;;  %v89_v49 = vld [vmem:[#allocation3 + $0x38] sm:$0xff]  ;;  %v90_v51 = vld [vmem:[#allocation3 + $0x40] sm:$0xff]  ;;  %v9197_v53 = vpack.c.bf16 %v779_v48, %v778_v47  ;;  %v781_v55 = vld [vmem:[#allocation8 + $0x58] sm:$0xff]  ;;  %654 = vst [vmem:[#allocation2 + $0x11a] sm:$0x3f] %v10351_v26 }
  0x57   :  { %v113_v50 = vld [vmem:[#allocation3 + $0xf8] sm:$0xff]  ;;  %v114_v52 = vld [vmem:[#allocation3 + $0x100] sm:$0xff]  ;;  %v91_v56 = vld [vmem:[#allocation3 + $0x48] sm:$0xff]  ;;  %655 = vst [vmem:[#allocation2 + $0x152] sm:$0x3f] %v10351_v26 }
  0x58   :  { %v780_v54 = vld [vmem:[#allocation8 + $0x50] sm:$0xff]  ;;  %v115_v57 = vld [vmem:[#allocation3 + $0x108] sm:$0xff]  ;;  %v92_v58 = vld [vmem:[#allocation3 + $0x50] sm:$0xff]  ;;  %656 = vst [vmem:[#allocation2 + $0x18a] sm:$0x3f] %v10351_v26 }
  0x59   :  { %9168 = vmatpush3.bf16.msra.mxu0 %v9165_v12  ;;  %9639 = vmatpush3.bf16.msra.mxu1 %v9165_v12  ;;  %v116_v59 = vld [vmem:[#allocation3 + $0x110] sm:$0xff]  ;;  %v9201_v60 = vpack.c.bf16 %v781_v55, %v780_v54  ;;  %v93_v61 = vld [vmem:[#allocation3 + $0x58] sm:$0xff]  ;;  %v94_v63 = vld [vmem:[#allocation3 + $0x60] sm:$0xff] }
  0x5a   :  { %9170 = vmatprep.subr.bf16.mxu0 %v9169_v16  ;;  %9633 = vmatprep.subr.bf16.mxu1 %v9169_v16  ;;  %v117_v62 = vld [vmem:[#allocation3 + $0x118] sm:$0xff]  ;;  %v118_v0 = vld [vmem:[#allocation3 + $0x120] sm:$0xff]  ;;  %v95_v1 = vld [vmem:[#allocation3 + $0x68] sm:$0xff] }
  0x5b   :  { %v119_v2 = vld [vmem:[#allocation3 + $0x128] sm:$0xff]  ;;  %v96_v3 = vld [vmem:[#allocation3 + $0x70] sm:$0xff]  ;;  %v97_v5 = vld [vmem:[#allocation3 + $0x78] sm:$0xff] }
  0x5c   :  { %v120_v4 = vld [vmem:[#allocation3 + $0x130] sm:$0xff]  ;;  %v121_v6 = vld [vmem:[#allocation3 + $0x138] sm:$0xff]  ;;  %v98_v7 = vld [vmem:[#allocation3 + $0x80] sm:$0xff] }
  0x5d   :  { %9172 = vmatpush3.bf16.msra.mxu0 %v9169_v16  ;;  %9640 = vmatpush3.bf16.msra.mxu1 %v9169_v16  ;;  %v122_v8 = vld [vmem:[#allocation3 + $0x140] sm:$0xff]  ;;  %v99_v9 = vld [vmem:[#allocation3 + $0x88] sm:$0xff]  ;;  %v100_v11 = vld [vmem:[#allocation3 + $0x90] sm:$0xff] }
  0x5e   :  { %9174 = vmatprep.subr.bf16.mxu0 %v9173_v19  ;;  %9634 = vmatprep.subr.bf16.mxu1 %v9173_v19  ;;  %v123_v10 = vld [vmem:[#allocation3 + $0x148] sm:$0xff]  ;;  %v124_v12 = vld [vmem:[#allocation3 + $0x150] sm:$0xff]  ;;  %v101_v13 = vld [vmem:[#allocation3 + $0x98] sm:$0xff] }
  0x5f   :  { %v125_v14 = vld [vmem:[#allocation3 + $0x158] sm:$0xff]  ;;  %v102_v15 = vld [vmem:[#allocation3 + $0xa0] sm:$0xff]  ;;  %v103_v17 = vld [vmem:[#allocation3 + $0xa8] sm:$0xff] }
  0x60   :  { %v126_v16 = vld [vmem:[#allocation3 + $0x160] sm:$0xff]  ;;  %v127_v18 = vld [vmem:[#allocation3 + $0x168] sm:$0xff]  ;;  %v128_v20 = vld [vmem:[#allocation3 + $0x170] sm:$0xff] }
  0x61   :  { %9176 = vmatpush3.bf16.msra.mxu0 %v9173_v19  ;;  %9641 = vmatpush3.bf16.msra.mxu1 %v9173_v19  ;;  %v104_v19 = vld [vmem:[#allocation3 + $0xb0] sm:$0xff]  ;;  %v105_v21 = vld [vmem:[#allocation3 + $0xb8] sm:$0xff]  ;;  %v784_v27 = vld [vmem:[#allocation8 + $0x70] sm:$0xff] }
  0x62   :  { %9178 = vmatprep.subr.bf16.mxu0 %v9177_v22  ;;  %9635 = vmatprep.subr.bf16.mxu1 %v9177_v22  ;;  %v782_v23 = vld [vmem:[#allocation8 + $0x60] sm:$0xff]  ;;  %v783_v24 = vld [vmem:[#allocation8 + $0x68] sm:$0xff]  ;;  %v10521_v33 = vld [vmem:[%s11399_s2] ss:$0 sm:$0xff] }
  0x65   :  { %9180 = vmatpush3.bf16.msra.mxu0 %v9177_v22  ;;  %9642 = vmatpush3.bf16.msra.mxu1 %v9177_v22  ;;  %v129_v22 = vld [vmem:[#allocation3 + $0x178] sm:$0xff] }
  0x66   :  { %9182 = vmatprep.subr.bf16.mxu1 %v9181_v25 }
  0x68   :  { %7626 = vmatmul.mubr.msk.f32.vlgmr.msra.gmra.mrb[0].mxu0 %vm151_vm0, %v83_v28  ;;  %7662 = vmatmul.mubr.msk.f32.vlgmr.msra.gmra.mrb[0].mxu1 %vm151_vm0, %v107_v29  ;;  %v785_v28 = vld [vmem:[#allocation8 + $0x78] sm:$0xff] }
  0x69   :  { %7628 = vmatprep.mubr.msk.f32.mxu0 %vm151_vm0, %v84_v30  ;;  %7664 = vmatprep.mubr.msk.f32.mxu1 %vm151_vm0, %v108_v31  ;;  %v9209_v29 = vpack.c.bf16 %v785_v28, %v784_v27  ;;  %v706_v30 = vld [vmem:[#allocation8 + $0x300] sm:$0xff]  ;;  %v707_v31 = vld [vmem:[#allocation8 + $0x308] sm:$0xff] }
  0x6a   :  { %9184 = vmatpush3.bf16.msra.mxu1 %v9181_v25  ;;  %v9205_v25 = vpack.c.bf16 %v783_v24, %v782_v23 }
  0x6b   :  { %9186 = vmatprep.subr.bf16.mxu1 %v9185_v32 }
  0x6c   :  { %7629 = vmatmul.mubr.msk.f32.gmra.mrb[2].mxu0 %vm151_vm0, %v85_v35  ;;  %7665 = vmatmul.mubr.msk.f32.gmra.mrb[2].mxu1 %vm151_vm0, %v109_v36 }
  0x6d   :  { %7631 = vmatprep.mubr.msk.f32.mxu0 %vm151_vm0, %v86_v37  ;;  %7667 = vmatprep.mubr.msk.f32.mxu1 %vm151_vm0, %v110_v38 }
  0x6e   :  { %9188 = vmatpush3.bf16.msra.mxu1 %v9185_v32  ;;  %v10515_v32 = vpack.c.bf16 %v707_v31, %v706_v30 }
  0x6f   :  { %9190 = vmatprep.subr.bf16.mxu1 %v9189_v39 }
  0x70   :  { %7632 = vmatmul.mubr.msk.f32.gmra.mrb[4].mxu0 %vm151_vm0, %v87_v42  ;;  %7668 = vmatmul.mubr.msk.f32.gmra.mrb[4].mxu1 %vm151_vm0, %v111_v43 }
  0x71   :  { %7634 = vmatprep.mubr.msk.f32.mxu0 %vm151_vm0, %v88_v44  ;;  %7670 = vmatprep.mubr.msk.f32.mxu1 %vm151_vm0, %v112_v45 }
  0x72   :  { %9192 = vmatpush3.bf16.msra.mxu1 %v9189_v39 }
  0x73   :  { %9194 = vmatprep.subr.bf16.mxu1 %v9193_v46 }
  0x74   :  { %7635 = vmatmul.mubr.msk.f32.gmra.mrb[6].mxu0 %vm151_vm0, %v89_v49  ;;  %7671 = vmatmul.mubr.msk.f32.gmra.mrb[6].mxu1 %vm151_vm0, %v113_v50 }
  0x75   :  { %7637 = vmatprep.mubr.msk.f32.mxu0 %vm151_vm0, %v90_v51  ;;  %7673 = vmatprep.mubr.msk.f32.mxu1 %vm151_vm0, %v114_v52 }
  0x76   :  { %9196 = vmatpush3.bf16.msra.mxu1 %v9193_v46 }
  0x77   :  { %9198 = vmatprep.subr.bf16.mxu1 %v9197_v53 }
  0x78   :  { %7638 = vmatmul.mubr.msk.f32.gmra.mrb[8].mxu0 %vm151_vm0, %v91_v56  ;;  %7674 = vmatmul.mubr.msk.f32.gmra.mrb[8].mxu1 %vm151_vm0, %v115_v57 }
  0x79   :  { %7640 = vmatprep.mubr.msk.f32.mxu0 %vm151_vm0, %v92_v58  ;;  %7676 = vmatprep.mubr.msk.f32.mxu1 %vm151_vm0, %v116_v59 }
  0x7a   :  { %9200 = vmatpush3.bf16.msra.mxu1 %v9197_v53 }
  0x7b   :  { %9202 = vmatprep.subr.bf16.mxu1 %v9201_v60 }
  0x7c   :  { %7641 = vmatmul.mubr.msk.f32.gmra.mrb[10].mxu0 %vm151_vm0, %v93_v61  ;;  %7677 = vmatmul.mubr.msk.f32.gmra.mrb[10].mxu1 %vm151_vm0, %v117_v62 }
  0x7d   :  { %7643 = vmatprep.mubr.msk.f32.mxu0 %vm151_vm0, %v94_v63  ;;  %7679 = vmatprep.mubr.msk.f32.mxu1 %vm151_vm0, %v118_v0 }
  0x7e   :  { %9204 = vmatpush3.bf16.msra.mxu1 %v9201_v60 }
  0x7f   :  { %9206 = vmatprep.subr.bf16.mxu1 %v9205_v25 }
  0x80   :  { %7644 = vmatmul.mubr.msk.f32.gmra.mrb[12].mxu0 %vm151_vm0, %v95_v1  ;;  %7680 = vmatmul.mubr.msk.f32.gmra.mrb[12].mxu1 %vm151_vm0, %v119_v2  ;;  %v708_v1 = vld [vmem:[#allocation8 + $0x310] sm:$0xff]  ;;  %v709_v2 = vld [vmem:[#allocation8 + $0x318] sm:$0xff] }
  0x81   :  { %7646 = vmatprep.mubr.msk.f32.mxu0 %vm151_vm0, %v96_v3  ;;  %7682 = vmatprep.mubr.msk.f32.mxu1 %vm151_vm0, %v120_v4 }
  0x82   :  { %9208 = vmatpush3.bf16.msra.mxu1 %v9205_v25 }
  0x83   :  { %9210 = vmatprep.subr.bf16.mxu1 %v9209_v29 }
  0x84   :  { %7647 = vmatmul.mubr.msk.f32.gmra.mrb[14].mxu0 %vm151_vm0, %v97_v5  ;;  %7683 = vmatmul.mubr.msk.f32.gmra.mrb[14].mxu1 %vm151_vm0, %v121_v6 }
  0x85   :  { %7649 = vmatprep.mubr.msk.f32.mxu0 %vm151_vm0, %v98_v7  ;;  %7685 = vmatprep.mubr.msk.f32.mxu1 %vm151_vm0, %v122_v8 }
  0x86   :  { %9212 = vmatpush3.bf16.msra.mxu1 %v9209_v29 }
  0x87   :  { %9214 = vmatprep.subr.bf16.mxu1 %v10515_v32 }
  0x88   :  { %7650 = vmatmul.mubr.msk.f32.gmra.mrb[16].mxu0 %vm151_vm0, %v99_v9  ;;  %7686 = vmatmul.mubr.msk.f32.gmra.mrb[16].mxu1 %vm151_vm0, %v123_v10 }
  0x89   :  { %7652 = vmatprep.mubr.msk.f32.mxu0 %vm151_vm0, %v100_v11  ;;  %7688 = vmatprep.mubr.msk.f32.mxu1 %vm151_vm0, %v124_v12 }
  0x8c   :  { %7653 = vmatmul.mubr.msk.f32.gmra.mrb[18].mxu0 %vm151_vm0, %v101_v13  ;;  %7689 = vmatmul.mubr.msk.f32.gmra.mrb[18].mxu1 %vm151_vm0, %v125_v14  ;;  %v9217_v14 = vpack.c.bf16 %v709_v2, %v708_v1 }
  0x8d   :  { %7655 = vmatprep.mubr.msk.f32.mxu0 %vm151_vm0, %v102_v15  ;;  %7691 = vmatprep.mubr.msk.f32.mxu1 %vm151_vm0, %v126_v16 }
  0x90   :  { %7656 = vmatmul.mubr.msk.f32.gmra.mrb[20].mxu0 %vm151_vm0, %v103_v17  ;;  %7692 = vmatmul.mubr.msk.f32.gmra.mrb[20].mxu1 %vm151_vm0, %v127_v18  ;;  %v710_v18 = vld [vmem:[#allocation8 + $0x320] sm:$0xff] }
  0x91   :  { %7658 = vmatprep.mubr.msk.f32.mxu0 %vm151_vm0, %v104_v19  ;;  %7694 = vmatprep.mubr.msk.f32.mxu1 %vm151_vm0, %v128_v20  ;;  %v711_v19 = vld [vmem:[#allocation8 + $0x328] sm:$0xff] }
  0x92   :  { %v9221_v31 = vpack.c.bf16 %v711_v19, %v710_v18 }
  0x94   :  { %7659 = vmatmul.mubr.msk.f32.gmra.mrb[22].mxu0 %vm151_vm0, %v105_v21  ;;  %7695 = vmatmul.mubr.msk.f32.gmra.mrb[22].mxu1 %vm151_vm0, %v129_v22 }
 0x13b   :  { %v7627_v34 = vpop.f32.mrb[0].mxu0  ;;  %v7663_v35 = vpop.f32.mrb[0].mxu1 }
 0x13c   :  { %v10524_v36 = vadd.f32 %v7627_v34, %v10521_v33  ;;  %v362_v37 = vpop.f32.mrb[1].mxu0  ;;  %v10527_v38 = vadd.f32 %v7663_v35, %v10521_v33  ;;  %v482_v39 = vpop.f32.mrb[1].mxu1 }
 0x13d   :  { %v10530_v40 = vadd.f32 %v10521_v33, %v362_v37  ;;  %v10533_v41 = vadd.f32 %v10521_v33, %v482_v39  ;;  %v712_v37 = vld [vmem:[#allocation8 + $0x330] sm:$0xff]  ;;  %v713_v39 = vld [vmem:[#allocation8 + $0x338] sm:$0xff] }
 0x13e   :  { %v602_v42 = vmax.f32 %v10524_v36, 0.0  ;;  %v11417_v43 = vmax.f32 %v10527_v38, 0.0  ;;  %v1453_v36 = vld [vmem:[#allocation8 + $0xc0] sm:$0xff] }
 0x13f   :  { %v601_v44 = vmax.f32 %v10530_v40, 0.0  ;;  %v7630_v45 = vpop.f32.mrb[2].mxu0  ;;  %v11418_v46 = vmax.f32 %v10533_v41, 0.0  ;;  %v7666_v47 = vpop.f32.mrb[2].mxu1 }
 0x140   :  { %658 = vst [vmem:[#allocation2 + $0x10] sm:$0xff] %v602_v42  ;;  %v10542_v48 = vadd.f32 %v7630_v45, %v10521_v33  ;;  %v372_v49 = vpop.f32.mrb[3].mxu0  ;;  %682 = vst [vmem:[#allocation2 + $0xf0] sm:$0xff] %v11417_v43  ;;  %v10547_v50 = vadd.f32 %v7666_v47, %v10521_v33  ;;  %v492_v51 = vpop.f32.mrb[3].mxu1 }
 0x141   :  { %657 = vst [vmem:[#allocation2 + $0x8] sm:$0xff] %v601_v44  ;;  %v10552_v52 = vadd.f32 %v10521_v33, %v372_v49  ;;  %681 = vst [vmem:[#allocation2 + $0xe8] sm:$0xff] %v11418_v46  ;;  %v10557_v53 = vadd.f32 %v10521_v33, %v492_v51 }
 0x142   :  { %v11449_v54 = vmax.f32 %v10542_v48, 0.0  ;;  %v11415_v55 = vmax.f32 %v10547_v50, 0.0 }
 0x143   :  { %v603_v56 = vmax.f32 %v10552_v52, 0.0  ;;  %v7633_v57 = vpop.f32.mrb[4].mxu0  ;;  %v11416_v58 = vmax.f32 %v10557_v53, 0.0  ;;  %v7669_v59 = vpop.f32.mrb[4].mxu1 }
 0x144   :  { %660 = vst [vmem:[#allocation2 + $0x20] sm:$0xff] %v11449_v54  ;;  %v10566_v60 = vadd.f32 %v7633_v57, %v10521_v33  ;;  %v382_v61 = vpop.f32.mrb[5].mxu0  ;;  %684 = vst [vmem:[#allocation2 + $0x100] sm:$0xff] %v11415_v55  ;;  %v10571_v62 = vadd.f32 %v7669_v59, %v10521_v33  ;;  %v502_v63 = vpop.f32.mrb[5].mxu1 }
 0x145   :  { %659 = vst [vmem:[#allocation2 + $0x18] sm:$0xff] %v603_v56  ;;  %v10576_v0 = vadd.f32 %v10521_v33, %v382_v61  ;;  %683 = vst [vmem:[#allocation2 + $0xf8] sm:$0xff] %v11416_v58  ;;  %v10581_v3 = vadd.f32 %v10521_v33, %v502_v63 }
 0x146   :  { %v11439_v4 = vmax.f32 %v10566_v60, 0.0  ;;  %v11411_v5 = vmax.f32 %v10571_v62, 0.0 }
 0x147   :  { %v11442_v6 = vmax.f32 %v10576_v0, 0.0  ;;  %v7636_v7 = vpop.f32.mrb[6].mxu0  ;;  %v11413_v8 = vmax.f32 %v10581_v3, 0.0  ;;  %v7672_v9 = vpop.f32.mrb[6].mxu1  ;;  %v11495_v40 = vmax.f32 %v10576_v0, 0.0 }
 0x148   :  { %662 = vst [vmem:[#allocation2 + $0x30] sm:$0xff] %v11439_v4  ;;  %v10590_v10 = vadd.f32 %v7636_v7, %v10521_v33  ;;  %v392_v11 = vpop.f32.mrb[7].mxu0  ;;  %v722_v12 = vld [vmem:[#allocation2 + $0x2] sm:$0xff]  ;;  %v723_v13 = vld [vmem:[#allocation2 + $0xa] sm:$0xff]  ;;  %686 = vst [vmem:[#allocation2 + $0x110] sm:$0xff] %v11411_v5  ;;  %v10595_v15 = vadd.f32 %v7672_v9, %v10521_v33  ;;  %v512_v16 = vpop.f32.mrb[7].mxu1  ;;  %v9225_v9 = vpack.c.bf16 %v713_v39, %v712_v37 }
 0x149   :  { %661 = vst [vmem:[#allocation2 + $0x28] sm:$0xff] %v11442_v6  ;;  %v10600_v17 = vadd.f32 %v10521_v33, %v392_v11  ;;  %7729 = vmatprep.mubr.f32.mxu1 %v722_v12  ;;  %685 = vst [vmem:[#allocation2 + $0x108] sm:$0xff] %v11413_v8  ;;  %v10605_v20 = vadd.f32 %v10521_v33, %v512_v16  ;;  %v715_v16 = vld [vmem:[#allocation8 + $0x348] sm:$0xff]  ;;  %v718_v5 = vld [vmem:[#allocation8 + $0x360] sm:$0xff] }
 0x14a   :  { %v11433_v21 = vmax.f32 %v10590_v10, 0.0  ;;  %7730 = vmatmul.mubr.f32.vlgmr.msra.gmra.mrb[24].mxu1 %v723_v13  ;;  %v11409_v22 = vmax.f32 %v10595_v15, 0.0 }
 0x14b   :  { %v11434_v23 = vmax.f32 %v10600_v17, 0.0  ;;  %9216 = vmatpush3.bf16.msra.mxu1 %v10515_v32  ;;  %v7639_v24 = vpop.f32.mrb[8].mxu0  ;;  %v11410_v25 = vmax.f32 %v10605_v20, 0.0  ;;  %v7675_v26 = vpop.f32.mrb[8].mxu1  ;;  %v11497_v52 = vmax.f32 %v10600_v17, 0.0 }
 0x14c   :  { %664 = vst [vmem:[#allocation2 + $0x48] sm:$0xff] %v11433_v21  ;;  %v10615_v27 = vadd.f32 %v7639_v24, %v10521_v33  ;;  %v402_v28 = vpop.f32.mrb[9].mxu0  ;;  %v724_v29 = vld [vmem:[#allocation2 + $0x12] sm:$0xff]  ;;  %v725_v30 = vld [vmem:[#allocation2 + $0x1a] sm:$0xff]  ;;  %9218 = vmatprep.subr.bf16.mxu1 %v9217_v14  ;;  %688 = vst [vmem:[#allocation2 + $0x128] sm:$0xff] %v11409_v22  ;;  %v10620_v32 = vadd.f32 %v7675_v26, %v10521_v33  ;;  %v522_v34 = vpop.f32.mrb[9].mxu1 }
 0x14d   :  { %663 = vst [vmem:[#allocation2 + $0x40] sm:$0xff] %v11434_v23  ;;  %v10625_v35 = vadd.f32 %v10521_v33, %v402_v28  ;;  %7732 = vmatprep.mubr.f32.mxu1 %v724_v29  ;;  %687 = vst [vmem:[#allocation2 + $0x120] sm:$0xff] %v11410_v25  ;;  %v10630_v45 = vadd.f32 %v10521_v33, %v522_v34 }
 0x14e   :  { %v11430_v47 = vmax.f32 %v10615_v27, 0.0  ;;  %7733 = vmatmul.mubr.f32.gmra.mrb[26].mxu1 %v725_v30  ;;  %v11407_v49 = vmax.f32 %v10620_v32, 0.0 }
 0x14f   :  { %v11432_v51 = vmax.f32 %v10625_v35, 0.0  ;;  %v7642_v57 = vpop.f32.mrb[10].mxu0  ;;  %9220 = vmatpush3.bf16.msra.mxu1 %v9217_v14  ;;  %v11408_v59 = vmax.f32 %v10630_v45, 0.0  ;;  %v7678_v61 = vpop.f32.mrb[10].mxu1  ;;  %v714_v14 = vld [vmem:[#allocation8 + $0x340] sm:$0xff]  ;;  %v11499_v0 = vmax.f32 %v10625_v35, 0.0 }
 0x150   :  { %666 = vst [vmem:[#allocation2 + $0x58] sm:$0xff] %v11430_v47  ;;  %v10639_v63 = vadd.f32 %v7642_v57, %v10521_v33  ;;  %v412_v1 = vpop.f32.mrb[11].mxu0  ;;  %v726_v2 = vld [vmem:[#allocation2 + $0x22] sm:$0xff]  ;;  %v727_v7 = vld [vmem:[#allocation2 + $0x2a] sm:$0xff]  ;;  %9222 = vmatprep.subr.bf16.mxu1 %v9221_v31  ;;  %690 = vst [vmem:[#allocation2 + $0x138] sm:$0xff] %v11407_v49  ;;  %v10644_v11 = vadd.f32 %v7678_v61, %v10521_v33  ;;  %v532_v12 = vpop.f32.mrb[11].mxu1  ;;  %v9229_v61 = vpack.c.bf16 %v715_v16, %v714_v14 }
 0x151   :  { %665 = vst [vmem:[#allocation2 + $0x50] sm:$0xff] %v11432_v51  ;;  %v10649_v13 = vadd.f32 %v10521_v33, %v412_v1  ;;  %7735 = vmatprep.mubr.f32.mxu1 %v726_v2  ;;  %689 = vst [vmem:[#allocation2 + $0x130] sm:$0xff] %v11408_v59  ;;  %v10654_v18 = vadd.f32 %v10521_v33, %v532_v12  ;;  %v716_v12 = vld [vmem:[#allocation8 + $0x350] sm:$0xff]  ;;  %v717_v14 = vld [vmem:[#allocation8 + $0x358] sm:$0xff] }
 0x152   :  { %v11425_v19 = vmax.f32 %v10639_v63, 0.0  ;;  %7736 = vmatmul.mubr.f32.gmra.mrb[28].mxu1 %v727_v7  ;;  %v11405_v24 = vmax.f32 %v10644_v11, 0.0  ;;  %v9233_v22 = vpack.c.bf16 %v717_v14, %v716_v12 }
 0x153   :  { %v11428_v26 = vmax.f32 %v10649_v13, 0.0  ;;  %v7645_v28 = vpop.f32.mrb[12].mxu0  ;;  %9224 = vmatpush3.bf16.msra.mxu1 %v9221_v31  ;;  %v11406_v29 = vmax.f32 %v10654_v18, 0.0  ;;  %v7681_v30 = vpop.f32.mrb[12].mxu1  ;;  %v11501_v17 = vmax.f32 %v10649_v13, 0.0 }
 0x154   :  { %668 = vst [vmem:[#allocation2 + $0x68] sm:$0xff] %v11425_v19  ;;  %v10663_v34 = vadd.f32 %v7645_v28, %v10521_v33  ;;  %v422_v37 = vpop.f32.mrb[13].mxu0  ;;  %v728_v39 = vld [vmem:[#allocation2 + $0x3a] sm:$0xff]  ;;  %v729_v57 = vld [vmem:[#allocation2 + $0x42] sm:$0xff]  ;;  %9226 = vmatprep.subr.bf16.mxu1 %v9225_v9  ;;  %692 = vst [vmem:[#allocation2 + $0x148] sm:$0xff] %v11405_v24  ;;  %v10668_v1 = vadd.f32 %v7681_v30, %v10521_v33  ;;  %v542_v31 = vpop.f32.mrb[13].mxu1 }
 0x155   :  { %667 = vst [vmem:[#allocation2 + $0x60] sm:$0xff] %v11428_v26  ;;  %v10673_v2 = vadd.f32 %v10521_v33, %v422_v37  ;;  %7738 = vmatprep.mubr.f32.mxu1 %v728_v39  ;;  %691 = vst [vmem:[#allocation2 + $0x140] sm:$0xff] %v11406_v29  ;;  %v10678_v7 = vadd.f32 %v10521_v33, %v542_v31  ;;  %v1446_v26 = vld [vmem:[#allocation8 + $0x88] sm:$0xff] }
 0x156   :  { %v11423_v16 = vmax.f32 %v10663_v34, 0.0  ;;  %7739 = vmatmul.mubr.f32.gmra.mrb[30].mxu1 %v729_v57  ;;  %v11412_v28 = vmax.f32 %v10668_v1, 0.0 }
 0x157   :  { %v11424_v30 = vmax.f32 %v10673_v2, 0.0  ;;  %v7648_v24 = vpop.f32.mrb[14].mxu0  ;;  %9228 = vmatpush3.bf16.msra.mxu1 %v9225_v9  ;;  %v11414_v37 = vmax.f32 %v10678_v7, 0.0  ;;  %v7684_v39 = vpop.f32.mrb[14].mxu1  ;;  %v11503_v35 = vmax.f32 %v10673_v2, 0.0 }
 0x158   :  { %670 = vst [vmem:[#allocation2 + $0x80] sm:$0xff] %v11423_v16  ;;  %v10687_v31 = vadd.f32 %v7648_v24, %v10521_v33  ;;  %v432_v29 = vpop.f32.mrb[15].mxu0  ;;  %v730_v49 = vld [vmem:[#allocation2 + $0x4a] sm:$0xff]  ;;  %v731_v59 = vld [vmem:[#allocation2 + $0x52] sm:$0xff]  ;;  %9230 = vmatprep.subr.bf16.mxu1 %v9229_v61  ;;  %694 = vst [vmem:[#allocation2 + $0x160] sm:$0xff] %v11412_v28  ;;  %v10692_v57 = vadd.f32 %v7684_v39, %v10521_v33  ;;  %v552_v9 = vpop.f32.mrb[15].mxu1 }
 0x159   :  { %669 = vst [vmem:[#allocation2 + $0x78] sm:$0xff] %v11424_v30  ;;  %v10697_v25 = vadd.f32 %v10521_v33, %v432_v29  ;;  %7741 = vmatprep.mubr.f32.mxu1 %v730_v49  ;;  %693 = vst [vmem:[#allocation2 + $0x158] sm:$0xff] %v11414_v37  ;;  %v10702_v24 = vadd.f32 %v10521_v33, %v552_v9  ;;  %v719_v28 = vld [vmem:[#allocation8 + $0x368] sm:$0xff] }
 0x15a   :  { %v11420_v39 = vmax.f32 %v10687_v31, 0.0  ;;  %7742 = vmatmul.mubr.f32.gmra.mrb[32].mxu1 %v731_v59  ;;  %v11419_v12 = vmax.f32 %v10692_v57, 0.0  ;;  %v9237_v43 = vpack.c.bf16 %v719_v28, %v718_v5  ;;  %v755_v54 = vld [vmem:[#allocation2 + $0x132] sm:$0xff] }
 0x15b   :  { %v11421_v14 = vmax.f32 %v10697_v25, 0.0  ;;  %v7651_v8 = vpop.f32.mrb[16].mxu0  ;;  %9232 = vmatpush3.bf16.msra.mxu1 %v9229_v61  ;;  %v11422_v29 = vmax.f32 %v10702_v24, 0.0  ;;  %v7687_v49 = vpop.f32.mrb[16].mxu1  ;;  %v11505_v13 = vmax.f32 %v10697_v25, 0.0 }
 0x15c   :  { %672 = vst [vmem:[#allocation2 + $0x90] sm:$0xff] %v11420_v39  ;;  %v10711_v9 = vadd.f32 %v7651_v8, %v10521_v33  ;;  %v442_v37 = vpop.f32.mrb[17].mxu0  ;;  %v732_v55 = vld [vmem:[#allocation2 + $0x5a] sm:$0xff]  ;;  %v733_v58 = vld [vmem:[#allocation2 + $0x62] sm:$0xff]  ;;  %696 = vst [vmem:[#allocation2 + $0x170] sm:$0xff] %v11419_v12  ;;  %9234 = vmatprep.subr.bf16.mxu1 %v9233_v22  ;;  %v10716_v59 = vadd.f32 %v7687_v49, %v10521_v33  ;;  %v562_v61 = vpop.f32.mrb[17].mxu1 }
 0x15d   :  { %671 = vst [vmem:[#allocation2 + $0x88] sm:$0xff] %v11421_v14  ;;  %v10721_v46 = vadd.f32 %v10521_v33, %v442_v37  ;;  %7744 = vmatprep.mubr.f32.mxu1 %v732_v55  ;;  %695 = vst [vmem:[#allocation2 + $0x168] sm:$0xff] %v11422_v29  ;;  %v10726_v8 = vadd.f32 %v10521_v33, %v562_v61  ;;  %v720_v12 = vld [vmem:[#allocation8 + $0x370] sm:$0xff]  ;;  %v721_v39 = vld [vmem:[#allocation8 + $0x378] sm:$0xff] }
 0x15e   :  { %v11426_v49 = vmax.f32 %v10711_v9, 0.0  ;;  %7745 = vmatmul.mubr.f32.gmra.mrb[34].mxu1 %v733_v58  ;;  %v11427_v5 = vmax.f32 %v10716_v59, 0.0 }
 0x15f   :  { %v11429_v28 = vmax.f32 %v10721_v46, 0.0  ;;  %v7654_v14 = vpop.f32.mrb[18].mxu0  ;;  %9236 = vmatpush3.bf16.msra.mxu1 %v9233_v22  ;;  %v11431_v37 = vmax.f32 %v10726_v8, 0.0  ;;  %v7690_v55 = vpop.f32.mrb[18].mxu1  ;;  %v9241_v22 = vpack.c.bf16 %v721_v39, %v720_v12  ;;  %v11507_v2 = vmax.f32 %v10721_v46, 0.0 }
 0x160   :  { %674 = vst [vmem:[#allocation2 + $0xa0] sm:$0xff] %v11426_v49  ;;  %v10735_v61 = vadd.f32 %v7654_v14, %v10521_v33  ;;  %v452_v29 = vpop.f32.mrb[19].mxu0  ;;  %v734_v16 = vld [vmem:[#allocation2 + $0x72] sm:$0xff]  ;;  %v735_v30 = vld [vmem:[#allocation2 + $0x7a] sm:$0xff]  ;;  %698 = vst [vmem:[#allocation2 + $0x180] sm:$0xff] %v11427_v5  ;;  %v10740_v58 = vadd.f32 %v7690_v55, %v10521_v33  ;;  %v572_v19 = vpop.f32.mrb[19].mxu1  ;;  %9238 = vmatprep.subr.bf16.mxu1 %v9237_v43 }
 0x161   :  { %673 = vst [vmem:[#allocation2 + $0x98] sm:$0xff] %v11429_v28  ;;  %v10745_v49 = vadd.f32 %v10521_v33, %v452_v29  ;;  %7747 = vmatprep.mubr.f32.mxu1 %v734_v16  ;;  %697 = vst [vmem:[#allocation2 + $0x178] sm:$0xff] %v11431_v37  ;;  %v10750_v14 = vadd.f32 %v10521_v33, %v572_v19  ;;  %v1445_v5 = vld [vmem:[#allocation8 + $0x80] sm:$0xff] }
 0x162   :  { %v11436_v55 = vmax.f32 %v10735_v61, 0.0  ;;  %7748 = vmatmul.mubr.f32.gmra.mrb[36].mxu1 %v735_v30  ;;  %v11435_v39 = vmax.f32 %v10740_v58, 0.0  ;;  %v10766_v23 = vpack.c.bf16 %v1446_v26, %v1445_v5  ;;  %v11510_v25 = vmax.f32 %v10735_v61, 0.0 }
 0x163   :  { %v11437_v12 = vmax.f32 %v10745_v49, 0.0  ;;  %v7657_v28 = vpop.f32.mrb[20].mxu0  ;;  %v11438_v29 = vmax.f32 %v10750_v14, 0.0  ;;  %v7693_v47 = vpop.f32.mrb[20].mxu1  ;;  %9240 = vmatpush3.bf16.msra.mxu1 %v9237_v43  ;;  %v11517_v61 = vmax.f32 %v10557_v53, 0.0  ;;  %v11524_v53 = vmax.f32 %v10620_v32, 0.0 }
 0x164   :  { %676 = vst [vmem:[#allocation2 + $0xb8] sm:$0xff] %v11436_v55  ;;  %v10759_v19 = vadd.f32 %v7657_v28, %v10521_v33  ;;  %v462_v16 = vpop.f32.mrb[21].mxu0  ;;  %v736_v37 = vld [vmem:[#allocation2 + $0x82] sm:$0xff]  ;;  %v737_v51 = vld [vmem:[#allocation2 + $0x8a] sm:$0xff]  ;;  %700 = vst [vmem:[#allocation2 + $0x198] sm:$0xff] %v11435_v39  ;;  %v10764_v30 = vadd.f32 %v7693_v47, %v10521_v33  ;;  %v582_v21 = vpop.f32.mrb[21].mxu1  ;;  %9242 = vmatprep.subr.bf16.mxu1 %v9241_v22 }
 0x165   :  { %675 = vst [vmem:[#allocation2 + $0xb0] sm:$0xff] %v11437_v12  ;;  %v10771_v43 = vadd.f32 %v10521_v33, %v462_v16  ;;  %7750 = vmatprep.mubr.f32.mxu1 %v736_v37  ;;  %699 = vst [vmem:[#allocation2 + $0x190] sm:$0xff] %v11438_v29  ;;  %v10776_v28 = vadd.f32 %v10521_v33, %v582_v21  ;;  %v11531_v32 = vmax.f32 %v10726_v8, 0.0  ;;  %v1865_v8 = vld [vmem:[#allocation8 + $0x110] sm:$0xff] }
 0x166   :  { %v11441_v47 = vmax.f32 %v10759_v19, 0.0  ;;  %7751 = vmatmul.mubr.f32.gmra.mrb[38].mxu1 %v737_v51  ;;  %v11440_v39 = vmax.f32 %v10764_v30, 0.0 }
 0x167   :  { %v11445_v26 = vmax.f32 %v10771_v43, 0.0  ;;  %v7660_v5 = vpop.f32.mrb[22].mxu0  ;;  %v11443_v55 = vmax.f32 %v10776_v28, 0.0  ;;  %v7696_v12 = vpop.f32.mrb[22].mxu1  ;;  %9244 = vmatpush3.bf16.msra.mxu1 %v9241_v22 }
 0x168   :  { %678 = vst [vmem:[#allocation2 + $0xc8] sm:$0xff] %v11441_v47  ;;  %v10785_v37 = vadd.f32 %v7660_v5, %v10521_v33  ;;  %v472_v21 = vpop.f32.mrb[23].mxu0  ;;  %v738_v16 = vld [vmem:[#allocation2 + $0x92] sm:$0xff]  ;;  %v739_v29 = vld [vmem:[#allocation2 + $0x9a] sm:$0xff]  ;;  %702 = vst [vmem:[#allocation2 + $0x1a8] sm:$0xff] %v11440_v39  ;;  %v10790_v51 = vadd.f32 %v7696_v12, %v10521_v33  ;;  %v592_v4 = vpop.f32.mrb[23].mxu1  ;;  %9246 = vmatprep.subr.bf16.mxu1 %v10766_v23 }
 0x169   :  { %677 = vst [vmem:[#allocation2 + $0xc0] sm:$0xff] %v11445_v26  ;;  %v10796_v22 = vadd.f32 %v10521_v33, %v472_v21  ;;  %7753 = vmatprep.mubr.f32.mxu1 %v738_v16  ;;  %701 = vst [vmem:[#allocation2 + $0x1a0] sm:$0xff] %v11443_v55  ;;  %v10801_v5 = vadd.f32 %v10521_v33, %v592_v4  ;;  %v747_v26 = vld [vmem:[#allocation2 + $0xea] sm:$0xff] }
 0x16a   :  { %v11444_v39 = vmax.f32 %v10785_v37, 0.0  ;;  %7754 = vmatmul.mubr.f32.gmra.mrb[40].mxu1 %v739_v29  ;;  %v11446_v12 = vmax.f32 %v10790_v51, 0.0 }
 0x16b   :  { %v11447_v47 = vmax.f32 %v10796_v22, 0.0  ;;  %v11448_v6 = vmax.f32 %v10801_v5, 0.0  ;;  %v11513_v46 = vmax.f32 %v10796_v22, 0.0  ;;  %v11520_v22 = vmax.f32 %v10571_v62, 0.0 }
 0x16c   :  { %680 = vst [vmem:[#allocation2 + $0xd8] sm:$0xff] %v11444_v39  ;;  %v740_v21 = vld [vmem:[#allocation2 + $0xaa] sm:$0xff]  ;;  %v741_v16 = vld [vmem:[#allocation2 + $0xb2] sm:$0xff]  ;;  %704 = vst [vmem:[#allocation2 + $0x1b8] sm:$0xff] %v11446_v12  ;;  %v11527_v62 = vmax.f32 %v10678_v7, 0.0  ;;  %v11534_v7 = vmax.f32 %v10740_v58, 0.0 }
 0x16d   :  { %679 = vst [vmem:[#allocation2 + $0xd0] sm:$0xff] %v11447_v47  ;;  %7756 = vmatprep.mubr.f32.mxu1 %v740_v21  ;;  %703 = vst [vmem:[#allocation2 + $0x1b0] sm:$0xff] %v11448_v6  ;;  %v746_v39 = vld [vmem:[#allocation2 + $0xe2] sm:$0xff]  ;;  %v748_v12 = vld [vmem:[#allocation2 + $0xf2] sm:$0xff] }
 0x16e   :  { %7757 = vmatmul.mubr.f32.gmra.mrb[42].mxu1 %v741_v16  ;;  %v749_v47 = vld [vmem:[#allocation2 + $0xfa] sm:$0xff]  ;;  %v750_v21 = vld [vmem:[#allocation2 + $0x102] sm:$0xff]  ;;  %v751_v16 = vld [vmem:[#allocation2 + $0x10a] sm:$0xff] }
 0x16f   :  { %v752_v6 = vld [vmem:[#allocation2 + $0x11a] sm:$0xff]  ;;  %v1867_v58 = vld [vmem:[#allocation8 + $0x120] sm:$0xff] }
 0x170   :  { %v742_v33 = vld [vmem:[#allocation2 + $0xba] sm:$0xff]  ;;  %v743_v4 = vld [vmem:[#allocation2 + $0xc2] sm:$0xff] }
 0x171   :  { %7759 = vmatprep.mubr.f32.mxu1 %v742_v33  ;;  %v753_v33 = vld [vmem:[#allocation2 + $0x122] sm:$0xff] }
 0x172   :  { %7760 = vmatmul.mubr.f32.gmra.mrb[44].mxu1 %v743_v4  ;;  %v754_v4 = vld [vmem:[#allocation2 + $0x12a] sm:$0xff] }
 0x174   :  { %v744_v29 = vld [vmem:[#allocation2 + $0xca] sm:$0xff]  ;;  %v745_v55 = vld [vmem:[#allocation2 + $0xd2] sm:$0xff] }
 0x175   :  { %7762 = vmatprep.mubr.f32.mxu1 %v744_v29  ;;  %v761_v29 = vld [vmem:[#allocation2 + $0x16a] sm:$0xff] }
 0x176   :  { %7763 = vmatmul.mubr.f32.gmra.mrb[46].mxu1 %v745_v55  ;;  %v756_v55 = vld [vmem:[#allocation2 + $0x13a] sm:$0xff] }
 0x177   :  { %7765 = vmatprep.mubr.f32.mxu1 %v746_v39  ;;  %v758_v39 = vld [vmem:[#allocation2 + $0x152] sm:$0xff] }
 0x17a   :  { %7766 = vmatmul.mubr.f32.gmra.mrb[48].mxu1 %v747_v26  ;;  %v757_v26 = vld [vmem:[#allocation2 + $0x142] sm:$0xff] }
 0x17b   :  { %7768 = vmatprep.mubr.f32.mxu1 %v748_v12  ;;  %v759_v12 = vld [vmem:[#allocation2 + $0x15a] sm:$0xff] }
 0x17e   :  { %7769 = vmatmul.mubr.f32.gmra.mrb[50].mxu1 %v749_v47  ;;  %v760_v47 = vld [vmem:[#allocation2 + $0x162] sm:$0xff] }
 0x17f   :  { %7771 = vmatprep.mubr.f32.mxu1 %v750_v21  ;;  %v762_v21 = vld [vmem:[#allocation2 + $0x172] sm:$0xff] }
 0x182   :  { %7772 = vmatmul.mubr.f32.gmra.mrb[52].mxu1 %v751_v16  ;;  %v763_v16 = vld [vmem:[#allocation2 + $0x17a] sm:$0xff] }
 0x183   :  { %7774 = vmatprep.mubr.f32.mxu1 %v752_v6  ;;  %v764_v6 = vld [vmem:[#allocation2 + $0x18a] sm:$0xff] }
 0x186   :  { %7775 = vmatmul.mubr.f32.gmra.mrb[54].mxu1 %v753_v33  ;;  %v765_v33 = vld [vmem:[#allocation2 + $0x192] sm:$0xff] }
 0x187   :  { %7777 = vmatprep.mubr.f32.mxu1 %v754_v4  ;;  %v767_v4 = vld [vmem:[#allocation2 + $0x1a2] sm:$0xff] }
 0x18a   :  { %7778 = vmatmul.mubr.f32.gmra.mrb[56].mxu1 %v755_v54  ;;  %v766_v54 = vld [vmem:[#allocation2 + $0x19a] sm:$0xff] }
 0x18b   :  { %7780 = vmatprep.mubr.f32.mxu1 %v756_v55  ;;  %v768_v55 = vld [vmem:[#allocation2 + $0x1aa] sm:$0xff] }
 0x18e   :  { %7781 = vmatmul.mubr.f32.gmra.mrb[58].mxu1 %v757_v26  ;;  %v1447_v26 = vld [vmem:[#allocation8 + $0x90] sm:$0xff] }
 0x18f   :  { %7783 = vmatprep.mubr.f32.mxu1 %v758_v39  ;;  %v769_v39 = vld [vmem:[#allocation2 + $0x1b2] sm:$0xff] }
 0x192   :  { %7784 = vmatmul.mubr.f32.gmra.mrb[60].mxu1 %v759_v12  ;;  %v1448_v12 = vld [vmem:[#allocation8 + $0x98] sm:$0xff] }
 0x193   :  { %7786 = vmatprep.mubr.f32.mxu1 %v760_v47  ;;  %v9249_v47 = vpack.c.bf16 %v1448_v12, %v1447_v26  ;;  %v1457_v26 = vld [vmem:[#allocation8 + $0xe0] sm:$0xff]  ;;  %v11500_v12 = vmax.f32 %v10615_v27, 0.0  ;;  %v1864_v27 = vld [vmem:[#allocation8 + $0x108] sm:$0xff] }
 0x196   :  { %7787 = vmatmul.mubr.f32.gmra.mrb[62].mxu1 %v761_v29  ;;  %v1449_v29 = vld [vmem:[#allocation8 + $0xa0] sm:$0xff] }
 0x197   :  { %7789 = vmatprep.mubr.f32.mxu1 %v762_v21  ;;  %v1450_v21 = vld [vmem:[#allocation8 + $0xa8] sm:$0xff] }
 0x19a   :  { %7790 = vmatmul.mubr.f32.gmra.mrb[64].mxu1 %v763_v16  ;;  %v1451_v16 = vld [vmem:[#allocation8 + $0xb0] sm:$0xff] }
 0x19b   :  { %7792 = vmatprep.mubr.f32.mxu1 %v764_v6  ;;  %v9253_v6 = vpack.c.bf16 %v1450_v21, %v1449_v29  ;;  %v1459_v29 = vld [vmem:[#allocation8 + $0xf0] sm:$0xff]  ;;  %v11502_v21 = vmax.f32 %v10639_v63, 0.0  ;;  %v11506_v63 = vmax.f32 %v10687_v31, 0.0  ;;  %v11512_v31 = vmax.f32 %v10759_v19, 0.0 }
 0x19c   :  { %v11519_v19 = vmax.f32 %v10581_v3, 0.0  ;;  %v11526_v3 = vmax.f32 %v10644_v11, 0.0  ;;  %v11533_v11 = vmax.f32 %v10750_v14, 0.0 }
 0x19e   :  { %7793 = vmatmul.mubr.f32.gmra.mrb[66].mxu1 %v765_v33  ;;  %v1452_v33 = vld [vmem:[#allocation8 + $0xb8] sm:$0xff] }
 0x19f   :  { %7795 = vmatprep.mubr.f32.mxu1 %v766_v54  ;;  %v11494_v54 = vmax.f32 %v10542_v48, 0.0  ;;  %v1456_v48 = vld [vmem:[#allocation8 + $0xd8] sm:$0xff] }
 0x1a2   :  { %7796 = vmatmul.mubr.f32.gmra.mrb[68].mxu1 %v767_v4  ;;  %v1455_v4 = vld [vmem:[#allocation8 + $0xd0] sm:$0xff] }
 0x1a3   :  { %7798 = vmatprep.mubr.f32.mxu1 %v768_v55  ;;  %v11498_v55 = vmax.f32 %v10590_v10, 0.0  ;;  %v1460_v10 = vld [vmem:[#allocation8 + $0xf8] sm:$0xff] }
 0x1a6   :  { %7799 = vmatmul.mubr.f32.gmra.mrb[70].mxu1 %v769_v39  ;;  %v9265_v39 = vpack.c.bf16 %v1456_v48, %v1455_v4  ;;  %v1399_v4 = vld [vmem:[#allocation2 + $0x1b] sm:$0xff]  ;;  %v1870_v48 = vld [vmem:[#allocation8 + $0x138] sm:$0xff] }
 0x1a7   :  { %7833 = vmatprep.mubr.f32.mxu1 %v601_v44  ;;  %v9257_v44 = vpack.c.bf16 %v1452_v33, %v1451_v16  ;;  %v1863_v16 = vld [vmem:[#allocation8 + $0x100] sm:$0xff]  ;;  %v11504_v33 = vmax.f32 %v10663_v34, 0.0  ;;  %v11509_v34 = vmax.f32 %v10745_v49, 0.0  ;;  %v11516_v49 = vmax.f32 %v10527_v38, 0.0 }
 0x1a8   :  { %v11523_v38 = vmax.f32 %v10630_v45, 0.0  ;;  %v11530_v45 = vmax.f32 %v10692_v57, 0.0  ;;  %v11537_v57 = vmax.f32 %v10801_v5, 0.0  ;;  %v1869_v5 = vld [vmem:[#allocation8 + $0x130] sm:$0xff] }
 0x1aa   :  { %7834 = vmatmul.mubr.f32.vlgmr.msra.gmra.mrb[24].mxu1 %v602_v42  ;;  %v1454_v42 = vld [vmem:[#allocation8 + $0xc8] sm:$0xff] }
 0x1ab   :  { %9248 = vmatpush3.bf16.msra.mxu1 %v10766_v23  ;;  %7836 = vmatprep.mubr.f32.mxu1 %v603_v56  ;;  %v11496_v23 = vmax.f32 %v10566_v60, 0.0  ;;  %v9261_v56 = vpack.c.bf16 %v1454_v42, %v1453_v36  ;;  %v1458_v60 = vld [vmem:[#allocation8 + $0xe8] sm:$0xff]  ;;  %v11514_v36 = vmax.f32 %v10785_v37, 0.0  ;;  %v11521_v37 = vmax.f32 %v10605_v20, 0.0  ;;  %v1866_v42 = vld [vmem:[#allocation8 + $0x118] sm:$0xff] }
 0x1ac   :  { %9250 = vmatprep.subr.bf16.mxu1 %v9249_v47  ;;  %v11528_v20 = vmax.f32 %v10668_v1, 0.0  ;;  %v11535_v1 = vmax.f32 %v10776_v28, 0.0  ;;  %v9281_v14 = vpack.c.bf16 %v1866_v42, %v1865_v8  ;;  %v1398_v28 = vld [vmem:[#allocation2 + $0x13] sm:$0xff]  ;;  %v1435_v8 = vld [vmem:[#allocation2 + $0x16b] sm:$0xff] }
 0x1ad   :  { %v1436_v42 = vld [vmem:[#allocation2 + $0x173] sm:$0xff] }
 0x1ae   :  { %7837 = vmatmul.mubr.f32.gmra.mrb[26].mxu1 %v11494_v54  ;;  %v9277_v54 = vpack.c.bf16 %v1864_v27, %v1863_v16  ;;  %v1876_v16 = vld [vmem:[#allocation8 + $0x168] sm:$0xff] }
 0x1af   :  { %7839 = vmatprep.mubr.f32.mxu1 %v11495_v40  ;;  %9252 = vmatpush3.bf16.msra.mxu1 %v9249_v47  ;;  %v9269_v47 = vpack.c.bf16 %v1458_v60, %v1457_v26  ;;  %v11508_v40 = vmax.f32 %v10711_v9, 0.0  ;;  %v11515_v9 = vmax.f32 %v10533_v41, 0.0  ;;  %v11522_v41 = vmax.f32 %v10595_v15, 0.0  ;;  %v1872_v26 = vld [vmem:[#allocation8 + $0x148] sm:$0xff] }
 0x1b0   :  { %9254 = vmatprep.subr.bf16.mxu1 %v9253_v6  ;;  %v11529_v15 = vmax.f32 %v10702_v24, 0.0  ;;  %v11536_v24 = vmax.f32 %v10764_v30, 0.0  ;;  %v1402_v60 = vld [vmem:[#allocation2 + $0x3b] sm:$0xff] }
 0x1b1   :  { %v1406_v27 = vld [vmem:[#allocation2 + $0x5b] sm:$0xff] }
 0x1b2   :  { %7840 = vmatmul.mubr.f32.gmra.mrb[28].mxu1 %v11496_v23  ;;  %v1396_v23 = vld [vmem:[#allocation2 + $0x3] sm:$0xff] }
 0x1b3   :  { %7842 = vmatprep.mubr.f32.mxu1 %v11497_v52  ;;  %9256 = vmatpush3.bf16.msra.mxu1 %v9253_v6  ;;  %v9273_v6 = vpack.c.bf16 %v1460_v10, %v1459_v29  ;;  %v1397_v52 = vld [vmem:[#allocation2 + $0xb] sm:$0xff] }
 0x1b4   :  { %9258 = vmatprep.subr.bf16.mxu1 %v9257_v44  ;;  %v1874_v29 = vld [vmem:[#allocation8 + $0x158] sm:$0xff] }
 0x1b5   :  { %v1404_v10 = vld [vmem:[#allocation2 + $0x4b] sm:$0xff] }
 0x1b6   :  { %7843 = vmatmul.mubr.f32.gmra.mrb[30].mxu1 %v11498_v55  ;;  %v1400_v55 = vld [vmem:[#allocation2 + $0x23] sm:$0xff] }
 0x1b7   :  { %7845 = vmatprep.mubr.f32.mxu1 %v11499_v0  ;;  %9260 = vmatpush3.bf16.msra.mxu1 %v9257_v44  ;;  %v11511_v44 = vmax.f32 %v10771_v43, 0.0  ;;  %v11518_v43 = vmax.f32 %v10547_v50, 0.0  ;;  %v11525_v50 = vmax.f32 %v10654_v18, 0.0  ;;  %v11532_v18 = vmax.f32 %v10716_v59, 0.0  ;;  %v1401_v0 = vld [vmem:[#allocation2 + $0x2b] sm:$0xff] }
 0x1b8   :  { %9262 = vmatprep.subr.bf16.mxu1 %v9261_v56  ;;  %v11538_v59 = vmax.f32 %v10790_v51, 0.0  ;;  %v9289_v51 = vpack.c.bf16 %v1870_v48, %v1869_v5  ;;  %v1814_v5 = vld [vmem:[#allocation2 + $0x4] sm:$0xff] }
 0x1ba   :  { %7846 = vmatmul.mubr.f32.gmra.mrb[32].mxu1 %v11500_v12 }
 0x1bb   :  { %7848 = vmatprep.mubr.f32.mxu1 %v11501_v17  ;;  %9264 = vmatpush3.bf16.msra.mxu1 %v9261_v56  ;;  %v1868_v56 = vld [vmem:[#allocation8 + $0x128] sm:$0xff]  ;;  %v1403_v17 = vld [vmem:[#allocation2 + $0x43] sm:$0xff] }
 0x1bc   :  { %9266 = vmatprep.subr.bf16.mxu1 %v9265_v39  ;;  %v9285_v30 = vpack.c.bf16 %v1868_v56, %v1867_v58  ;;  %v1441_v58 = vld [vmem:[#allocation2 + $0x1a3] sm:$0xff]  ;;  %v1442_v56 = vld [vmem:[#allocation2 + $0x1ab] sm:$0xff] }
 0x1be   :  { %7849 = vmatmul.mubr.f32.gmra.mrb[34].mxu1 %v11502_v21 }
 0x1bf   :  { %7851 = vmatprep.mubr.f32.mxu1 %v11503_v35  ;;  %9268 = vmatpush3.bf16.msra.mxu1 %v9265_v39  ;;  %v1871_v39 = vld [vmem:[#allocation8 + $0x140] sm:$0xff] }
 0x1c0   :  { %9270 = vmatprep.subr.bf16.mxu1 %v9269_v47  ;;  %v9293_v12 = vpack.c.bf16 %v1872_v26, %v1871_v39  ;;  %v1405_v35 = vld [vmem:[#allocation2 + $0x53] sm:$0xff] }
 0x1c1   :  { %v1816_v39 = vld [vmem:[#allocation2 + $0x14] sm:$0xff] }
 0x1c2   :  { %7852 = vmatmul.mubr.f32.gmra.mrb[36].mxu1 %v11504_v33 }
 0x1c3   :  { %7854 = vmatprep.mubr.f32.mxu1 %v11505_v13  ;;  %9272 = vmatpush3.bf16.msra.mxu1 %v9269_v47  ;;  %v1873_v47 = vld [vmem:[#allocation8 + $0x150] sm:$0xff] }
 0x1c4   :  { %9274 = vmatprep.subr.bf16.mxu1 %v9273_v6  ;;  %v9297_v21 = vpack.c.bf16 %v1874_v29, %v1873_v47  ;;  %v1407_v13 = vld [vmem:[#allocation2 + $0x63] sm:$0xff] }
 0x1c5   :  { %v1818_v47 = vld [vmem:[#allocation2 + $0x24] sm:$0xff] }
 0x1c6   :  { %7855 = vmatmul.mubr.f32.gmra.mrb[38].mxu1 %v11506_v63  ;;  %v1878_v63 = vld [vmem:[#allocation8 + $0x178] sm:$0xff] }
 0x1c7   :  { %7857 = vmatprep.mubr.f32.mxu1 %v11507_v2  ;;  %9276 = vmatpush3.bf16.msra.mxu1 %v9273_v6  ;;  %v1875_v6 = vld [vmem:[#allocation8 + $0x160] sm:$0xff] }
 0x1c8   :  { %9278 = vmatprep.subr.bf16.mxu1 %v9277_v54  ;;  %v9301_v33 = vpack.c.bf16 %v1876_v16, %v1875_v6  ;;  %v1408_v2 = vld [vmem:[#allocation2 + $0x73] sm:$0xff]  ;;  %v1820_v6 = vld [vmem:[#allocation2 + $0x3c] sm:$0xff] }
 0x1ca   :  { %7858 = vmatmul.mubr.f32.gmra.mrb[40].mxu1 %v11508_v40 }
 0x1cb   :  { %7860 = vmatprep.mubr.f32.mxu1 %v11509_v34  ;;  %v1409_v34 = vld [vmem:[#allocation2 + $0x7b] sm:$0xff] }
 0x1ce   :  { %7861 = vmatmul.mubr.f32.gmra.mrb[42].mxu1 %v11510_v25  ;;  %v2281_v25 = vld [vmem:[#allocation8 + $0x180] sm:$0xff] }
 0x1cf   :  { %7863 = vmatprep.mubr.f32.mxu1 %v11511_v44  ;;  %v2282_v44 = vld [vmem:[#allocation8 + $0x188] sm:$0xff] }
 0x1d2   :  { %7864 = vmatmul.mubr.f32.gmra.mrb[44].mxu1 %v11512_v31  ;;  %v1410_v31 = vld [vmem:[#allocation2 + $0x83] sm:$0xff] }
 0x1d3   :  { %7866 = vmatprep.mubr.f32.mxu1 %v11513_v46  ;;  %v10912_v46 = vpack.c.bf16 %v2282_v44, %v2281_v25  ;;  %v1824_v25 = vld [vmem:[#allocation2 + $0x5c] sm:$0xff] }
 0x1d6   :  { %7867 = vmatmul.mubr.f32.gmra.mrb[46].mxu1 %v11514_v36  ;;  %v1411_v36 = vld [vmem:[#allocation2 + $0x8b] sm:$0xff] }
 0x1d7   :  { %7869 = vmatprep.mubr.f32.mxu1 %v11515_v9  ;;  %v1412_v9 = vld [vmem:[#allocation2 + $0x93] sm:$0xff] }
 0x1da   :  { %7870 = vmatmul.mubr.f32.gmra.mrb[48].mxu1 %v11516_v49  ;;  %v1413_v49 = vld [vmem:[#allocation2 + $0x9b] sm:$0xff] }
 0x1db   :  { %7872 = vmatprep.mubr.f32.mxu1 %v11517_v61  ;;  %v1414_v61 = vld [vmem:[#allocation2 + $0xab] sm:$0xff] }
 0x1de   :  { %7873 = vmatmul.mubr.f32.gmra.mrb[50].mxu1 %v11518_v43  ;;  %v1415_v43 = vld [vmem:[#allocation2 + $0xb3] sm:$0xff] }
 0x1df   :  { %7875 = vmatprep.mubr.f32.mxu1 %v11519_v19  ;;  %v1416_v19 = vld [vmem:[#allocation2 + $0xbb] sm:$0xff] }
 0x1e2   :  { %7876 = vmatmul.mubr.f32.gmra.mrb[52].mxu1 %v11520_v22  ;;  %v1417_v22 = vld [vmem:[#allocation2 + $0xc3] sm:$0xff] }
 0x1e3   :  { %7878 = vmatprep.mubr.f32.mxu1 %v11521_v37  ;;  %v1418_v37 = vld [vmem:[#allocation2 + $0xcb] sm:$0xff] }
 0x1e6   :  { %7879 = vmatmul.mubr.f32.gmra.mrb[54].mxu1 %v11522_v41  ;;  %v1419_v41 = vld [vmem:[#allocation2 + $0xd3] sm:$0xff] }
 0x1e7   :  { %7881 = vmatprep.mubr.f32.mxu1 %v11523_v38  ;;  %v1420_v38 = vld [vmem:[#allocation2 + $0xe3] sm:$0xff] }
 0x1ea   :  { %7882 = vmatmul.mubr.f32.gmra.mrb[56].mxu1 %v11524_v53  ;;  %v1421_v53 = vld [vmem:[#allocation2 + $0xeb] sm:$0xff] }
 0x1eb   :  { %7884 = vmatprep.mubr.f32.mxu1 %v11525_v50  ;;  %v1422_v50 = vld [vmem:[#allocation2 + $0xf3] sm:$0xff] }
 0x1ee   :  { %7885 = vmatmul.mubr.f32.gmra.mrb[58].mxu1 %v11526_v3  ;;  %v1423_v3 = vld [vmem:[#allocation2 + $0xfb] sm:$0xff] }
 0x1ef   :  { %7887 = vmatprep.mubr.f32.mxu1 %v11527_v62  ;;  %v1424_v62 = vld [vmem:[#allocation2 + $0x103] sm:$0xff] }
 0x1f2   :  { %7888 = vmatmul.mubr.f32.gmra.mrb[60].mxu1 %v11528_v20  ;;  %v1425_v20 = vld [vmem:[#allocation2 + $0x10b] sm:$0xff] }
 0x1f3   :  { %7890 = vmatprep.mubr.f32.mxu1 %v11529_v15  ;;  %v1426_v15 = vld [vmem:[#allocation2 + $0x11b] sm:$0xff] }
 0x1f6   :  { %7891 = vmatmul.mubr.f32.gmra.mrb[62].mxu1 %v11530_v45  ;;  %v1427_v45 = vld [vmem:[#allocation2 + $0x123] sm:$0xff] }
 0x1f7   :  { %7893 = vmatprep.mubr.f32.mxu1 %v11531_v32  ;;  %v1428_v32 = vld [vmem:[#allocation2 + $0x12b] sm:$0xff] }
 0x1fa   :  { %7894 = vmatmul.mubr.f32.gmra.mrb[64].mxu1 %v11532_v18  ;;  %v1429_v18 = vld [vmem:[#allocation2 + $0x133] sm:$0xff] }
 0x1fb   :  { %7896 = vmatprep.mubr.f32.mxu1 %v11533_v11  ;;  %v1430_v11 = vld [vmem:[#allocation2 + $0x13b] sm:$0xff] }
 0x1fe   :  { %7897 = vmatmul.mubr.f32.gmra.mrb[66].mxu1 %v11534_v7  ;;  %v1431_v7 = vld [vmem:[#allocation2 + $0x143] sm:$0xff] }
 0x1ff   :  { %7899 = vmatprep.mubr.f32.mxu1 %v11535_v1  ;;  %v1432_v1 = vld [vmem:[#allocation2 + $0x153] sm:$0xff] }
 0x202   :  { %7900 = vmatmul.mubr.f32.gmra.mrb[68].mxu1 %v11536_v24  ;;  %v1433_v24 = vld [vmem:[#allocation2 + $0x15b] sm:$0xff] }
 0x203   :  { %7902 = vmatprep.mubr.f32.mxu1 %v11537_v57  ;;  %v1434_v57 = vld [vmem:[#allocation2 + $0x163] sm:$0xff] }
 0x206   :  { %7903 = vmatmul.mubr.f32.gmra.mrb[70].mxu1 %v11538_v59  ;;  %v1437_v59 = vld [vmem:[#allocation2 + $0x17b] sm:$0xff] }
 0x207   :  { %7937 = vmatprep.mubr.f32.mxu1 %v1396_v23  ;;  %v1438_v23 = vld [vmem:[#allocation2 + $0x18b] sm:$0xff] }
 0x20a   :  { %7938 = vmatmul.mubr.f32.vlgmr.msra.gmra.mrb[24].mxu1 %v1397_v52  ;;  %v1440_v52 = vld [vmem:[#allocation2 + $0x19b] sm:$0xff] }
 0x20b   :  { %9280 = vmatpush3.bf16.msra.mxu1 %v9277_v54  ;;  %7940 = vmatprep.mubr.f32.mxu1 %v1398_v28  ;;  %v1877_v54 = vld [vmem:[#allocation8 + $0x170] sm:$0xff]  ;;  %v1443_v28 = vld [vmem:[#allocation2 + $0x1b3] sm:$0xff] }
 0x20c   :  { %9282 = vmatprep.subr.bf16.mxu1 %v9281_v14  ;;  %v9305_v40 = vpack.c.bf16 %v1878_v63, %v1877_v54  ;;  %v1822_v54 = vld [vmem:[#allocation2 + $0x4c] sm:$0xff] }
 0x20e   :  { %7941 = vmatmul.mubr.f32.gmra.mrb[26].mxu1 %v1399_v4  ;;  %v2284_v4 = vld [vmem:[#allocation8 + $0x198] sm:$0xff] }
 0x20f   :  { %7943 = vmatprep.mubr.f32.mxu1 %v1400_v55  ;;  %9284 = vmatpush3.bf16.msra.mxu1 %v9281_v14  ;;  %v1439_v14 = vld [vmem:[#allocation2 + $0x193] sm:$0xff] }
 0x210   :  { %9286 = vmatprep.subr.bf16.mxu1 %v9285_v30  ;;  %v1815_v55 = vld [vmem:[#allocation2 + $0xc] sm:$0xff] }
 0x212   :  { %7944 = vmatmul.mubr.f32.gmra.mrb[28].mxu1 %v1401_v0  ;;  %v2286_v0 = vld [vmem:[#allocation8 + $0x1a8] sm:$0xff] }
 0x213   :  { %7946 = vmatprep.mubr.f32.mxu1 %v1402_v60  ;;  %9288 = vmatpush3.bf16.msra.mxu1 %v9285_v30  ;;  %v2283_v30 = vld [vmem:[#allocation8 + $0x190] sm:$0xff] }
 0x214   :  { %9290 = vmatprep.subr.bf16.mxu1 %v9289_v51  ;;  %v9313_v48 = vpack.c.bf16 %v2284_v4, %v2283_v30  ;;  %v1817_v60 = vld [vmem:[#allocation2 + $0x1c] sm:$0xff]  ;;  %v1854_v30 = vld [vmem:[#allocation2 + $0x174] sm:$0xff] }
 0x215   :  { %v1855_v4 = vld [vmem:[#allocation2 + $0x17c] sm:$0xff] }
 0x216   :  { %7947 = vmatmul.mubr.f32.gmra.mrb[30].mxu1 %v1403_v17  ;;  %v2288_v17 = vld [vmem:[#allocation8 + $0x1b8] sm:$0xff] }
 0x217   :  { %7949 = vmatprep.mubr.f32.mxu1 %v1404_v10  ;;  %9292 = vmatpush3.bf16.msra.mxu1 %v9289_v51  ;;  %v2285_v51 = vld [vmem:[#allocation8 + $0x1a0] sm:$0xff] }
 0x218   :  { %9294 = vmatprep.subr.bf16.mxu1 %v9293_v12  ;;  %v9317_v26 = vpack.c.bf16 %v2286_v0, %v2285_v51  ;;  %v1819_v10 = vld [vmem:[#allocation2 + $0x2c] sm:$0xff]  ;;  %v1859_v51 = vld [vmem:[#allocation2 + $0x1a4] sm:$0xff] }
 0x219   :  { %v1860_v0 = vld [vmem:[#allocation2 + $0x1ac] sm:$0xff] }
 0x21a   :  { %7950 = vmatmul.mubr.f32.gmra.mrb[32].mxu1 %v1405_v35  ;;  %v2290_v35 = vld [vmem:[#allocation8 + $0x1c8] sm:$0xff] }
 0x21b   :  { %7952 = vmatprep.mubr.f32.mxu1 %v1406_v27  ;;  %9296 = vmatpush3.bf16.msra.mxu1 %v9293_v12  ;;  %v2287_v12 = vld [vmem:[#allocation8 + $0x1b0] sm:$0xff] }
 0x21c   :  { %9298 = vmatprep.subr.bf16.mxu1 %v9297_v21  ;;  %v9321_v29 = vpack.c.bf16 %v2288_v17, %v2287_v12  ;;  %v1821_v27 = vld [vmem:[#allocation2 + $0x44] sm:$0xff] }
 0x21d   :  { %v2232_v12 = vld [vmem:[#allocation2 + $0x5] sm:$0xff] }
 0x21e   :  { %7953 = vmatmul.mubr.f32.gmra.mrb[34].mxu1 %v1407_v13  ;;  %v2292_v13 = vld [vmem:[#allocation8 + $0x1d8] sm:$0xff] }
 0x21f   :  { %7955 = vmatprep.mubr.f32.mxu1 %v1408_v2  ;;  %9300 = vmatpush3.bf16.msra.mxu1 %v9297_v21  ;;  %v2289_v21 = vld [vmem:[#allocation8 + $0x1c0] sm:$0xff] }
 0x220   :  { %9302 = vmatprep.subr.bf16.mxu1 %v9301_v33  ;;  %v9325_v16 = vpack.c.bf16 %v2290_v35, %v2289_v21  ;;  %v1823_v2 = vld [vmem:[#allocation2 + $0x54] sm:$0xff] }
 0x221   :  { %v2234_v21 = vld [vmem:[#allocation2 + $0x15] sm:$0xff] }
 0x222   :  { %7956 = vmatmul.mubr.f32.gmra.mrb[36].mxu1 %v1409_v34  ;;  %v2294_v34 = vld [vmem:[#allocation8 + $0x1e8] sm:$0xff] }
 0x223   :  { %7958 = vmatprep.mubr.f32.mxu1 %v1410_v31  ;;  %9304 = vmatpush3.bf16.msra.mxu1 %v9301_v33  ;;  %v2291_v33 = vld [vmem:[#allocation8 + $0x1d0] sm:$0xff] }
 0x224   :  { %9306 = vmatprep.subr.bf16.mxu1 %v9305_v40  ;;  %v9329_v63 = vpack.c.bf16 %v2292_v13, %v2291_v33  ;;  %v1825_v31 = vld [vmem:[#allocation2 + $0x64] sm:$0xff] }
 0x225   :  { %v2236_v33 = vld [vmem:[#allocation2 + $0x25] sm:$0xff] }
 0x226   :  { %7959 = vmatmul.mubr.f32.gmra.mrb[38].mxu1 %v1411_v36  ;;  %v2296_v36 = vld [vmem:[#allocation8 + $0x1f8] sm:$0xff] }
 0x227   :  { %7961 = vmatprep.mubr.f32.mxu1 %v1412_v9  ;;  %9308 = vmatpush3.bf16.msra.mxu1 %v9305_v40  ;;  %v2293_v40 = vld [vmem:[#allocation8 + $0x1e0] sm:$0xff] }
 0x228   :  { %9310 = vmatprep.subr.bf16.mxu1 %v10912_v46  ;;  %v9333_v44 = vpack.c.bf16 %v2294_v34, %v2293_v40  ;;  %v1826_v9 = vld [vmem:[#allocation2 + $0x74] sm:$0xff]  ;;  %v2238_v40 = vld [vmem:[#allocation2 + $0x3d] sm:$0xff] }
 0x22a   :  { %7962 = vmatmul.mubr.f32.gmra.mrb[40].mxu1 %v1413_v49 }
 0x22b   :  { %7964 = vmatprep.mubr.f32.mxu1 %v1414_v61  ;;  %v1827_v61 = vld [vmem:[#allocation2 + $0x7c] sm:$0xff] }
 0x22e   :  { %7965 = vmatmul.mubr.f32.gmra.mrb[42].mxu1 %v1415_v43  ;;  %v2699_v43 = vld [vmem:[#allocation8 + $0x200] sm:$0xff] }
 0x22f   :  { %7967 = vmatprep.mubr.f32.mxu1 %v1416_v19  ;;  %v2700_v19 = vld [vmem:[#allocation8 + $0x208] sm:$0xff] }
 0x232   :  { %7968 = vmatmul.mubr.f32.gmra.mrb[44].mxu1 %v1417_v22  ;;  %v1828_v22 = vld [vmem:[#allocation2 + $0x84] sm:$0xff] }
 0x233   :  { %7970 = vmatprep.mubr.f32.mxu1 %v1418_v37  ;;  %v10916_v37 = vpack.c.bf16 %v2700_v19, %v2699_v43  ;;  %v2242_v43 = vld [vmem:[#allocation2 + $0x5d] sm:$0xff] }
 0x236   :  { %7971 = vmatmul.mubr.f32.gmra.mrb[46].mxu1 %v1419_v41  ;;  %v1829_v41 = vld [vmem:[#allocation2 + $0x8c] sm:$0xff] }
 0x237   :  { %7973 = vmatprep.mubr.f32.mxu1 %v1420_v38  ;;  %v1830_v38 = vld [vmem:[#allocation2 + $0x94] sm:$0xff] }
 0x23a   :  { %7974 = vmatmul.mubr.f32.gmra.mrb[48].mxu1 %v1421_v53  ;;  %v1831_v53 = vld [vmem:[#allocation2 + $0x9c] sm:$0xff] }
 0x23b   :  { %7976 = vmatprep.mubr.f32.mxu1 %v1422_v50  ;;  %v1832_v50 = vld [vmem:[#allocation2 + $0xac] sm:$0xff] }
 0x23e   :  { %7977 = vmatmul.mubr.f32.gmra.mrb[50].mxu1 %v1423_v3  ;;  %v1833_v3 = vld [vmem:[#allocation2 + $0xb4] sm:$0xff] }
 0x23f   :  { %7979 = vmatprep.mubr.f32.mxu1 %v1424_v62  ;;  %v1834_v62 = vld [vmem:[#allocation2 + $0xbc] sm:$0xff] }
 0x242   :  { %7980 = vmatmul.mubr.f32.gmra.mrb[52].mxu1 %v1425_v20  ;;  %v1835_v20 = vld [vmem:[#allocation2 + $0xc4] sm:$0xff] }
 0x243   :  { %7982 = vmatprep.mubr.f32.mxu1 %v1426_v15  ;;  %v1836_v15 = vld [vmem:[#allocation2 + $0xcc] sm:$0xff] }
 0x246   :  { %7983 = vmatmul.mubr.f32.gmra.mrb[54].mxu1 %v1427_v45  ;;  %v1837_v45 = vld [vmem:[#allocation2 + $0xd4] sm:$0xff] }
 0x247   :  { %7985 = vmatprep.mubr.f32.mxu1 %v1428_v32  ;;  %v1838_v32 = vld [vmem:[#allocation2 + $0xe4] sm:$0xff] }
 0x24a   :  { %7986 = vmatmul.mubr.f32.gmra.mrb[56].mxu1 %v1429_v18  ;;  %v1839_v18 = vld [vmem:[#allocation2 + $0xec] sm:$0xff] }
 0x24b   :  { %7988 = vmatprep.mubr.f32.mxu1 %v1430_v11  ;;  %v1840_v11 = vld [vmem:[#allocation2 + $0xf4] sm:$0xff] }
 0x24e   :  { %7989 = vmatmul.mubr.f32.gmra.mrb[58].mxu1 %v1431_v7  ;;  %v1841_v7 = vld [vmem:[#allocation2 + $0xfc] sm:$0xff] }
 0x24f   :  { %7991 = vmatprep.mubr.f32.mxu1 %v1432_v1  ;;  %v1842_v1 = vld [vmem:[#allocation2 + $0x104] sm:$0xff] }
 0x252   :  { %7992 = vmatmul.mubr.f32.gmra.mrb[60].mxu1 %v1433_v24  ;;  %v1843_v24 = vld [vmem:[#allocation2 + $0x10c] sm:$0xff] }
 0x253   :  { %7994 = vmatprep.mubr.f32.mxu1 %v1434_v57  ;;  %v1844_v57 = vld [vmem:[#allocation2 + $0x11c] sm:$0xff] }
 0x256   :  { %7995 = vmatmul.mubr.f32.gmra.mrb[62].mxu1 %v1435_v8  ;;  %v1845_v8 = vld [vmem:[#allocation2 + $0x124] sm:$0xff] }
 0x257   :  { %7997 = vmatprep.mubr.f32.mxu1 %v1436_v42  ;;  %v1846_v42 = vld [vmem:[#allocation2 + $0x12c] sm:$0xff] }
 0x25a   :  { %7998 = vmatmul.mubr.f32.gmra.mrb[64].mxu1 %v1437_v59  ;;  %v1847_v59 = vld [vmem:[#allocation2 + $0x134] sm:$0xff] }
 0x25b   :  { %8000 = vmatprep.mubr.f32.mxu1 %v1438_v23  ;;  %v1848_v23 = vld [vmem:[#allocation2 + $0x13c] sm:$0xff] }
 0x25e   :  { %8001 = vmatmul.mubr.f32.gmra.mrb[66].mxu1 %v1439_v14  ;;  %v1849_v14 = vld [vmem:[#allocation2 + $0x144] sm:$0xff] }
 0x25f   :  { %8003 = vmatprep.mubr.f32.mxu1 %v1440_v52  ;;  %v1850_v52 = vld [vmem:[#allocation2 + $0x154] sm:$0xff] }
 0x262   :  { %8004 = vmatmul.mubr.f32.gmra.mrb[68].mxu1 %v1441_v58  ;;  %v1851_v58 = vld [vmem:[#allocation2 + $0x15c] sm:$0xff] }
 0x263   :  { %8006 = vmatprep.mubr.f32.mxu1 %v1442_v56  ;;  %v1852_v56 = vld [vmem:[#allocation2 + $0x164] sm:$0xff] }
 0x266   :  { %8007 = vmatmul.mubr.f32.gmra.mrb[70].mxu1 %v1443_v28  ;;  %v1853_v28 = vld [vmem:[#allocation2 + $0x16c] sm:$0xff] }
 0x267   :  { %8041 = vmatprep.mubr.f32.mxu1 %v1814_v5  ;;  %v1856_v5 = vld [vmem:[#allocation2 + $0x18c] sm:$0xff] }
 0x26a   :  { %8042 = vmatmul.mubr.f32.vlgmr.msra.gmra.mrb[24].mxu1 %v1815_v55  ;;  %v1858_v55 = vld [vmem:[#allocation2 + $0x19c] sm:$0xff] }
 0x26b   :  { %9312 = vmatpush3.bf16.msra.mxu1 %v10912_v46  ;;  %8044 = vmatprep.mubr.f32.mxu1 %v1816_v39  ;;  %v2295_v46 = vld [vmem:[#allocation8 + $0x1f0] sm:$0xff]  ;;  %v1861_v39 = vld [vmem:[#allocation2 + $0x1b4] sm:$0xff] }
 0x26c   :  { %9314 = vmatprep.subr.bf16.mxu1 %v9313_v48  ;;  %v9337_v49 = vpack.c.bf16 %v2296_v36, %v2295_v46  ;;  %v2240_v46 = vld [vmem:[#allocation2 + $0x4d] sm:$0xff] }
 0x26e   :  { %8045 = vmatmul.mubr.f32.gmra.mrb[26].mxu1 %v1817_v60  ;;  %v2702_v60 = vld [vmem:[#allocation8 + $0x218] sm:$0xff] }
 0x26f   :  { %8047 = vmatprep.mubr.f32.mxu1 %v1818_v47  ;;  %9316 = vmatpush3.bf16.msra.mxu1 %v9313_v48  ;;  %v1857_v48 = vld [vmem:[#allocation2 + $0x194] sm:$0xff] }
 0x270   :  { %9318 = vmatprep.subr.bf16.mxu1 %v9317_v26  ;;  %v2233_v47 = vld [vmem:[#allocation2 + $0xd] sm:$0xff] }
 0x272   :  { %8048 = vmatmul.mubr.f32.gmra.mrb[28].mxu1 %v1819_v10  ;;  %v2704_v10 = vld [vmem:[#allocation8 + $0x228] sm:$0xff] }
 0x273   :  { %8050 = vmatprep.mubr.f32.mxu1 %v1820_v6  ;;  %9320 = vmatpush3.bf16.msra.mxu1 %v9317_v26  ;;  %v2701_v26 = vld [vmem:[#allocation8 + $0x210] sm:$0xff] }
 0x274   :  { %9322 = vmatprep.subr.bf16.mxu1 %v9321_v29  ;;  %v9345_v17 = vpack.c.bf16 %v2702_v60, %v2701_v26  ;;  %v2235_v6 = vld [vmem:[#allocation2 + $0x1d] sm:$0xff]  ;;  %v2272_v26 = vld [vmem:[#allocation2 + $0x175] sm:$0xff] }
 0x275   :  { %v2273_v60 = vld [vmem:[#allocation2 + $0x17d] sm:$0xff] }
 0x276   :  { %8051 = vmatmul.mubr.f32.gmra.mrb[30].mxu1 %v1821_v27  ;;  %v2706_v27 = vld [vmem:[#allocation8 + $0x238] sm:$0xff] }
 0x277   :  { %8053 = vmatprep.mubr.f32.mxu1 %v1822_v54  ;;  %9324 = vmatpush3.bf16.msra.mxu1 %v9321_v29  ;;  %v2703_v29 = vld [vmem:[#allocation8 + $0x220] sm:$0xff] }
 0x278   :  { %9326 = vmatprep.subr.bf16.mxu1 %v9325_v16  ;;  %v9349_v35 = vpack.c.bf16 %v2704_v10, %v2703_v29  ;;  %v2237_v54 = vld [vmem:[#allocation2 + $0x2d] sm:$0xff]  ;;  %v2277_v29 = vld [vmem:[#allocation2 + $0x1a5] sm:$0xff] }
 0x279   :  { %v2278_v10 = vld [vmem:[#allocation2 + $0x1ad] sm:$0xff] }
 0x27a   :  { %8054 = vmatmul.mubr.f32.gmra.mrb[32].mxu1 %v1823_v2  ;;  %v2708_v2 = vld [vmem:[#allocation8 + $0x248] sm:$0xff] }
 0x27b   :  { %8056 = vmatprep.mubr.f32.mxu1 %v1824_v25  ;;  %9328 = vmatpush3.bf16.msra.mxu1 %v9325_v16  ;;  %v2705_v16 = vld [vmem:[#allocation8 + $0x230] sm:$0xff] }
 0x27c   :  { %9330 = vmatprep.subr.bf16.mxu1 %v9329_v63  ;;  %v9353_v13 = vpack.c.bf16 %v2706_v27, %v2705_v16  ;;  %v2239_v25 = vld [vmem:[#allocation2 + $0x45] sm:$0xff] }
 0x27d   :  { %v2650_v16 = vld [vmem:[#allocation2 + $0x6] sm:$0xff] }
 0x27e   :  { %8057 = vmatmul.mubr.f32.gmra.mrb[34].mxu1 %v1825_v31  ;;  %v2710_v31 = vld [vmem:[#allocation8 + $0x258] sm:$0xff] }
 0x27f   :  { %8059 = vmatprep.mubr.f32.mxu1 %v1826_v9  ;;  %9332 = vmatpush3.bf16.msra.mxu1 %v9329_v63  ;;  %v2707_v63 = vld [vmem:[#allocation8 + $0x240] sm:$0xff] }
 0x280   :  { %9334 = vmatprep.subr.bf16.mxu1 %v9333_v44  ;;  %v9357_v34 = vpack.c.bf16 %v2708_v2, %v2707_v63  ;;  %v2241_v9 = vld [vmem:[#allocation2 + $0x55] sm:$0xff] }
 0x281   :  { %v2652_v63 = vld [vmem:[#allocation2 + $0x16] sm:$0xff] }
 0x282   :  { %8060 = vmatmul.mubr.f32.gmra.mrb[36].mxu1 %v1827_v61  ;;  %v2712_v61 = vld [vmem:[#allocation8 + $0x268] sm:$0xff] }
 0x283   :  { %8062 = vmatprep.mubr.f32.mxu1 %v1828_v22  ;;  %9336 = vmatpush3.bf16.msra.mxu1 %v9333_v44  ;;  %v2709_v44 = vld [vmem:[#allocation8 + $0x250] sm:$0xff] }
 0x284   :  { %9338 = vmatprep.subr.bf16.mxu1 %v9337_v49  ;;  %v9361_v36 = vpack.c.bf16 %v2710_v31, %v2709_v44  ;;  %v2243_v22 = vld [vmem:[#allocation2 + $0x65] sm:$0xff] }
 0x285   :  { %v2654_v44 = vld [vmem:[#allocation2 + $0x26] sm:$0xff] }
 0x286   :  { %8063 = vmatmul.mubr.f32.gmra.mrb[38].mxu1 %v1829_v41  ;;  %v2714_v41 = vld [vmem:[#allocation8 + $0x278] sm:$0xff] }
 0x287   :  { %8065 = vmatprep.mubr.f32.mxu1 %v1830_v38  ;;  %9340 = vmatpush3.bf16.msra.mxu1 %v9337_v49  ;;  %v2711_v49 = vld [vmem:[#allocation8 + $0x260] sm:$0xff] }
 0x288   :  { %9342 = vmatprep.subr.bf16.mxu1 %v10916_v37  ;;  %v9365_v19 = vpack.c.bf16 %v2712_v61, %v2711_v49  ;;  %v2244_v38 = vld [vmem:[#allocation2 + $0x75] sm:$0xff]  ;;  %v2656_v49 = vld [vmem:[#allocation2 + $0x3e] sm:$0xff] }
 0x28a   :  { %8066 = vmatmul.mubr.f32.gmra.mrb[40].mxu1 %v1831_v53 }
 0x28b   :  { %8068 = vmatprep.mubr.f32.mxu1 %v1832_v50  ;;  %v2245_v50 = vld [vmem:[#allocation2 + $0x7d] sm:$0xff] }
 0x28e   :  { %8069 = vmatmul.mubr.f32.gmra.mrb[42].mxu1 %v1833_v3  ;;  %v3117_v3 = vld [vmem:[#allocation8 + $0x280] sm:$0xff] }
 0x28f   :  { %8071 = vmatprep.mubr.f32.mxu1 %v1834_v62  ;;  %v3118_v62 = vld [vmem:[#allocation8 + $0x288] sm:$0xff] }
 0x292   :  { %8072 = vmatmul.mubr.f32.gmra.mrb[44].mxu1 %v1835_v20  ;;  %v2246_v20 = vld [vmem:[#allocation2 + $0x85] sm:$0xff] }
 0x293   :  { %8074 = vmatprep.mubr.f32.mxu1 %v1836_v15  ;;  %v10920_v15 = vpack.c.bf16 %v3118_v62, %v3117_v3  ;;  %v2660_v3 = vld [vmem:[#allocation2 + $0x5e] sm:$0xff] }
 0x296   :  { %8075 = vmatmul.mubr.f32.gmra.mrb[46].mxu1 %v1837_v45  ;;  %v2247_v45 = vld [vmem:[#allocation2 + $0x8d] sm:$0xff] }
 0x297   :  { %8077 = vmatprep.mubr.f32.mxu1 %v1838_v32  ;;  %v2248_v32 = vld [vmem:[#allocation2 + $0x95] sm:$0xff] }
 0x29a   :  { %8078 = vmatmul.mubr.f32.gmra.mrb[48].mxu1 %v1839_v18  ;;  %v2249_v18 = vld [vmem:[#allocation2 + $0x9d] sm:$0xff] }
 0x29b   :  { %8080 = vmatprep.mubr.f32.mxu1 %v1840_v11  ;;  %v2250_v11 = vld [vmem:[#allocation2 + $0xad] sm:$0xff] }
 0x29e   :  { %8081 = vmatmul.mubr.f32.gmra.mrb[50].mxu1 %v1841_v7  ;;  %v2251_v7 = vld [vmem:[#allocation2 + $0xb5] sm:$0xff] }
 0x29f   :  { %8083 = vmatprep.mubr.f32.mxu1 %v1842_v1  ;;  %v2252_v1 = vld [vmem:[#allocation2 + $0xbd] sm:$0xff] }
 0x2a2   :  { %8084 = vmatmul.mubr.f32.gmra.mrb[52].mxu1 %v1843_v24  ;;  %v2253_v24 = vld [vmem:[#allocation2 + $0xc5] sm:$0xff] }
 0x2a3   :  { %8086 = vmatprep.mubr.f32.mxu1 %v1844_v57  ;;  %v2254_v57 = vld [vmem:[#allocation2 + $0xcd] sm:$0xff] }
 0x2a6   :  { %8087 = vmatmul.mubr.f32.gmra.mrb[54].mxu1 %v1845_v8  ;;  %v2255_v8 = vld [vmem:[#allocation2 + $0xd5] sm:$0xff] }
 0x2a7   :  { %8089 = vmatprep.mubr.f32.mxu1 %v1846_v42  ;;  %v2256_v42 = vld [vmem:[#allocation2 + $0xe5] sm:$0xff] }
 0x2aa   :  { %8090 = vmatmul.mubr.f32.gmra.mrb[56].mxu1 %v1847_v59  ;;  %v2257_v59 = vld [vmem:[#allocation2 + $0xed] sm:$0xff] }
 0x2ab   :  { %8092 = vmatprep.mubr.f32.mxu1 %v1848_v23  ;;  %v2258_v23 = vld [vmem:[#allocation2 + $0xf5] sm:$0xff] }
 0x2ae   :  { %8093 = vmatmul.mubr.f32.gmra.mrb[58].mxu1 %v1849_v14  ;;  %v2259_v14 = vld [vmem:[#allocation2 + $0xfd] sm:$0xff] }
 0x2af   :  { %8095 = vmatprep.mubr.f32.mxu1 %v1850_v52  ;;  %v2260_v52 = vld [vmem:[#allocation2 + $0x105] sm:$0xff] }
 0x2b2   :  { %8096 = vmatmul.mubr.f32.gmra.mrb[60].mxu1 %v1851_v58  ;;  %v2261_v58 = vld [vmem:[#allocation2 + $0x10d] sm:$0xff] }
 0x2b3   :  { %8098 = vmatprep.mubr.f32.mxu1 %v1852_v56  ;;  %v2262_v56 = vld [vmem:[#allocation2 + $0x11d] sm:$0xff] }
 0x2b6   :  { %8099 = vmatmul.mubr.f32.gmra.mrb[62].mxu1 %v1853_v28  ;;  %v2263_v28 = vld [vmem:[#allocation2 + $0x125] sm:$0xff] }
 0x2b7   :  { %8101 = vmatprep.mubr.f32.mxu1 %v1854_v30  ;;  %v2264_v30 = vld [vmem:[#allocation2 + $0x12d] sm:$0xff] }
 0x2ba   :  { %8102 = vmatmul.mubr.f32.gmra.mrb[64].mxu1 %v1855_v4  ;;  %v2265_v4 = vld [vmem:[#allocation2 + $0x135] sm:$0xff] }
 0x2bb   :  { %8104 = vmatprep.mubr.f32.mxu1 %v1856_v5  ;;  %v2266_v5 = vld [vmem:[#allocation2 + $0x13d] sm:$0xff] }
 0x2be   :  { %8105 = vmatmul.mubr.f32.gmra.mrb[66].mxu1 %v1857_v48  ;;  %v2267_v48 = vld [vmem:[#allocation2 + $0x145] sm:$0xff] }
 0x2bf   :  { %8107 = vmatprep.mubr.f32.mxu1 %v1858_v55  ;;  %v2268_v55 = vld [vmem:[#allocation2 + $0x155] sm:$0xff] }
 0x2c2   :  { %8108 = vmatmul.mubr.f32.gmra.mrb[68].mxu1 %v1859_v51  ;;  %v2269_v51 = vld [vmem:[#allocation2 + $0x15d] sm:$0xff] }
 0x2c3   :  { %8110 = vmatprep.mubr.f32.mxu1 %v1860_v0  ;;  %v2270_v0 = vld [vmem:[#allocation2 + $0x165] sm:$0xff] }
 0x2c6   :  { %8111 = vmatmul.mubr.f32.gmra.mrb[70].mxu1 %v1861_v39  ;;  %v2271_v39 = vld [vmem:[#allocation2 + $0x16d] sm:$0xff] }
 0x2c7   :  { %8145 = vmatprep.mubr.f32.mxu1 %v2232_v12  ;;  %v2274_v12 = vld [vmem:[#allocation2 + $0x18d] sm:$0xff] }
 0x2ca   :  { %8146 = vmatmul.mubr.f32.vlgmr.msra.gmra.mrb[24].mxu1 %v2233_v47  ;;  %v2276_v47 = vld [vmem:[#allocation2 + $0x19d] sm:$0xff] }
 0x2cb   :  { %9344 = vmatpush3.bf16.msra.mxu1 %v10916_v37  ;;  %8148 = vmatprep.mubr.f32.mxu1 %v2234_v21  ;;  %v2713_v37 = vld [vmem:[#allocation8 + $0x270] sm:$0xff]  ;;  %v2279_v21 = vld [vmem:[#allocation2 + $0x1b5] sm:$0xff] }
 0x2cc   :  { %9346 = vmatprep.subr.bf16.mxu1 %v9345_v17  ;;  %v9369_v53 = vpack.c.bf16 %v2714_v41, %v2713_v37  ;;  %v2658_v37 = vld [vmem:[#allocation2 + $0x4e] sm:$0xff] }
 0x2ce   :  { %8149 = vmatmul.mubr.f32.gmra.mrb[26].mxu1 %v2235_v6  ;;  %v3120_v6 = vld [vmem:[#allocation8 + $0x298] sm:$0xff] }
 0x2cf   :  { %8151 = vmatprep.mubr.f32.mxu1 %v2236_v33  ;;  %9348 = vmatpush3.bf16.msra.mxu1 %v9345_v17  ;;  %v2275_v17 = vld [vmem:[#allocation2 + $0x195] sm:$0xff] }
 0x2d0   :  { %9350 = vmatprep.subr.bf16.mxu1 %v9349_v35  ;;  %v2651_v33 = vld [vmem:[#allocation2 + $0xe] sm:$0xff] }
 0x2d2   :  { %8152 = vmatmul.mubr.f32.gmra.mrb[28].mxu1 %v2237_v54  ;;  %v3122_v54 = vld [vmem:[#allocation8 + $0x2a8] sm:$0xff] }
 0x2d3   :  { %8154 = vmatprep.mubr.f32.mxu1 %v2238_v40  ;;  %9352 = vmatpush3.bf16.msra.mxu1 %v9349_v35  ;;  %v3119_v35 = vld [vmem:[#allocation8 + $0x290] sm:$0xff] }
 0x2d4   :  { %9354 = vmatprep.subr.bf16.mxu1 %v9353_v13  ;;  %v9377_v27 = vpack.c.bf16 %v3120_v6, %v3119_v35  ;;  %v2653_v40 = vld [vmem:[#allocation2 + $0x1e] sm:$0xff] }
 0x2d5   :  { %v3708_v6 = vld [vmem:[#allocation9 + $0x30] sm:$0xff] }
 0x2d6   :  { %8155 = vmatmul.mubr.f32.gmra.mrb[30].mxu1 %v2239_v25  ;;  %v3124_v25 = vld [vmem:[#allocation8 + $0x2b8] sm:$0xff] }
 0x2d7   :  { %8157 = vmatprep.mubr.f32.mxu1 %v2240_v46  ;;  %9356 = vmatpush3.bf16.msra.mxu1 %v9353_v13  ;;  %v3121_v13 = vld [vmem:[#allocation8 + $0x2a0] sm:$0xff] }
 0x2d8   :  { %9358 = vmatprep.subr.bf16.mxu1 %v9357_v34  ;;  %v9381_v2 = vpack.c.bf16 %v3122_v54, %v3121_v13  ;;  %v2655_v46 = vld [vmem:[#allocation2 + $0x2e] sm:$0xff] }
 0x2d9   :  { %v3710_v54 = vld [vmem:[#allocation9 + $0x40] sm:$0xff] }
 0x2da   :  { %8158 = vmatmul.mubr.f32.gmra.mrb[32].mxu1 %v2241_v9  ;;  %v3126_v9 = vld [vmem:[#allocation8 + $0x2c8] sm:$0xff] }
 0x2db   :  { %8160 = vmatprep.mubr.f32.mxu1 %v2242_v43  ;;  %9360 = vmatpush3.bf16.msra.mxu1 %v9357_v34  ;;  %v3123_v34 = vld [vmem:[#allocation8 + $0x2b0] sm:$0xff] }
 0x2dc   :  { %9362 = vmatprep.subr.bf16.mxu1 %v9361_v36  ;;  %v9385_v31 = vpack.c.bf16 %v3124_v25, %v3123_v34  ;;  %v2657_v43 = vld [vmem:[#allocation2 + $0x46] sm:$0xff] }
 0x2dd   :  { %v3712_v25 = vld [vmem:[#allocation9 + $0x50] sm:$0xff] }
 0x2de   :  { %8161 = vmatmul.mubr.f32.gmra.mrb[34].mxu1 %v2243_v22  ;;  %v3128_v22 = vld [vmem:[#allocation8 + $0x2d8] sm:$0xff] }
 0x2df   :  { %8163 = vmatprep.mubr.f32.mxu1 %v2244_v38  ;;  %9364 = vmatpush3.bf16.msra.mxu1 %v9361_v36  ;;  %v3125_v36 = vld [vmem:[#allocation8 + $0x2c0] sm:$0xff] }
 0x2e0   :  { %9366 = vmatprep.subr.bf16.mxu1 %v9365_v19  ;;  %v9389_v61 = vpack.c.bf16 %v3126_v9, %v3125_v36  ;;  %v2659_v38 = vld [vmem:[#allocation2 + $0x56] sm:$0xff]  ;;  %v2691_v9 = vld [vmem:[#allocation2 + $0x17e] sm:$0xff] }
 0x2e2   :  { %8164 = vmatmul.mubr.f32.gmra.mrb[36].mxu1 %v2245_v50  ;;  %v3130_v50 = vld [vmem:[#allocation8 + $0x2e8] sm:$0xff] }
 0x2e3   :  { %8166 = vmatprep.mubr.f32.mxu1 %v2246_v20  ;;  %9368 = vmatpush3.bf16.msra.mxu1 %v9365_v19  ;;  %v3127_v19 = vld [vmem:[#allocation8 + $0x2d0] sm:$0xff] }
 0x2e4   :  { %9370 = vmatprep.subr.bf16.mxu1 %v9369_v53  ;;  %v9393_v41 = vpack.c.bf16 %v3128_v22, %v3127_v19  ;;  %v2661_v20 = vld [vmem:[#allocation2 + $0x66] sm:$0xff]  ;;  %v2696_v22 = vld [vmem:[#allocation2 + $0x1ae] sm:$0xff] }
 0x2e5   :  { %v2695_v19 = vld [vmem:[#allocation2 + $0x1a6] sm:$0xff] }
 0x2e6   :  { %8167 = vmatmul.mubr.f32.gmra.mrb[38].mxu1 %v2247_v45  ;;  %v3132_v45 = vld [vmem:[#allocation8 + $0x2f8] sm:$0xff] }
 0x2e7   :  { %8169 = vmatprep.mubr.f32.mxu1 %v2248_v32  ;;  %9372 = vmatpush3.bf16.msra.mxu1 %v9369_v53  ;;  %v3129_v53 = vld [vmem:[#allocation8 + $0x2e0] sm:$0xff] }
 0x2e8   :  { %9374 = vmatprep.subr.bf16.mxu1 %v10920_v15  ;;  %v9397_v62 = vpack.c.bf16 %v3130_v50, %v3129_v53  ;;  %v2662_v32 = vld [vmem:[#allocation2 + $0x76] sm:$0xff]  ;;  %v3071_v50 = vld [vmem:[#allocation2 + $0x1f] sm:$0xff] }
 0x2e9   :  { %v3070_v53 = vld [vmem:[#allocation2 + $0x17] sm:$0xff] }
 0x2ea   :  { %8170 = vmatmul.mubr.f32.gmra.mrb[40].mxu1 %v2249_v18 }
 0x2eb   :  { %8172 = vmatprep.mubr.f32.mxu1 %v2250_v11  ;;  %v2663_v11 = vld [vmem:[#allocation2 + $0x7e] sm:$0xff] }
 0x2ee   :  { %8173 = vmatmul.mubr.f32.gmra.mrb[42].mxu1 %v2251_v7  ;;  %v2664_v7 = vld [vmem:[#allocation2 + $0x86] sm:$0xff] }
 0x2ef   :  { %8175 = vmatprep.mubr.f32.mxu1 %v2252_v1  ;;  %v2665_v1 = vld [vmem:[#allocation2 + $0x8e] sm:$0xff] }
 0x2f2   :  { %8176 = vmatmul.mubr.f32.gmra.mrb[44].mxu1 %v2253_v24  ;;  %v2666_v24 = vld [vmem:[#allocation2 + $0x96] sm:$0xff] }
 0x2f3   :  { %8178 = vmatprep.mubr.f32.mxu1 %v2254_v57  ;;  %v2667_v57 = vld [vmem:[#allocation2 + $0x9e] sm:$0xff] }
 0x2f6   :  { %8179 = vmatmul.mubr.f32.gmra.mrb[46].mxu1 %v2255_v8  ;;  %v2668_v8 = vld [vmem:[#allocation2 + $0xae] sm:$0xff] }
 0x2f7   :  { %8181 = vmatprep.mubr.f32.mxu1 %v2256_v42  ;;  %v2669_v42 = vld [vmem:[#allocation2 + $0xb6] sm:$0xff] }
 0x2fa   :  { %8182 = vmatmul.mubr.f32.gmra.mrb[48].mxu1 %v2257_v59  ;;  %v2670_v59 = vld [vmem:[#allocation2 + $0xbe] sm:$0xff] }
 0x2fb   :  { %8184 = vmatprep.mubr.f32.mxu1 %v2258_v23  ;;  %v2671_v23 = vld [vmem:[#allocation2 + $0xc6] sm:$0xff] }
 0x2fe   :  { %8185 = vmatmul.mubr.f32.gmra.mrb[50].mxu1 %v2259_v14  ;;  %v2672_v14 = vld [vmem:[#allocation2 + $0xce] sm:$0xff] }
 0x2ff   :  { %8187 = vmatprep.mubr.f32.mxu1 %v2260_v52  ;;  %v2673_v52 = vld [vmem:[#allocation2 + $0xd6] sm:$0xff] }
 0x302   :  { %8188 = vmatmul.mubr.f32.gmra.mrb[52].mxu1 %v2261_v58  ;;  %v2674_v58 = vld [vmem:[#allocation2 + $0xe6] sm:$0xff] }
 0x303   :  { %8190 = vmatprep.mubr.f32.mxu1 %v2262_v56  ;;  %v2675_v56 = vld [vmem:[#allocation2 + $0xee] sm:$0xff] }
 0x306   :  { %8191 = vmatmul.mubr.f32.gmra.mrb[54].mxu1 %v2263_v28  ;;  %v2676_v28 = vld [vmem:[#allocation2 + $0xf6] sm:$0xff] }
 0x307   :  { %8193 = vmatprep.mubr.f32.mxu1 %v2264_v30  ;;  %v2677_v30 = vld [vmem:[#allocation2 + $0xfe] sm:$0xff] }
 0x30a   :  { %8194 = vmatmul.mubr.f32.gmra.mrb[56].mxu1 %v2265_v4  ;;  %v2678_v4 = vld [vmem:[#allocation2 + $0x106] sm:$0xff] }
 0x30b   :  { %8196 = vmatprep.mubr.f32.mxu1 %v2266_v5  ;;  %v2679_v5 = vld [vmem:[#allocation2 + $0x10e] sm:$0xff] }
 0x30e   :  { %8197 = vmatmul.mubr.f32.gmra.mrb[58].mxu1 %v2267_v48  ;;  %v2680_v48 = vld [vmem:[#allocation2 + $0x11e] sm:$0xff] }
 0x30f   :  { %8199 = vmatprep.mubr.f32.mxu1 %v2268_v55  ;;  %v2681_v55 = vld [vmem:[#allocation2 + $0x126] sm:$0xff] }
 0x312   :  { %8200 = vmatmul.mubr.f32.gmra.mrb[60].mxu1 %v2269_v51  ;;  %v2682_v51 = vld [vmem:[#allocation2 + $0x12e] sm:$0xff] }
 0x313   :  { %8202 = vmatprep.mubr.f32.mxu1 %v2270_v0  ;;  %v3702_v0 = vld [vmem:[#allocation9] sm:$0xff] }
 0x316   :  { %8203 = vmatmul.mubr.f32.gmra.mrb[62].mxu1 %v2271_v39  ;;  %v3703_v39 = vld [vmem:[#allocation9 + $0x8] sm:$0xff] }
 0x317   :  { %8205 = vmatprep.mubr.f32.mxu1 %v2272_v26  ;;  %v3704_v26 = vld [vmem:[#allocation9 + $0x10] sm:$0xff] }
 0x31a   :  { %8206 = vmatmul.mubr.f32.gmra.mrb[64].mxu1 %v2273_v60  ;;  %v9405_v60 = vpack.c.bf16 %v3703_v39, %v3702_v0  ;;  %v3099_v0 = vld [vmem:[#allocation2 + $0x127] sm:$0xff]  ;;  %v3100_v39 = vld [vmem:[#allocation2 + $0x12f] sm:$0xff] }
 0x31b   :  { %8208 = vmatprep.mubr.f32.mxu1 %v2274_v12  ;;  %v3705_v12 = vld [vmem:[#allocation9 + $0x18] sm:$0xff] }
 0x31c   :  { %9406 = vmatprep.subr.bf16.mxu0 %v9405_v60 }
 0x31d   :  { %9408 = vmatpush3.bf16.msra.mxu0 %v9405_v60  ;;  %v3102_v60 = vld [vmem:[#allocation2 + $0x13f] sm:$0xff] }
 0x31e   :  { %8209 = vmatmul.mubr.f32.gmra.mrb[66].mxu1 %v2275_v17  ;;  %v9409_v17 = vpack.c.bf16 %v3705_v12, %v3704_v26  ;;  %v3101_v26 = vld [vmem:[#allocation2 + $0x137] sm:$0xff]  ;;  %v3103_v12 = vld [vmem:[#allocation2 + $0x147] sm:$0xff] }
 0x31f   :  { %8211 = vmatprep.mubr.f32.mxu1 %v2276_v47  ;;  %v3706_v47 = vld [vmem:[#allocation9 + $0x20] sm:$0xff] }
 0x320   :  { %9410 = vmatprep.subr.bf16.mxu0 %v9409_v17 }
 0x321   :  { %9412 = vmatpush3.bf16.msra.mxu0 %v9409_v17  ;;  %v3104_v17 = vld [vmem:[#allocation2 + $0x157] sm:$0xff] }
 0x322   :  { %8212 = vmatmul.mubr.f32.gmra.mrb[68].mxu1 %v2277_v29  ;;  %v3707_v29 = vld [vmem:[#allocation9 + $0x28] sm:$0xff] }
 0x323   :  { %8214 = vmatprep.mubr.f32.mxu1 %v2278_v10  ;;  %v2683_v10 = vld [vmem:[#allocation2 + $0x136] sm:$0xff]  ;;  %v9413_v35 = vpack.c.bf16 %v3707_v29, %v3706_v47  ;;  %v3105_v47 = vld [vmem:[#allocation2 + $0x15f] sm:$0xff]  ;;  %v3106_v29 = vld [vmem:[#allocation2 + $0x167] sm:$0xff] }
 0x325   :  { %9414 = vmatprep.subr.bf16.mxu0 %v9413_v35 }
 0x326   :  { %8215 = vmatmul.mubr.f32.gmra.mrb[70].mxu1 %v2279_v21  ;;  %v2684_v21 = vld [vmem:[#allocation2 + $0x13e] sm:$0xff]  ;;  %9416 = vmatpush3.bf16.msra.mxu0 %v9413_v35 }
 0x327   :  { %8249 = vmatprep.mubr.f32.mxu1 %v2650_v16  ;;  %v3709_v16 = vld [vmem:[#allocation9 + $0x38] sm:$0xff]  ;;  %v3109_v35 = vld [vmem:[#allocation2 + $0x17f] sm:$0xff] }
 0x328   :  { %v9417_v13 = vpack.c.bf16 %v3709_v16, %v3708_v6  ;;  %v3110_v6 = vld [vmem:[#allocation2 + $0x18f] sm:$0xff]  ;;  %v3111_v16 = vld [vmem:[#allocation2 + $0x197] sm:$0xff] }
 0x32a   :  { %8250 = vmatmul.mubr.f32.vlgmr.msra.gmra.mrb[24].mxu1 %v2651_v33  ;;  %v2686_v33 = vld [vmem:[#allocation2 + $0x156] sm:$0xff]  ;;  %9418 = vmatprep.subr.bf16.mxu0 %v9417_v13 }
 0x32b   :  { %9376 = vmatpush3.bf16.msra.mxu1 %v10920_v15  ;;  %8252 = vmatprep.mubr.f32.mxu1 %v2652_v63  ;;  %v3131_v15 = vld [vmem:[#allocation8 + $0x2f0] sm:$0xff]  ;;  %v3711_v63 = vld [vmem:[#allocation9 + $0x48] sm:$0xff] }
 0x32c   :  { %9378 = vmatprep.subr.bf16.mxu1 %v9377_v27  ;;  %v9401_v18 = vpack.c.bf16 %v3132_v45, %v3131_v15  ;;  %v9421_v34 = vpack.c.bf16 %v3711_v63, %v3710_v54  ;;  %9420 = vmatpush3.bf16.msra.mxu0 %v9417_v13  ;;  %v3075_v15 = vld [vmem:[#allocation2 + $0x47] sm:$0xff]  ;;  %v3076_v45 = vld [vmem:[#allocation2 + $0x4f] sm:$0xff]  ;;  %v3715_v63 = vld [vmem:[#allocation9 + $0x68] sm:$0xff] }
 0x32d   :  { %v3114_v13 = vld [vmem:[#allocation2 + $0x1af] sm:$0xff] }
 0x32e   :  { %8253 = vmatmul.mubr.f32.gmra.mrb[26].mxu1 %v2653_v40  ;;  %v2688_v40 = vld [vmem:[#allocation2 + $0x166] sm:$0xff]  ;;  %9422 = vmatprep.subr.bf16.mxu0 %v9421_v34  ;;  %v3714_v54 = vld [vmem:[#allocation9 + $0x60] sm:$0xff] }
 0x32f   :  { %8255 = vmatprep.mubr.f32.mxu1 %v2654_v44  ;;  %9380 = vmatpush3.bf16.msra.mxu1 %v9377_v27  ;;  %v2685_v27 = vld [vmem:[#allocation2 + $0x146] sm:$0xff] }
 0x330   :  { %9382 = vmatprep.subr.bf16.mxu1 %v9381_v2  ;;  %v3713_v44 = vld [vmem:[#allocation9 + $0x58] sm:$0xff]  ;;  %9424 = vmatpush3.bf16.msra.mxu0 %v9421_v34  ;;  %v3716_v34 = vld [vmem:[#allocation9 + $0x70] sm:$0xff] }
 0x331   :  { %v9425_v36 = vpack.c.bf16 %v3713_v44, %v3712_v25  ;;  %v3717_v25 = vld [vmem:[#allocation9 + $0x78] sm:$0xff] }
 0x332   :  { %8256 = vmatmul.mubr.f32.gmra.mrb[28].mxu1 %v2655_v46  ;;  %v2690_v46 = vld [vmem:[#allocation2 + $0x176] sm:$0xff]  ;;  %v9433_v44 = vpack.c.bf16 %v3717_v25, %v3716_v34 }
 0x333   :  { %8258 = vmatprep.mubr.f32.mxu1 %v2656_v49  ;;  %9384 = vmatpush3.bf16.msra.mxu1 %v9381_v2  ;;  %v2687_v2 = vld [vmem:[#allocation2 + $0x15e] sm:$0xff]  ;;  %v2692_v49 = vld [vmem:[#allocation2 + $0x18e] sm:$0xff] }
 0x334   :  { %9386 = vmatprep.subr.bf16.mxu1 %v9385_v31  ;;  %9426 = vmatprep.subr.bf16.mxu0 %v9425_v36 }
 0x335   :  { %9428 = vmatpush3.bf16.msra.mxu0 %v9425_v36 }
 0x336   :  { %8259 = vmatmul.mubr.f32.gmra.mrb[30].mxu1 %v2657_v43  ;;  %v2694_v43 = vld [vmem:[#allocation2 + $0x19e] sm:$0xff] }
 0x337   :  { %8261 = vmatprep.mubr.f32.mxu1 %v2658_v37  ;;  %9388 = vmatpush3.bf16.msra.mxu1 %v9385_v31  ;;  %v2689_v31 = vld [vmem:[#allocation2 + $0x16e] sm:$0xff]  ;;  %v2697_v37 = vld [vmem:[#allocation2 + $0x1b6] sm:$0xff] }
 0x338   :  { %9390 = vmatprep.subr.bf16.mxu1 %v9389_v61 }
 0x33a   :  { %8262 = vmatmul.mubr.f32.gmra.mrb[32].mxu1 %v2659_v38  ;;  %v3069_v38 = vld [vmem:[#allocation2 + $0xf] sm:$0xff] }
 0x33b   :  { %8264 = vmatprep.mubr.f32.mxu1 %v2660_v3  ;;  %9392 = vmatpush3.bf16.msra.mxu1 %v9389_v61  ;;  %v2693_v61 = vld [vmem:[#allocation2 + $0x196] sm:$0xff]  ;;  %v3072_v3 = vld [vmem:[#allocation2 + $0x27] sm:$0xff] }
 0x33c   :  { %9394 = vmatprep.subr.bf16.mxu1 %v9393_v41 }
 0x33e   :  { %8265 = vmatmul.mubr.f32.gmra.mrb[34].mxu1 %v2661_v20  ;;  %v3074_v20 = vld [vmem:[#allocation2 + $0x3f] sm:$0xff] }
 0x33f   :  { %8267 = vmatprep.mubr.f32.mxu1 %v2662_v32  ;;  %9396 = vmatpush3.bf16.msra.mxu1 %v9393_v41  ;;  %v3068_v41 = vld [vmem:[#allocation2 + $0x7] sm:$0xff]  ;;  %v3077_v32 = vld [vmem:[#allocation2 + $0x57] sm:$0xff] }
 0x340   :  { %9398 = vmatprep.subr.bf16.mxu1 %v9397_v62 }
 0x342   :  { %8268 = vmatmul.mubr.f32.gmra.mrb[36].mxu1 %v2663_v11  ;;  %v3079_v11 = vld [vmem:[#allocation2 + $0x67] sm:$0xff] }
 0x343   :  { %8270 = vmatprep.mubr.f32.mxu1 %v2664_v7  ;;  %9400 = vmatpush3.bf16.msra.mxu1 %v9397_v62  ;;  %v3073_v62 = vld [vmem:[#allocation2 + $0x2f] sm:$0xff]  ;;  %v3080_v7 = vld [vmem:[#allocation2 + $0x77] sm:$0xff] }
 0x344   :  { %9402 = vmatprep.subr.bf16.mxu1 %v9401_v18 }
 0x346   :  { %8271 = vmatmul.mubr.f32.gmra.mrb[38].mxu1 %v2665_v1  ;;  %v3081_v1 = vld [vmem:[#allocation2 + $0x7f] sm:$0xff] }
 0x347   :  { %8273 = vmatprep.mubr.f32.mxu1 %v2666_v24  ;;  %9404 = vmatpush3.bf16.msra.mxu1 %v9401_v18  ;;  %v3078_v18 = vld [vmem:[#allocation2 + $0x5f] sm:$0xff]  ;;  %v3082_v24 = vld [vmem:[#allocation2 + $0x87] sm:$0xff] }
 0x34a   :  { %8274 = vmatmul.mubr.f32.gmra.mrb[40].mxu1 %v2667_v57  ;;  %v3083_v57 = vld [vmem:[#allocation2 + $0x8f] sm:$0xff] }
 0x34b   :  { %8276 = vmatprep.mubr.f32.mxu1 %v2668_v8  ;;  %v3084_v8 = vld [vmem:[#allocation2 + $0x97] sm:$0xff] }
 0x34e   :  { %8277 = vmatmul.mubr.f32.gmra.mrb[42].mxu1 %v2669_v42  ;;  %v3085_v42 = vld [vmem:[#allocation2 + $0x9f] sm:$0xff] }
 0x34f   :  { %8279 = vmatprep.mubr.f32.mxu1 %v2670_v59  ;;  %v3086_v59 = vld [vmem:[#allocation2 + $0xaf] sm:$0xff] }
 0x352   :  { %8280 = vmatmul.mubr.f32.gmra.mrb[44].mxu1 %v2671_v23  ;;  %v3087_v23 = vld [vmem:[#allocation2 + $0xb7] sm:$0xff] }
 0x353   :  { %8282 = vmatprep.mubr.f32.mxu1 %v2672_v14  ;;  %v3088_v14 = vld [vmem:[#allocation2 + $0xbf] sm:$0xff] }
 0x356   :  { %8283 = vmatmul.mubr.f32.gmra.mrb[46].mxu1 %v2673_v52  ;;  %v3089_v52 = vld [vmem:[#allocation2 + $0xc7] sm:$0xff] }
 0x357   :  { %8285 = vmatprep.mubr.f32.mxu1 %v2674_v58  ;;  %v3090_v58 = vld [vmem:[#allocation2 + $0xcf] sm:$0xff] }
 0x35a   :  { %8286 = vmatmul.mubr.f32.gmra.mrb[48].mxu1 %v2675_v56  ;;  %v3091_v56 = vld [vmem:[#allocation2 + $0xd7] sm:$0xff] }
 0x35b   :  { %8288 = vmatprep.mubr.f32.mxu1 %v2676_v28  ;;  %v3092_v28 = vld [vmem:[#allocation2 + $0xe7] sm:$0xff] }
 0x35e   :  { %8289 = vmatmul.mubr.f32.gmra.mrb[50].mxu1 %v2677_v30  ;;  %v3093_v30 = vld [vmem:[#allocation2 + $0xef] sm:$0xff] }
 0x35f   :  { %8291 = vmatprep.mubr.f32.mxu1 %v2678_v4  ;;  %v3094_v4 = vld [vmem:[#allocation2 + $0xf7] sm:$0xff] }
 0x362   :  { %8292 = vmatmul.mubr.f32.gmra.mrb[52].mxu1 %v2679_v5  ;;  %v3095_v5 = vld [vmem:[#allocation2 + $0xff] sm:$0xff] }
 0x363   :  { %8294 = vmatprep.mubr.f32.mxu1 %v2680_v48  ;;  %v3096_v48 = vld [vmem:[#allocation2 + $0x107] sm:$0xff] }
 0x366   :  { %8295 = vmatmul.mubr.f32.gmra.mrb[54].mxu1 %v2681_v55  ;;  %v3097_v55 = vld [vmem:[#allocation2 + $0x10f] sm:$0xff] }
 0x367   :  { %8297 = vmatprep.mubr.f32.mxu1 %v2682_v51  ;;  %v3098_v51 = vld [vmem:[#allocation2 + $0x11f] sm:$0xff] }
 0x36a   :  { %8298 = vmatmul.mubr.f32.gmra.mrb[56].mxu1 %v2683_v10  ;;  %v3107_v10 = vld [vmem:[#allocation2 + $0x16f] sm:$0xff] }
 0x36b   :  { %8300 = vmatprep.mubr.f32.mxu1 %v2684_v21  ;;  %v3108_v21 = vld [vmem:[#allocation2 + $0x177] sm:$0xff] }
 0x36e   :  { %8301 = vmatmul.mubr.f32.gmra.mrb[58].mxu1 %v2685_v27  ;;  %v3112_v27 = vld [vmem:[#allocation2 + $0x19f] sm:$0xff] }
 0x36f   :  { %8303 = vmatprep.mubr.f32.mxu1 %v2686_v33  ;;  %v3113_v33 = vld [vmem:[#allocation2 + $0x1a7] sm:$0xff] }
 0x372   :  { %8304 = vmatmul.mubr.f32.gmra.mrb[60].mxu1 %v2687_v2  ;;  %v9429_v2 = vpack.c.bf16 %v3715_v63, %v3714_v54 }
 0x373   :  { %8306 = vmatprep.mubr.f32.mxu1 %v2688_v40  ;;  %v3115_v40 = vld [vmem:[#allocation2 + $0x1b7] sm:$0xff] }
 0x374   :  { %9430 = vmatprep.subr.bf16.mxu0 %v9429_v2 }
 0x375   :  { %9432 = vmatpush3.bf16.msra.mxu0 %v9429_v2 }
 0x376   :  { %8307 = vmatmul.mubr.f32.gmra.mrb[62].mxu1 %v2689_v31  ;;  %9434 = vmatprep.subr.bf16.mxu0 %v9433_v44  ;;  %v3638_v31 = vld [vmem:[#allocation9 + $0x300] sm:$0xff] }
 0x377   :  { %8309 = vmatprep.mubr.f32.mxu1 %v2690_v46  ;;  %v3639_v46 = vld [vmem:[#allocation9 + $0x308] sm:$0xff] }
 0x378   :  { %v9437_v36 = vpack.c.bf16 %v3639_v46, %v3638_v31  ;;  %v3648_v31 = vld [vmem:[#allocation9 + $0x350] sm:$0xff]  ;;  %v3649_v46 = vld [vmem:[#allocation9 + $0x358] sm:$0xff] }
 0x379   :  { %9436 = vmatpush3.bf16.msra.mxu0 %v9433_v44 }
 0x37a   :  { %8310 = vmatmul.mubr.f32.gmra.mrb[64].mxu1 %v2691_v9  ;;  %9438 = vmatprep.subr.bf16.mxu0 %v9437_v36  ;;  %v10927_v9 = vld [vmem:[%s11401_s4] ss:$0 sm:$0xff] }
 0x37b   :  { %8312 = vmatprep.mubr.f32.mxu1 %v2692_v49 }
 0x37e   :  { %8313 = vmatmul.mubr.f32.gmra.mrb[66].mxu1 %v2693_v61 }
 0x37f   :  { %8315 = vmatprep.mubr.f32.mxu1 %v2694_v43 }
 0x382   :  { %8316 = vmatmul.mubr.f32.gmra.mrb[68].mxu1 %v2695_v19 }
 0x383   :  { %8318 = vmatprep.mubr.f32.mxu1 %v2696_v22 }
 0x386   :  { %8319 = vmatmul.mubr.f32.gmra.mrb[70].mxu1 %v2697_v37 }
 0x387   :  { %8353 = vmatprep.mubr.f32.mxu1 %v3068_v41 }
 0x38a   :  { %8354 = vmatmul.mubr.f32.vlgmr.msra.gmra.mrb[24].mxu1 %v3069_v38 }
 0x38b   :  { %8356 = vmatprep.mubr.f32.mxu1 %v3070_v53 }
 0x38e   :  { %8357 = vmatmul.mubr.f32.gmra.mrb[26].mxu1 %v3071_v50 }
 0x38f   :  { %8359 = vmatprep.mubr.f32.mxu1 %v3072_v3 }
 0x392   :  { %8360 = vmatmul.mubr.f32.gmra.mrb[28].mxu1 %v3073_v62 }
 0x393   :  { %8362 = vmatprep.mubr.f32.mxu1 %v3074_v20 }
 0x396   :  { %8363 = vmatmul.mubr.f32.gmra.mrb[30].mxu1 %v3075_v15 }
 0x397   :  { %8365 = vmatprep.mubr.f32.mxu1 %v3076_v45 }
 0x39a   :  { %8366 = vmatmul.mubr.f32.gmra.mrb[32].mxu1 %v3077_v32 }
 0x39b   :  { %8368 = vmatprep.mubr.f32.mxu1 %v3078_v18  ;;  %v3640_v18 = vld [vmem:[#allocation9 + $0x310] sm:$0xff] }
 0x39e   :  { %8369 = vmatmul.mubr.f32.gmra.mrb[34].mxu1 %v3079_v11  ;;  %v3641_v11 = vld [vmem:[#allocation9 + $0x318] sm:$0xff] }
 0x39f   :  { %8371 = vmatprep.mubr.f32.mxu1 %v3080_v7 }
 0x3a2   :  { %8372 = vmatmul.mubr.f32.gmra.mrb[36].mxu1 %v3081_v1 }
 0x3a3   :  { %8374 = vmatprep.mubr.f32.mxu1 %v3082_v24 }
 0x3a6   :  { %8375 = vmatmul.mubr.f32.gmra.mrb[38].mxu1 %v3083_v57 }
 0x3a7   :  { %8377 = vmatprep.mubr.f32.mxu1 %v3084_v8 }
 0x3aa   :  { %8378 = vmatmul.mubr.f32.gmra.mrb[40].mxu1 %v3085_v42 }
 0x3ab   :  { %8380 = vmatprep.mubr.f32.mxu1 %v3086_v59 }
 0x3ae   :  { %8381 = vmatmul.mubr.f32.gmra.mrb[42].mxu1 %v3087_v23  ;;  %v9441_v23 = vpack.c.bf16 %v3641_v11, %v3640_v18  ;;  %v9457_v18 = vpack.c.bf16 %v3649_v46, %v3648_v31 }
 0x3af   :  { %8383 = vmatprep.mubr.f32.mxu1 %v3088_v14 }
 0x3b2   :  { %8384 = vmatmul.mubr.f32.gmra.mrb[44].mxu1 %v3089_v52  ;;  %v3642_v52 = vld [vmem:[#allocation9 + $0x320] sm:$0xff] }
 0x3b3   :  { %8386 = vmatprep.mubr.f32.mxu1 %v3090_v58  ;;  %v3643_v58 = vld [vmem:[#allocation9 + $0x328] sm:$0xff] }
 0x3b6   :  { %8387 = vmatmul.mubr.f32.gmra.mrb[46].mxu1 %v3091_v56 }
 0x3b7   :  { %8389 = vmatprep.mubr.f32.mxu1 %v3092_v28 }
 0x3ba   :  { %8390 = vmatmul.mubr.f32.gmra.mrb[48].mxu1 %v3093_v30 }
 0x3bb   :  { %8392 = vmatprep.mubr.f32.mxu1 %v3094_v4 }
 0x3be   :  { %8393 = vmatmul.mubr.f32.gmra.mrb[50].mxu1 %v3095_v5 }
 0x3bf   :  { %8395 = vmatprep.mubr.f32.mxu1 %v3096_v48 }
 0x3c2   :  { %8396 = vmatmul.mubr.f32.gmra.mrb[52].mxu1 %v3097_v55 }
 0x3c3   :  { %8398 = vmatprep.mubr.f32.mxu1 %v3098_v51  ;;  %v9445_v51 = vpack.c.bf16 %v3643_v58, %v3642_v52 }
 0x3c6   :  { %8399 = vmatmul.mubr.f32.gmra.mrb[54].mxu1 %v3099_v0 }
 0x3c7   :  { %8401 = vmatprep.mubr.f32.mxu1 %v3100_v39  ;;  %v3644_v39 = vld [vmem:[#allocation9 + $0x330] sm:$0xff] }
 0x3ca   :  { %8402 = vmatmul.mubr.f32.gmra.mrb[56].mxu1 %v3101_v26  ;;  %v3645_v26 = vld [vmem:[#allocation9 + $0x338] sm:$0xff] }
 0x3cb   :  { %8404 = vmatprep.mubr.f32.mxu1 %v3102_v60 }
 0x3ce   :  { %8405 = vmatmul.mubr.f32.gmra.mrb[58].mxu1 %v3103_v12 }
 0x3cf   :  { %8407 = vmatprep.mubr.f32.mxu1 %v3104_v17 }
 0x3d2   :  { %8408 = vmatmul.mubr.f32.gmra.mrb[60].mxu1 %v3105_v47 }
 0x3d3   :  { %8410 = vmatprep.mubr.f32.mxu1 %v3106_v29 }
 0x3d6   :  { %8411 = vmatmul.mubr.f32.gmra.mrb[62].mxu1 %v3107_v10 }
 0x3d7   :  { %8413 = vmatprep.mubr.f32.mxu1 %v3108_v21 }
 0x3da   :  { %8414 = vmatmul.mubr.f32.gmra.mrb[64].mxu1 %v3109_v35  ;;  %v9449_v35 = vpack.c.bf16 %v3645_v26, %v3644_v39  ;;  %v3653_v39 = vld [vmem:[#allocation9 + $0x378] sm:$0xff] }
 0x3db   :  { %8416 = vmatprep.mubr.f32.mxu1 %v3110_v6 }
 0x3de   :  { %8417 = vmatmul.mubr.f32.gmra.mrb[66].mxu1 %v3111_v16  ;;  %v3646_v16 = vld [vmem:[#allocation9 + $0x340] sm:$0xff] }
 0x3df   :  { %8419 = vmatprep.mubr.f32.mxu1 %v3112_v27  ;;  %v3647_v27 = vld [vmem:[#allocation9 + $0x348] sm:$0xff] }
 0x3e0   :  { %v9453_v25 = vpack.c.bf16 %v3647_v27, %v3646_v16 }
 0x3e2   :  { %8420 = vmatmul.mubr.f32.gmra.mrb[68].mxu1 %v3113_v33 }
 0x3e3   :  { %8422 = vmatprep.mubr.f32.mxu1 %v3114_v13 }
 0x3e6   :  { %8423 = vmatmul.mubr.f32.gmra.mrb[70].mxu1 %v3115_v40 }
 0x45d   :  { %v8355_v49 = vpop.f32.mrb[24].mxu1 }
 0x45e   :  { %v10930_v61 = vadd.f32 %v8355_v49, %v10927_v9  ;;  %v3199_v43 = vpop.f32.mrb[25].mxu1 }
 0x45f   :  { %v10933_v19 = vadd.f32 %v10927_v9, %v3199_v43 }
 0x460   :  { %v3542_v22 = vmax.f32 %v10930_v61, 0.0  ;;  %v4385_v61 = vld [vmem:[#allocation9 + $0xc0] sm:$0xff] }
 0x461   :  { %v3541_v37 = vmax.f32 %v10933_v19, 0.0  ;;  %v8358_v41 = vpop.f32.mrb[26].mxu1 }
 0x462   :  { %3590 = vst [vmem:[#allocation2 + $0x10] sm:$0xff] %v3542_v22  ;;  %v10940_v38 = vadd.f32 %v8358_v41, %v10927_v9  ;;  %v3209_v53 = vpop.f32.mrb[27].mxu1 }
 0x463   :  { %3589 = vst [vmem:[#allocation2 + $0x8] sm:$0xff] %v3541_v37  ;;  %v10945_v50 = vadd.f32 %v10927_v9, %v3209_v53 }
 0x464   :  { %v11493_v3 = vmax.f32 %v10940_v38, 0.0 }
 0x465   :  { %v3543_v62 = vmax.f32 %v10945_v50, 0.0  ;;  %v8361_v20 = vpop.f32.mrb[28].mxu1 }
 0x466   :  { %3592 = vst [vmem:[#allocation2 + $0x20] sm:$0xff] %v11493_v3  ;;  %v10952_v15 = vadd.f32 %v8361_v20, %v10927_v9  ;;  %v3219_v45 = vpop.f32.mrb[29].mxu1  ;;  %v4382_v3 = vld [vmem:[#allocation9 + $0xa8] sm:$0xff] }
 0x467   :  { %3591 = vst [vmem:[#allocation2 + $0x18] sm:$0xff] %v3543_v62  ;;  %v10957_v32 = vadd.f32 %v10927_v9, %v3219_v45 }
 0x468   :  { %v11487_v7 = vmax.f32 %v10952_v15, 0.0 }
 0x469   :  { %v11492_v1 = vmax.f32 %v10957_v32, 0.0  ;;  %v8364_v24 = vpop.f32.mrb[30].mxu1  ;;  %v11540_v19 = vmax.f32 %v10957_v32, 0.0 }
 0x46a   :  { %3594 = vst [vmem:[#allocation2 + $0x30] sm:$0xff] %v11487_v7  ;;  %v10964_v57 = vadd.f32 %v8364_v24, %v10927_v9  ;;  %v3229_v8 = vpop.f32.mrb[31].mxu1  ;;  %v3654_v42 = vld [vmem:[#allocation2 + $0x2] sm:$0xff]  ;;  %v3655_v59 = vld [vmem:[#allocation2 + $0xa] sm:$0xff] }
 0x46b   :  { %3593 = vst [vmem:[#allocation2 + $0x28] sm:$0xff] %v11492_v1  ;;  %v10969_v14 = vadd.f32 %v10927_v9, %v3229_v8  ;;  %8457 = vmatprep.mubr.f32.mxu0 %v3654_v42  ;;  %v3650_v24 = vld [vmem:[#allocation9 + $0x360] sm:$0xff]  ;;  %v3651_v8 = vld [vmem:[#allocation9 + $0x368] sm:$0xff] }
 0x46c   :  { %v11483_v56 = vmax.f32 %v10964_v57, 0.0  ;;  %8458 = vmatmul.mubr.f32.vlgmr.msra.gmra.mrb[24].mxu0 %v3655_v59  ;;  %v4381_v1 = vld [vmem:[#allocation9 + $0xa0] sm:$0xff] }
 0x46d   :  { %v11486_v28 = vmax.f32 %v10969_v14, 0.0  ;;  %9440 = vmatpush3.bf16.msra.mxu0 %v9437_v36  ;;  %v8367_v30 = vpop.f32.mrb[32].mxu1  ;;  %v11542_v50 = vmax.f32 %v10969_v14, 0.0 }
 0x46e   :  { %3596 = vst [vmem:[#allocation2 + $0x48] sm:$0xff] %v11483_v56  ;;  %v10976_v4 = vadd.f32 %v8367_v30, %v10927_v9  ;;  %v3239_v5 = vpop.f32.mrb[33].mxu1  ;;  %v3656_v48 = vld [vmem:[#allocation2 + $0x12] sm:$0xff]  ;;  %v3657_v55 = vld [vmem:[#allocation2 + $0x1a] sm:$0xff]  ;;  %9442 = vmatprep.subr.bf16.mxu0 %v9441_v23 }
 0x46f   :  { %3595 = vst [vmem:[#allocation2 + $0x40] sm:$0xff] %v11486_v28  ;;  %v10981_v0 = vadd.f32 %v10927_v9, %v3239_v5  ;;  %8460 = vmatprep.mubr.f32.mxu0 %v3656_v48  ;;  %v9461_v48 = vpack.c.bf16 %v3651_v8, %v3650_v24 }
 0x470   :  { %v11479_v60 = vmax.f32 %v10976_v4, 0.0  ;;  %8461 = vmatmul.mubr.f32.gmra.mrb[26].mxu0 %v3657_v55 }
 0x471   :  { %v11482_v12 = vmax.f32 %v10981_v0, 0.0  ;;  %v8370_v17 = vpop.f32.mrb[34].mxu1  ;;  %9444 = vmatpush3.bf16.msra.mxu0 %v9441_v23  ;;  %v11544_v32 = vmax.f32 %v10981_v0, 0.0 }
 0x472   :  { %3598 = vst [vmem:[#allocation2 + $0x58] sm:$0xff] %v11479_v60  ;;  %v10988_v47 = vadd.f32 %v8370_v17, %v10927_v9  ;;  %v3249_v29 = vpop.f32.mrb[35].mxu1  ;;  %v3658_v10 = vld [vmem:[#allocation2 + $0x22] sm:$0xff]  ;;  %v3659_v21 = vld [vmem:[#allocation2 + $0x2a] sm:$0xff]  ;;  %9446 = vmatprep.subr.bf16.mxu0 %v9445_v51 }
 0x473   :  { %3597 = vst [vmem:[#allocation2 + $0x50] sm:$0xff] %v11482_v12  ;;  %v10993_v6 = vadd.f32 %v10927_v9, %v3249_v29  ;;  %8463 = vmatprep.mubr.f32.mxu0 %v3658_v10 }
 0x474   :  { %v11475_v33 = vmax.f32 %v10988_v47, 0.0  ;;  %8464 = vmatmul.mubr.f32.gmra.mrb[28].mxu0 %v3659_v21 }
 0x475   :  { %v11478_v13 = vmax.f32 %v10993_v6, 0.0  ;;  %v8373_v54 = vpop.f32.mrb[36].mxu1  ;;  %9448 = vmatpush3.bf16.msra.mxu0 %v9445_v51  ;;  %v3652_v51 = vld [vmem:[#allocation9 + $0x370] sm:$0xff]  ;;  %v11546_v14 = vmax.f32 %v10993_v6, 0.0 }
 0x476   :  { %3600 = vst [vmem:[#allocation2 + $0x68] sm:$0xff] %v11475_v33  ;;  %v11000_v63 = vadd.f32 %v8373_v54, %v10927_v9  ;;  %v3259_v2 = vpop.f32.mrb[37].mxu1  ;;  %v3660_v40 = vld [vmem:[#allocation2 + $0x3a] sm:$0xff]  ;;  %v3661_v34 = vld [vmem:[#allocation2 + $0x42] sm:$0xff]  ;;  %9450 = vmatprep.subr.bf16.mxu0 %v9449_v35  ;;  %v9465_v27 = vpack.c.bf16 %v3653_v39, %v3652_v51 }
 0x477   :  { %3599 = vst [vmem:[#allocation2 + $0x60] sm:$0xff] %v11478_v13  ;;  %v11005_v44 = vadd.f32 %v10927_v9, %v3259_v2  ;;  %8466 = vmatprep.mubr.f32.mxu0 %v3660_v40  ;;  %v4377_v2 = vld [vmem:[#allocation9 + $0x80] sm:$0xff]  ;;  %v4378_v40 = vld [vmem:[#allocation9 + $0x88] sm:$0xff] }
 0x478   :  { %v11471_v36 = vmax.f32 %v11000_v63, 0.0  ;;  %8467 = vmatmul.mubr.f32.gmra.mrb[30].mxu0 %v3661_v34 }
 0x479   :  { %v11474_v49 = vmax.f32 %v11005_v44, 0.0  ;;  %v8376_v43 = vpop.f32.mrb[38].mxu1  ;;  %9452 = vmatpush3.bf16.msra.mxu0 %v9449_v35  ;;  %v11548_v0 = vmax.f32 %v11005_v44, 0.0 }
 0x47a   :  { %3602 = vst [vmem:[#allocation2 + $0x80] sm:$0xff] %v11471_v36  ;;  %v11012_v41 = vadd.f32 %v8376_v43, %v10927_v9  ;;  %v3269_v53 = vpop.f32.mrb[39].mxu1  ;;  %v3662_v20 = vld [vmem:[#allocation2 + $0x4a] sm:$0xff]  ;;  %v3663_v45 = vld [vmem:[#allocation2 + $0x52] sm:$0xff]  ;;  %9454 = vmatprep.subr.bf16.mxu0 %v9453_v25 }
 0x47b   :  { %3601 = vst [vmem:[#allocation2 + $0x78] sm:$0xff] %v11474_v49  ;;  %v11017_v11 = vadd.f32 %v10927_v9, %v3269_v53  ;;  %8469 = vmatprep.mubr.f32.mxu0 %v3662_v20 }
 0x47c   :  { %v11467_v42 = vmax.f32 %v11012_v41, 0.0  ;;  %8470 = vmatmul.mubr.f32.gmra.mrb[32].mxu0 %v3663_v45  ;;  %v11050_v45 = vpack.c.bf16 %v4378_v40, %v4377_v2 }
 0x47d   :  { %v11470_v59 = vmax.f32 %v11017_v11, 0.0  ;;  %v8379_v23 = vpop.f32.mrb[40].mxu1  ;;  %9456 = vmatpush3.bf16.msra.mxu0 %v9453_v25  ;;  %v11550_v6 = vmax.f32 %v11017_v11, 0.0 }
 0x47e   :  { %3604 = vst [vmem:[#allocation2 + $0x90] sm:$0xff] %v11467_v42  ;;  %v11024_v52 = vadd.f32 %v8379_v23, %v10927_v9  ;;  %v3279_v58 = vpop.f32.mrb[41].mxu1  ;;  %v3664_v30 = vld [vmem:[#allocation2 + $0x5a] sm:$0xff]  ;;  %v3665_v5 = vld [vmem:[#allocation2 + $0x62] sm:$0xff]  ;;  %9458 = vmatprep.subr.bf16.mxu0 %v9457_v18 }
 0x47f   :  { %3603 = vst [vmem:[#allocation2 + $0x88] sm:$0xff] %v11470_v59  ;;  %v11029_v55 = vadd.f32 %v10927_v9, %v3279_v58  ;;  %8472 = vmatprep.mubr.f32.mxu0 %v3664_v30 }
 0x480   :  { %v11463_v26 = vmax.f32 %v11024_v52, 0.0  ;;  %8473 = vmatmul.mubr.f32.gmra.mrb[34].mxu0 %v3665_v5 }
 0x481   :  { %v11466_v17 = vmax.f32 %v11029_v55, 0.0  ;;  %v8382_v29 = vpop.f32.mrb[42].mxu1  ;;  %9460 = vmatpush3.bf16.msra.mxu0 %v9457_v18  ;;  %v11552_v44 = vmax.f32 %v11029_v55, 0.0 }
 0x482   :  { %3606 = vst [vmem:[#allocation2 + $0xa0] sm:$0xff] %v11463_v26  ;;  %v11036_v10 = vadd.f32 %v8382_v29, %v10927_v9  ;;  %v3289_v21 = vpop.f32.mrb[43].mxu1  ;;  %v3666_v35 = vld [vmem:[#allocation2 + $0x72] sm:$0xff]  ;;  %v3667_v16 = vld [vmem:[#allocation2 + $0x7a] sm:$0xff]  ;;  %9462 = vmatprep.subr.bf16.mxu0 %v9461_v48 }
 0x483   :  { %3605 = vst [vmem:[#allocation2 + $0x98] sm:$0xff] %v11466_v17  ;;  %v11041_v54 = vadd.f32 %v10927_v9, %v3289_v21  ;;  %8475 = vmatprep.mubr.f32.mxu0 %v3666_v35 }
 0x484   :  { %v11459_v34 = vmax.f32 %v11036_v10, 0.0  ;;  %8476 = vmatmul.mubr.f32.gmra.mrb[36].mxu0 %v3667_v16  ;;  %v11555_v11 = vmax.f32 %v11036_v10, 0.0 }
 0x485   :  { %v11462_v25 = vmax.f32 %v11041_v54, 0.0  ;;  %v8385_v31 = vpop.f32.mrb[44].mxu1  ;;  %9464 = vmatpush3.bf16.msra.mxu0 %v9461_v48 }
 0x486   :  { %3608 = vst [vmem:[#allocation2 + $0xb8] sm:$0xff] %v11459_v34  ;;  %v11048_v46 = vadd.f32 %v8385_v31, %v10927_v9  ;;  %v3299_v43 = vpop.f32.mrb[45].mxu1  ;;  %v3668_v53 = vld [vmem:[#allocation2 + $0x82] sm:$0xff]  ;;  %v3669_v20 = vld [vmem:[#allocation2 + $0x8a] sm:$0xff]  ;;  %9466 = vmatprep.subr.bf16.mxu0 %v9465_v27 }
 0x487   :  { %3607 = vst [vmem:[#allocation2 + $0xb0] sm:$0xff] %v11462_v25  ;;  %v11055_v18 = vadd.f32 %v10927_v9, %v3299_v43  ;;  %8478 = vmatprep.mubr.f32.mxu0 %v3668_v53 }
 0x488   :  { %v11455_v24 = vmax.f32 %v11048_v46, 0.0  ;;  %8479 = vmatmul.mubr.f32.gmra.mrb[38].mxu0 %v3669_v20 }
 0x489   :  { %v11458_v8 = vmax.f32 %v11055_v18, 0.0  ;;  %v8388_v23 = vpop.f32.mrb[46].mxu1  ;;  %9468 = vmatpush3.bf16.msra.mxu0 %v9465_v27 }
 0x48a   :  { %3610 = vst [vmem:[#allocation2 + $0xc8] sm:$0xff] %v11455_v24  ;;  %v11062_v58 = vadd.f32 %v8388_v23, %v10927_v9  ;;  %v3309_v30 = vpop.f32.mrb[47].mxu1  ;;  %v3670_v5 = vld [vmem:[#allocation2 + $0x92] sm:$0xff]  ;;  %v3671_v48 = vld [vmem:[#allocation2 + $0x9a] sm:$0xff]  ;;  %9470 = vmatprep.subr.bf16.mxu0 %v11050_v45 }
 0x48b   :  { %3609 = vst [vmem:[#allocation2 + $0xc0] sm:$0xff] %v11458_v8  ;;  %v11068_v51 = vadd.f32 %v10927_v9, %v3309_v30  ;;  %8481 = vmatprep.mubr.f32.mxu0 %v3670_v5 }
 0x48c   :  { %v11451_v39 = vmax.f32 %v11062_v58, 0.0  ;;  %8482 = vmatmul.mubr.f32.gmra.mrb[40].mxu0 %v3671_v48 }
 0x48d   :  { %v11454_v29 = vmax.f32 %v11068_v51, 0.0  ;;  %v8391_v21 = vpop.f32.mrb[48].mxu1  ;;  %v11558_v55 = vmax.f32 %v11068_v51, 0.0 }
 0x48e   :  { %3612 = vst [vmem:[#allocation2 + $0xd8] sm:$0xff] %v11451_v39  ;;  %v11075_v35 = vadd.f32 %v8391_v21, %v10927_v9  ;;  %v3319_v16 = vpop.f32.mrb[49].mxu1  ;;  %v3672_v27 = vld [vmem:[#allocation2 + $0xaa] sm:$0xff]  ;;  %v3673_v2 = vld [vmem:[#allocation2 + $0xb2] sm:$0xff] }
 0x48f   :  { %3611 = vst [vmem:[#allocation2 + $0xd0] sm:$0xff] %v11454_v29  ;;  %v11080_v40 = vadd.f32 %v10927_v9, %v3319_v16  ;;  %8484 = vmatprep.mubr.f32.mxu0 %v3672_v27 }
 0x490   :  { %v11450_v31 = vmax.f32 %v11075_v35, 0.0  ;;  %8485 = vmatmul.mubr.f32.gmra.mrb[42].mxu0 %v3673_v2 }
 0x491   :  { %v11452_v43 = vmax.f32 %v11080_v40, 0.0  ;;  %v8394_v53 = vpop.f32.mrb[50].mxu1 }
 0x492   :  { %3614 = vst [vmem:[#allocation2 + $0xf0] sm:$0xff] %v11450_v31  ;;  %v11087_v20 = vadd.f32 %v8394_v53, %v10927_v9  ;;  %v3329_v23 = vpop.f32.mrb[51].mxu1  ;;  %v3674_v30 = vld [vmem:[#allocation2 + $0xba] sm:$0xff]  ;;  %v3675_v5 = vld [vmem:[#allocation2 + $0xc2] sm:$0xff] }
 0x493   :  { %3613 = vst [vmem:[#allocation2 + $0xe8] sm:$0xff] %v11452_v43  ;;  %v11092_v48 = vadd.f32 %v10927_v9, %v3329_v23  ;;  %8487 = vmatprep.mubr.f32.mxu0 %v3674_v30 }
 0x494   :  { %v11453_v21 = vmax.f32 %v11087_v20, 0.0  ;;  %8488 = vmatmul.mubr.f32.gmra.mrb[44].mxu0 %v3675_v5 }
 0x495   :  { %v11456_v16 = vmax.f32 %v11092_v48, 0.0  ;;  %v8397_v27 = vpop.f32.mrb[52].mxu1  ;;  %v11562_v10 = vmax.f32 %v11092_v48, 0.0 }
 0x496   :  { %3616 = vst [vmem:[#allocation2 + $0x100] sm:$0xff] %v11453_v21  ;;  %v11099_v2 = vadd.f32 %v8397_v27, %v10927_v9  ;;  %v3339_v53 = vpop.f32.mrb[53].mxu1  ;;  %v3676_v31 = vld [vmem:[#allocation2 + $0xca] sm:$0xff]  ;;  %v3677_v39 = vld [vmem:[#allocation2 + $0xd2] sm:$0xff] }
 0x497   :  { %3615 = vst [vmem:[#allocation2 + $0xf8] sm:$0xff] %v11456_v16  ;;  %v11104_v23 = vadd.f32 %v10927_v9, %v3339_v53  ;;  %8490 = vmatprep.mubr.f32.mxu0 %v3676_v31 }
 0x498   :  { %v11457_v30 = vmax.f32 %v11099_v2, 0.0  ;;  %8491 = vmatmul.mubr.f32.gmra.mrb[46].mxu0 %v3677_v39  ;;  %v11565_v51 = vmax.f32 %v11099_v2, 0.0 }
 0x499   :  { %v11460_v5 = vmax.f32 %v11104_v23, 0.0  ;;  %v8400_v43 = vpop.f32.mrb[54].mxu1 }
 0x49a   :  { %3618 = vst [vmem:[#allocation2 + $0x110] sm:$0xff] %v11457_v30  ;;  %v11111_v27 = vadd.f32 %v8400_v43, %v10927_v9  ;;  %v3349_v21 = vpop.f32.mrb[55].mxu1  ;;  %v3678_v29 = vld [vmem:[#allocation2 + $0xe2] sm:$0xff]  ;;  %v3679_v24 = vld [vmem:[#allocation2 + $0xea] sm:$0xff] }
 0x49b   :  { %3617 = vst [vmem:[#allocation2 + $0x108] sm:$0xff] %v11460_v5  ;;  %v11116_v31 = vadd.f32 %v10927_v9, %v3349_v21  ;;  %8493 = vmatprep.mubr.f32.mxu0 %v3678_v29 }
 0x49c   :  { %v11461_v39 = vmax.f32 %v11111_v27, 0.0  ;;  %8494 = vmatmul.mubr.f32.gmra.mrb[48].mxu0 %v3679_v24 }
 0x49d   :  { %v11464_v53 = vmax.f32 %v11116_v31, 0.0  ;;  %v8403_v16 = vpop.f32.mrb[56].mxu1 }
 0x49e   :  { %3620 = vst [vmem:[#allocation2 + $0x128] sm:$0xff] %v11461_v39  ;;  %v11123_v43 = vadd.f32 %v8403_v16, %v10927_v9  ;;  %v3359_v30 = vpop.f32.mrb[57].mxu1  ;;  %v3680_v8 = vld [vmem:[#allocation2 + $0xf2] sm:$0xff]  ;;  %v3681_v34 = vld [vmem:[#allocation2 + $0xfa] sm:$0xff] }
 0x49f   :  { %3619 = vst [vmem:[#allocation2 + $0x120] sm:$0xff] %v11464_v53  ;;  %v11128_v29 = vadd.f32 %v10927_v9, %v3359_v30  ;;  %8496 = vmatprep.mubr.f32.mxu0 %v3680_v8 }
 0x4a0   :  { %v11465_v24 = vmax.f32 %v11123_v43, 0.0  ;;  %8497 = vmatmul.mubr.f32.gmra.mrb[50].mxu0 %v3681_v34  ;;  %v11569_v48 = vmax.f32 %v11123_v43, 0.0 }
 0x4a1   :  { %v11468_v21 = vmax.f32 %v11128_v29, 0.0  ;;  %v8406_v5 = vpop.f32.mrb[58].mxu1 }
 0x4a2   :  { %3622 = vst [vmem:[#allocation2 + $0x138] sm:$0xff] %v11465_v24  ;;  %v11135_v16 = vadd.f32 %v8406_v5, %v10927_v9  ;;  %v3369_v39 = vpop.f32.mrb[59].mxu1  ;;  %v3682_v25 = vld [vmem:[#allocation2 + $0x102] sm:$0xff]  ;;  %v3683_v26 = vld [vmem:[#allocation2 + $0x10a] sm:$0xff] }
 0x4a3   :  { %3621 = vst [vmem:[#allocation2 + $0x130] sm:$0xff] %v11468_v21  ;;  %v11140_v8 = vadd.f32 %v10927_v9, %v3369_v39  ;;  %8499 = vmatprep.mubr.f32.mxu0 %v3682_v25 }
 0x4a4   :  { %v11469_v34 = vmax.f32 %v11135_v16, 0.0  ;;  %8500 = vmatmul.mubr.f32.gmra.mrb[52].mxu0 %v3683_v26 }
 0x4a5   :  { %v11472_v30 = vmax.f32 %v11140_v8, 0.0  ;;  %v8409_v53 = vpop.f32.mrb[60].mxu1 }
 0x4a6   :  { %3624 = vst [vmem:[#allocation2 + $0x148] sm:$0xff] %v11469_v34  ;;  %v11147_v5 = vadd.f32 %v8409_v53, %v10927_v9  ;;  %v3379_v24 = vpop.f32.mrb[61].mxu1  ;;  %v3684_v17 = vld [vmem:[#allocation2 + $0x11a] sm:$0xff]  ;;  %v3685_v42 = vld [vmem:[#allocation2 + $0x122] sm:$0xff] }
 0x4a7   :  { %3623 = vst [vmem:[#allocation2 + $0x140] sm:$0xff] %v11472_v30  ;;  %v11152_v25 = vadd.f32 %v10927_v9, %v3379_v24  ;;  %8502 = vmatprep.mubr.f32.mxu0 %v3684_v17 }
 0x4a8   :  { %v11473_v26 = vmax.f32 %v11147_v5, 0.0  ;;  %8503 = vmatmul.mubr.f32.gmra.mrb[54].mxu0 %v3685_v42 }
 0x4a9   :  { %v11476_v39 = vmax.f32 %v11152_v25, 0.0  ;;  %v8412_v21 = vpop.f32.mrb[62].mxu1  ;;  %v11572_v2 = vmax.f32 %v11152_v25, 0.0 }
 0x4aa   :  { %3626 = vst [vmem:[#allocation2 + $0x160] sm:$0xff] %v11473_v26  ;;  %v11159_v53 = vadd.f32 %v8412_v21, %v10927_v9  ;;  %v3389_v34 = vpop.f32.mrb[63].mxu1  ;;  %v3686_v59 = vld [vmem:[#allocation2 + $0x12a] sm:$0xff]  ;;  %v3687_v36 = vld [vmem:[#allocation2 + $0x132] sm:$0xff] }
 0x4ab   :  { %3625 = vst [vmem:[#allocation2 + $0x158] sm:$0xff] %v11476_v39  ;;  %v11164_v17 = vadd.f32 %v10927_v9, %v3389_v34  ;;  %8505 = vmatprep.mubr.f32.mxu0 %v3686_v59 }
 0x4ac   :  { %v11477_v42 = vmax.f32 %v11159_v53, 0.0  ;;  %8506 = vmatmul.mubr.f32.gmra.mrb[56].mxu0 %v3687_v36 }
 0x4ad   :  { %v11480_v24 = vmax.f32 %v11164_v17, 0.0  ;;  %v8415_v30 = vpop.f32.mrb[64].mxu1 }
 0x4ae   :  { %3628 = vst [vmem:[#allocation2 + $0x170] sm:$0xff] %v11477_v42  ;;  %v11171_v21 = vadd.f32 %v8415_v30, %v10927_v9  ;;  %v3399_v26 = vpop.f32.mrb[65].mxu1  ;;  %v3688_v49 = vld [vmem:[#allocation2 + $0x13a] sm:$0xff]  ;;  %v3689_v33 = vld [vmem:[#allocation2 + $0x142] sm:$0xff] }
 0x4af   :  { %3627 = vst [vmem:[#allocation2 + $0x168] sm:$0xff] %v11480_v24  ;;  %v11176_v59 = vadd.f32 %v10927_v9, %v3399_v26  ;;  %8508 = vmatprep.mubr.f32.mxu0 %v3688_v49 }
 0x4b0   :  { %v11481_v36 = vmax.f32 %v11171_v21, 0.0  ;;  %8509 = vmatmul.mubr.f32.gmra.mrb[58].mxu0 %v3689_v33 }
 0x4b1   :  { %v11484_v34 = vmax.f32 %v11176_v59, 0.0  ;;  %v8418_v39 = vpop.f32.mrb[66].mxu1  ;;  %v11576_v43 = vmax.f32 %v11176_v59, 0.0  ;;  %v4798_v59 = vld [vmem:[#allocation9 + $0x118] sm:$0xff] }
 0x4b2   :  { %3630 = vst [vmem:[#allocation2 + $0x180] sm:$0xff] %v11481_v36  ;;  %v11183_v30 = vadd.f32 %v8418_v39, %v10927_v9  ;;  %v3409_v42 = vpop.f32.mrb[67].mxu1  ;;  %v3690_v13 = vld [vmem:[#allocation2 + $0x152] sm:$0xff]  ;;  %v3691_v60 = vld [vmem:[#allocation2 + $0x15a] sm:$0xff] }
 0x4b3   :  { %3629 = vst [vmem:[#allocation2 + $0x178] sm:$0xff] %v11484_v34  ;;  %v11188_v49 = vadd.f32 %v10927_v9, %v3409_v42  ;;  %8511 = vmatprep.mubr.f32.mxu0 %v3690_v13 }
 0x4b4   :  { %v11485_v33 = vmax.f32 %v11183_v30, 0.0  ;;  %8512 = vmatmul.mubr.f32.gmra.mrb[60].mxu0 %v3691_v60  ;;  %v11579_v25 = vmax.f32 %v11183_v30, 0.0  ;;  %v4799_v30 = vld [vmem:[#allocation9 + $0x120] sm:$0xff] }
 0x4b5   :  { %v11490_v26 = vmax.f32 %v11188_v49, 0.0  ;;  %v8421_v24 = vpop.f32.mrb[68].mxu1 }
 0x4b6   :  { %3632 = vst [vmem:[#allocation2 + $0x198] sm:$0xff] %v11485_v33  ;;  %v11195_v39 = vadd.f32 %v8421_v24, %v10927_v9  ;;  %v3419_v36 = vpop.f32.mrb[69].mxu1  ;;  %v3692_v12 = vld [vmem:[#allocation2 + $0x162] sm:$0xff]  ;;  %v3693_v56 = vld [vmem:[#allocation2 + $0x16a] sm:$0xff] }
 0x4b7   :  { %3631 = vst [vmem:[#allocation2 + $0x190] sm:$0xff] %v11490_v26  ;;  %v11200_v13 = vadd.f32 %v10927_v9, %v3419_v36  ;;  %8514 = vmatprep.mubr.f32.mxu0 %v3692_v12 }
 0x4b8   :  { %v11488_v60 = vmax.f32 %v11195_v39, 0.0  ;;  %8515 = vmatmul.mubr.f32.gmra.mrb[62].mxu0 %v3693_v56 }
 0x4b9   :  { %v11489_v42 = vmax.f32 %v11200_v13, 0.0  ;;  %v8424_v34 = vpop.f32.mrb[70].mxu1 }
 0x4ba   :  { %3634 = vst [vmem:[#allocation2 + $0x1a8] sm:$0xff] %v11488_v60  ;;  %v11207_v24 = vadd.f32 %v8424_v34, %v10927_v9  ;;  %v3429_v33 = vpop.f32.mrb[71].mxu1  ;;  %v3694_v28 = vld [vmem:[#allocation2 + $0x172] sm:$0xff]  ;;  %v3695_v7 = vld [vmem:[#allocation2 + $0x17a] sm:$0xff] }
 0x4bb   :  { %3633 = vst [vmem:[#allocation2 + $0x1a0] sm:$0xff] %v11489_v42  ;;  %v11212_v12 = vadd.f32 %v10927_v9, %v3429_v33  ;;  %8517 = vmatprep.mubr.f32.mxu0 %v3694_v28  ;;  %v4380_v33 = vld [vmem:[#allocation9 + $0x98] sm:$0xff] }
 0x4bc   :  { %v11491_v56 = vmax.f32 %v11207_v24, 0.0  ;;  %8518 = vmatmul.mubr.f32.gmra.mrb[64].mxu0 %v3695_v7  ;;  %v4379_v7 = vld [vmem:[#allocation9 + $0x90] sm:$0xff] }
 0x4bd   :  { %v3587_v36 = vmax.f32 %v11212_v12, 0.0  ;;  %v4801_v12 = vld [vmem:[#allocation9 + $0x130] sm:$0xff] }
 0x4be   :  { %3636 = vst [vmem:[#allocation2 + $0x1b8] sm:$0xff] %v11491_v56  ;;  %v3696_v34 = vld [vmem:[#allocation2 + $0x18a] sm:$0xff]  ;;  %v3697_v60 = vld [vmem:[#allocation2 + $0x192] sm:$0xff]  ;;  %v9473_v56 = vpack.c.bf16 %v4380_v33, %v4379_v7  ;;  %v4391_v33 = vld [vmem:[#allocation9 + $0xf0] sm:$0xff] }
 0x4bf   :  { %3635 = vst [vmem:[#allocation2 + $0x1b0] sm:$0xff] %v3587_v36  ;;  %8520 = vmatprep.mubr.f32.mxu0 %v3696_v34  ;;  %v11539_v34 = vmax.f32 %v10940_v38, 0.0  ;;  %v4388_v38 = vld [vmem:[#allocation9 + $0xd8] sm:$0xff] }
 0x4c0   :  { %8521 = vmatmul.mubr.f32.gmra.mrb[66].mxu0 %v3697_v60  ;;  %v4383_v60 = vld [vmem:[#allocation9 + $0xb0] sm:$0xff] }
 0x4c2   :  { %v3698_v42 = vld [vmem:[#allocation2 + $0x19a] sm:$0xff]  ;;  %v3699_v26 = vld [vmem:[#allocation2 + $0x1a2] sm:$0xff] }
 0x4c3   :  { %8523 = vmatprep.mubr.f32.mxu0 %v3698_v42  ;;  %v4384_v42 = vld [vmem:[#allocation9 + $0xb8] sm:$0xff] }
 0x4c4   :  { %8524 = vmatmul.mubr.f32.gmra.mrb[68].mxu0 %v3699_v26  ;;  %v9477_v26 = vpack.c.bf16 %v4382_v3, %v4381_v1  ;;  %v11543_v1 = vmax.f32 %v10964_v57, 0.0  ;;  %v4392_v57 = vld [vmem:[#allocation9 + $0xf8] sm:$0xff] }
 0x4c6   :  { %v3700_v9 = vld [vmem:[#allocation2 + $0x1aa] sm:$0xff]  ;;  %v3701_v28 = vld [vmem:[#allocation2 + $0x1b2] sm:$0xff] }
 0x4c7   :  { %8526 = vmatprep.mubr.f32.mxu0 %v3700_v9  ;;  %v4389_v9 = vld [vmem:[#allocation9 + $0xe0] sm:$0xff] }
 0x4c8   :  { %8527 = vmatmul.mubr.f32.gmra.mrb[70].mxu0 %v3701_v28  ;;  %v11545_v28 = vmax.f32 %v10976_v4, 0.0  ;;  %v4796_v4 = vld [vmem:[#allocation9 + $0x108] sm:$0xff] }
 0x4c9   :  { %8561 = vmatprep.mubr.f32.mxu0 %v3541_v37  ;;  %v9481_v37 = vpack.c.bf16 %v4384_v42, %v4383_v60  ;;  %v9497_v60 = vpack.c.bf16 %v4392_v57, %v4391_v33  ;;  %v4795_v42 = vld [vmem:[#allocation9 + $0x100] sm:$0xff] }
 0x4ca   :  { %v4336_v33 = vld [vmem:[#allocation2 + $0x4b] sm:$0xff] }
 0x4cc   :  { %8562 = vmatmul.mubr.f32.vlgmr.msra.gmra.mrb[24].mxu0 %v3542_v22  ;;  %v4386_v22 = vld [vmem:[#allocation9 + $0xc8] sm:$0xff] }
 0x4cd   :  { %9472 = vmatpush3.bf16.msra.mxu0 %v11050_v45  ;;  %8564 = vmatprep.mubr.f32.mxu0 %v3543_v62  ;;  %v11541_v45 = vmax.f32 %v10952_v15, 0.0  ;;  %v9485_v3 = vpack.c.bf16 %v4386_v22, %v4385_v61  ;;  %v4387_v62 = vld [vmem:[#allocation9 + $0xd0] sm:$0xff]  ;;  %v4390_v15 = vld [vmem:[#allocation9 + $0xe8] sm:$0xff]  ;;  %v11556_v61 = vmax.f32 %v11055_v18, 0.0  ;;  %v11559_v22 = vmax.f32 %v11062_v58, 0.0 }
 0x4ce   :  { %9474 = vmatprep.subr.bf16.mxu0 %v9473_v56  ;;  %v9493_v7 = vpack.c.bf16 %v4390_v15, %v4389_v9  ;;  %v11563_v18 = vmax.f32 %v11087_v20, 0.0  ;;  %v11566_v58 = vmax.f32 %v11116_v31, 0.0  ;;  %v11570_v20 = vmax.f32 %v11140_v8, 0.0  ;;  %v4334_v9 = vld [vmem:[#allocation2 + $0x3b] sm:$0xff] }
 0x4cf   :  { %v11573_v31 = vmax.f32 %v11147_v5, 0.0  ;;  %v11577_v8 = vmax.f32 %v11171_v21, 0.0  ;;  %v11580_v5 = vmax.f32 %v11200_v13, 0.0  ;;  %v11582_v21 = vmax.f32 %v11207_v24, 0.0  ;;  %v4330_v13 = vld [vmem:[#allocation2 + $0x13] sm:$0xff] }
 0x4d0   :  { %8565 = vmatmul.mubr.f32.gmra.mrb[26].mxu0 %v11539_v34  ;;  %v11549_v34 = vmax.f32 %v11000_v63, 0.0  ;;  %v11554_v63 = vmax.f32 %v11041_v54, 0.0  ;;  %v11561_v54 = vmax.f32 %v11075_v35, 0.0  ;;  %v11568_v35 = vmax.f32 %v11128_v29, 0.0 }
 0x4d1   :  { %8567 = vmatprep.mubr.f32.mxu0 %v11540_v19  ;;  %9476 = vmatpush3.bf16.msra.mxu0 %v9473_v56  ;;  %v9489_v56 = vpack.c.bf16 %v4388_v38, %v4387_v62  ;;  %v9501_v19 = vpack.c.bf16 %v4796_v4, %v4795_v42  ;;  %v11575_v29 = vmax.f32 %v11159_v53, 0.0  ;;  %v4797_v53 = vld [vmem:[#allocation9 + $0x110] sm:$0xff] }
 0x4d2   :  { %9478 = vmatprep.subr.bf16.mxu0 %v9477_v26  ;;  %v4331_v62 = vld [vmem:[#allocation2 + $0x1b] sm:$0xff]  ;;  %v4332_v38 = vld [vmem:[#allocation2 + $0x23] sm:$0xff] }
 0x4d3   :  { %v4338_v42 = vld [vmem:[#allocation2 + $0x5b] sm:$0xff] }
 0x4d4   :  { %8568 = vmatmul.mubr.f32.gmra.mrb[28].mxu0 %v11541_v45  ;;  %v4328_v45 = vld [vmem:[#allocation2 + $0x3] sm:$0xff] }
 0x4d5   :  { %8570 = vmatprep.mubr.f32.mxu0 %v11542_v50  ;;  %9480 = vmatpush3.bf16.msra.mxu0 %v9477_v26  ;;  %v11547_v26 = vmax.f32 %v10988_v47, 0.0  ;;  %v11551_v47 = vmax.f32 %v11012_v41, 0.0  ;;  %v11557_v41 = vmax.f32 %v11048_v46, 0.0  ;;  %v11564_v46 = vmax.f32 %v11104_v23, 0.0  ;;  %v4329_v50 = vld [vmem:[#allocation2 + $0xb] sm:$0xff] }
 0x4d6   :  { %9482 = vmatprep.subr.bf16.mxu0 %v9481_v37  ;;  %v11571_v23 = vmax.f32 %v11135_v16, 0.0  ;;  %v11578_v16 = vmax.f32 %v11188_v49, 0.0  ;;  %v9505_v49 = vpack.c.bf16 %v4798_v59, %v4797_v53  ;;  %v4367_v53 = vld [vmem:[#allocation2 + $0x16b] sm:$0xff]  ;;  %v4368_v59 = vld [vmem:[#allocation2 + $0x173] sm:$0xff] }
 0x4d8   :  { %8571 = vmatmul.mubr.f32.gmra.mrb[30].mxu0 %v11543_v1  ;;  %v4333_v1 = vld [vmem:[#allocation2 + $0x2b] sm:$0xff] }
 0x4d9   :  { %8573 = vmatprep.mubr.f32.mxu0 %v11544_v32  ;;  %9484 = vmatpush3.bf16.msra.mxu0 %v9481_v37  ;;  %v11553_v37 = vmax.f32 %v11024_v52, 0.0  ;;  %v11560_v52 = vmax.f32 %v11080_v40, 0.0  ;;  %v11567_v40 = vmax.f32 %v11111_v27, 0.0  ;;  %v11574_v27 = vmax.f32 %v11164_v17, 0.0  ;;  %v4803_v32 = vld [vmem:[#allocation9 + $0x140] sm:$0xff] }
 0x4da   :  { %9486 = vmatprep.subr.bf16.mxu0 %v9485_v3  ;;  %v11581_v17 = vmax.f32 %v11195_v39, 0.0 }
 0x4dc   :  { %8574 = vmatmul.mubr.f32.gmra.mrb[32].mxu0 %v11545_v28  ;;  %v4335_v28 = vld [vmem:[#allocation2 + $0x43] sm:$0xff] }
 0x4dd   :  { %8576 = vmatprep.mubr.f32.mxu0 %v11546_v14  ;;  %9488 = vmatpush3.bf16.msra.mxu0 %v9485_v3  ;;  %v4800_v3 = vld [vmem:[#allocation9 + $0x128] sm:$0xff]  ;;  %v4805_v14 = vld [vmem:[#allocation9 + $0x150] sm:$0xff] }
 0x4de   :  { %9490 = vmatprep.subr.bf16.mxu0 %v9489_v56  ;;  %v9509_v39 = vpack.c.bf16 %v4800_v3, %v4799_v30  ;;  %v4373_v30 = vld [vmem:[#allocation2 + $0x1a3] sm:$0xff]  ;;  %v4374_v3 = vld [vmem:[#allocation2 + $0x1ab] sm:$0xff] }
 0x4e0   :  { %8577 = vmatmul.mubr.f32.gmra.mrb[34].mxu0 %v11547_v26  ;;  %v4337_v26 = vld [vmem:[#allocation2 + $0x53] sm:$0xff] }
 0x4e1   :  { %8579 = vmatprep.mubr.f32.mxu0 %v11548_v0  ;;  %9492 = vmatpush3.bf16.msra.mxu0 %v9489_v56  ;;  %v4804_v56 = vld [vmem:[#allocation9 + $0x148] sm:$0xff]  ;;  %v4807_v0 = vld [vmem:[#allocation9 + $0x160] sm:$0xff] }
 0x4e2   :  { %9494 = vmatprep.subr.bf16.mxu0 %v9493_v7  ;;  %v9517_v15 = vpack.c.bf16 %v4804_v56, %v4803_v32  ;;  %v4748_v32 = vld [vmem:[#allocation2 + $0x14] sm:$0xff] }
 0x4e4   :  { %8580 = vmatmul.mubr.f32.gmra.mrb[36].mxu0 %v11549_v34  ;;  %v4339_v34 = vld [vmem:[#allocation2 + $0x63] sm:$0xff] }
 0x4e5   :  { %8582 = vmatprep.mubr.f32.mxu0 %v11550_v6  ;;  %9496 = vmatpush3.bf16.msra.mxu0 %v9493_v7  ;;  %v4806_v7 = vld [vmem:[#allocation9 + $0x158] sm:$0xff]  ;;  %v4809_v6 = vld [vmem:[#allocation9 + $0x170] sm:$0xff] }
 0x4e6   :  { %9498 = vmatprep.subr.bf16.mxu0 %v9497_v60  ;;  %v9521_v57 = vpack.c.bf16 %v4806_v7, %v4805_v14  ;;  %v4750_v14 = vld [vmem:[#allocation2 + $0x24] sm:$0xff] }
 0x4e8   :  { %8583 = vmatmul.mubr.f32.gmra.mrb[38].mxu0 %v11551_v47  ;;  %v4340_v47 = vld [vmem:[#allocation2 + $0x73] sm:$0xff] }
 0x4e9   :  { %8585 = vmatprep.mubr.f32.mxu0 %v11552_v44  ;;  %9500 = vmatpush3.bf16.msra.mxu0 %v9497_v60  ;;  %v4808_v60 = vld [vmem:[#allocation9 + $0x168] sm:$0xff] }
 0x4ea   :  { %9502 = vmatprep.subr.bf16.mxu0 %v9501_v19  ;;  %v9525_v4 = vpack.c.bf16 %v4808_v60, %v4807_v0  ;;  %v4752_v0 = vld [vmem:[#allocation2 + $0x3c] sm:$0xff] }
 0x4ec   :  { %8586 = vmatmul.mubr.f32.gmra.mrb[40].mxu0 %v11553_v37  ;;  %v4341_v37 = vld [vmem:[#allocation2 + $0x7b] sm:$0xff] }
 0x4ed   :  { %8588 = vmatprep.mubr.f32.mxu0 %v11554_v63  ;;  %v5213_v63 = vld [vmem:[#allocation9 + $0x180] sm:$0xff] }
 0x4f0   :  { %8589 = vmatmul.mubr.f32.gmra.mrb[42].mxu0 %v11555_v11  ;;  %v5214_v11 = vld [vmem:[#allocation9 + $0x188] sm:$0xff] }
 0x4f1   :  { %8591 = vmatprep.mubr.f32.mxu0 %v11556_v61  ;;  %v4342_v61 = vld [vmem:[#allocation2 + $0x83] sm:$0xff] }
 0x4f4   :  { %8592 = vmatmul.mubr.f32.gmra.mrb[44].mxu0 %v11557_v41  ;;  %v11317_v41 = vpack.c.bf16 %v5214_v11, %v5213_v63  ;;  %v4756_v63 = vld [vmem:[#allocation2 + $0x5c] sm:$0xff] }
 0x4f5   :  { %8594 = vmatprep.mubr.f32.mxu0 %v11558_v55  ;;  %v4343_v55 = vld [vmem:[#allocation2 + $0x8b] sm:$0xff] }
 0x4f8   :  { %8595 = vmatmul.mubr.f32.gmra.mrb[46].mxu0 %v11559_v22  ;;  %v4344_v22 = vld [vmem:[#allocation2 + $0x93] sm:$0xff] }
 0x4f9   :  { %8597 = vmatprep.mubr.f32.mxu0 %v11560_v52  ;;  %v4345_v52 = vld [vmem:[#allocation2 + $0x9b] sm:$0xff] }
 0x4fc   :  { %8598 = vmatmul.mubr.f32.gmra.mrb[48].mxu0 %v11561_v54  ;;  %v4346_v54 = vld [vmem:[#allocation2 + $0xab] sm:$0xff] }
 0x4fd   :  { %8600 = vmatprep.mubr.f32.mxu0 %v11562_v10  ;;  %v4347_v10 = vld [vmem:[#allocation2 + $0xb3] sm:$0xff] }
 0x500   :  { %8601 = vmatmul.mubr.f32.gmra.mrb[50].mxu0 %v11563_v18  ;;  %v4348_v18 = vld [vmem:[#allocation2 + $0xbb] sm:$0xff] }
 0x501   :  { %8603 = vmatprep.mubr.f32.mxu0 %v11564_v46  ;;  %v4349_v46 = vld [vmem:[#allocation2 + $0xc3] sm:$0xff] }
 0x504   :  { %8604 = vmatmul.mubr.f32.gmra.mrb[52].mxu0 %v11565_v51  ;;  %v4350_v51 = vld [vmem:[#allocation2 + $0xcb] sm:$0xff] }
 0x505   :  { %8606 = vmatprep.mubr.f32.mxu0 %v11566_v58  ;;  %v4351_v58 = vld [vmem:[#allocation2 + $0xd3] sm:$0xff] }
 0x508   :  { %8607 = vmatmul.mubr.f32.gmra.mrb[54].mxu0 %v11567_v40  ;;  %v4352_v40 = vld [vmem:[#allocation2 + $0xe3] sm:$0xff] }
 0x509   :  { %8609 = vmatprep.mubr.f32.mxu0 %v11568_v35  ;;  %v4353_v35 = vld [vmem:[#allocation2 + $0xeb] sm:$0xff] }
 0x50c   :  { %8610 = vmatmul.mubr.f32.gmra.mrb[56].mxu0 %v11569_v48  ;;  %v4354_v48 = vld [vmem:[#allocation2 + $0xf3] sm:$0xff] }
 0x50d   :  { %8612 = vmatprep.mubr.f32.mxu0 %v11570_v20  ;;  %v4355_v20 = vld [vmem:[#allocation2 + $0xfb] sm:$0xff] }
 0x510   :  { %8613 = vmatmul.mubr.f32.gmra.mrb[58].mxu0 %v11571_v23  ;;  %v4356_v23 = vld [vmem:[#allocation2 + $0x103] sm:$0xff] }
 0x511   :  { %8615 = vmatprep.mubr.f32.mxu0 %v11572_v2  ;;  %v4357_v2 = vld [vmem:[#allocation2 + $0x10b] sm:$0xff] }
 0x514   :  { %8616 = vmatmul.mubr.f32.gmra.mrb[60].mxu0 %v11573_v31  ;;  %v4358_v31 = vld [vmem:[#allocation2 + $0x11b] sm:$0xff] }
 0x515   :  { %8618 = vmatprep.mubr.f32.mxu0 %v11574_v27  ;;  %v4359_v27 = vld [vmem:[#allocation2 + $0x123] sm:$0xff] }
 0x518   :  { %8619 = vmatmul.mubr.f32.gmra.mrb[62].mxu0 %v11575_v29  ;;  %v4360_v29 = vld [vmem:[#allocation2 + $0x12b] sm:$0xff] }
 0x519   :  { %8621 = vmatprep.mubr.f32.mxu0 %v11576_v43  ;;  %v4361_v43 = vld [vmem:[#allocation2 + $0x133] sm:$0xff] }
 0x51c   :  { %8622 = vmatmul.mubr.f32.gmra.mrb[64].mxu0 %v11577_v8  ;;  %v4362_v8 = vld [vmem:[#allocation2 + $0x13b] sm:$0xff] }
 0x51d   :  { %8624 = vmatprep.mubr.f32.mxu0 %v11578_v16  ;;  %v4363_v16 = vld [vmem:[#allocation2 + $0x143] sm:$0xff] }
 0x520   :  { %8625 = vmatmul.mubr.f32.gmra.mrb[66].mxu0 %v11579_v25  ;;  %v4364_v25 = vld [vmem:[#allocation2 + $0x153] sm:$0xff] }
 0x521   :  { %8627 = vmatprep.mubr.f32.mxu0 %v11580_v5  ;;  %v4365_v5 = vld [vmem:[#allocation2 + $0x15b] sm:$0xff] }
 0x524   :  { %8628 = vmatmul.mubr.f32.gmra.mrb[68].mxu0 %v11581_v17  ;;  %v4366_v17 = vld [vmem:[#allocation2 + $0x163] sm:$0xff] }
 0x525   :  { %8630 = vmatprep.mubr.f32.mxu0 %v3587_v36  ;;  %v4802_v36 = vld [vmem:[#allocation9 + $0x138] sm:$0xff] }
 0x526   :  { %v9513_v24 = vpack.c.bf16 %v4802_v36, %v4801_v12  ;;  %v4746_v12 = vld [vmem:[#allocation2 + $0x4] sm:$0xff] }
 0x528   :  { %8631 = vmatmul.mubr.f32.gmra.mrb[70].mxu0 %v11582_v21  ;;  %v4369_v21 = vld [vmem:[#allocation2 + $0x17b] sm:$0xff] }
 0x529   :  { %8665 = vmatprep.mubr.f32.mxu0 %v4328_v45  ;;  %v4370_v45 = vld [vmem:[#allocation2 + $0x18b] sm:$0xff] }
 0x52c   :  { %8666 = vmatmul.mubr.f32.vlgmr.msra.gmra.mrb[24].mxu0 %v4329_v50  ;;  %v4372_v50 = vld [vmem:[#allocation2 + $0x19b] sm:$0xff] }
 0x52d   :  { %9504 = vmatpush3.bf16.msra.mxu0 %v9501_v19  ;;  %8668 = vmatprep.mubr.f32.mxu0 %v4330_v13  ;;  %v4810_v19 = vld [vmem:[#allocation9 + $0x178] sm:$0xff]  ;;  %v4375_v13 = vld [vmem:[#allocation2 + $0x1b3] sm:$0xff] }
 0x52e   :  { %9506 = vmatprep.subr.bf16.mxu0 %v9505_v49  ;;  %v9529_v44 = vpack.c.bf16 %v4810_v19, %v4809_v6  ;;  %v4754_v6 = vld [vmem:[#allocation2 + $0x4c] sm:$0xff] }
 0x530   :  { %8669 = vmatmul.mubr.f32.gmra.mrb[26].mxu0 %v4331_v62  ;;  %v5216_v62 = vld [vmem:[#allocation9 + $0x198] sm:$0xff] }
 0x531   :  { %8671 = vmatprep.mubr.f32.mxu0 %v4332_v38  ;;  %9508 = vmatpush3.bf16.msra.mxu0 %v9505_v49  ;;  %v4371_v49 = vld [vmem:[#allocation2 + $0x193] sm:$0xff] }
 0x532   :  { %9510 = vmatprep.subr.bf16.mxu0 %v9509_v39  ;;  %v4747_v38 = vld [vmem:[#allocation2 + $0xc] sm:$0xff] }
 0x534   :  { %8672 = vmatmul.mubr.f32.gmra.mrb[28].mxu0 %v4333_v1  ;;  %v5218_v1 = vld [vmem:[#allocation9 + $0x1a8] sm:$0xff] }
 0x535   :  { %8674 = vmatprep.mubr.f32.mxu0 %v4334_v9  ;;  %9512 = vmatpush3.bf16.msra.mxu0 %v9509_v39  ;;  %v5215_v39 = vld [vmem:[#allocation9 + $0x190] sm:$0xff] }
 0x536   :  { %9514 = vmatprep.subr.bf16.mxu0 %v9513_v24  ;;  %v9537_v36 = vpack.c.bf16 %v5216_v62, %v5215_v39  ;;  %v4749_v9 = vld [vmem:[#allocation2 + $0x1c] sm:$0xff]  ;;  %v4786_v39 = vld [vmem:[#allocation2 + $0x174] sm:$0xff] }
 0x537   :  { %v4787_v62 = vld [vmem:[#allocation2 + $0x17c] sm:$0xff] }
 0x538   :  { %8675 = vmatmul.mubr.f32.gmra.mrb[30].mxu0 %v4335_v28  ;;  %v5220_v28 = vld [vmem:[#allocation9 + $0x1b8] sm:$0xff] }
 0x539   :  { %8677 = vmatprep.mubr.f32.mxu0 %v4336_v33  ;;  %9516 = vmatpush3.bf16.msra.mxu0 %v9513_v24  ;;  %v5217_v24 = vld [vmem:[#allocation9 + $0x1a0] sm:$0xff] }
 0x53a   :  { %9518 = vmatprep.subr.bf16.mxu0 %v9517_v15  ;;  %v9541_v56 = vpack.c.bf16 %v5218_v1, %v5217_v24  ;;  %v4751_v33 = vld [vmem:[#allocation2 + $0x2c] sm:$0xff]  ;;  %v4791_v24 = vld [vmem:[#allocation2 + $0x1a4] sm:$0xff] }
 0x53b   :  { %v4792_v1 = vld [vmem:[#allocation2 + $0x1ac] sm:$0xff] }
 0x53c   :  { %8678 = vmatmul.mubr.f32.gmra.mrb[32].mxu0 %v4337_v26  ;;  %v5222_v26 = vld [vmem:[#allocation9 + $0x1c8] sm:$0xff] }
 0x53d   :  { %8680 = vmatprep.mubr.f32.mxu0 %v4338_v42  ;;  %9520 = vmatpush3.bf16.msra.mxu0 %v9517_v15  ;;  %v5219_v15 = vld [vmem:[#allocation9 + $0x1b0] sm:$0xff] }
 0x53e   :  { %9522 = vmatprep.subr.bf16.mxu0 %v9521_v57  ;;  %v9545_v7 = vpack.c.bf16 %v5220_v28, %v5219_v15  ;;  %v4753_v42 = vld [vmem:[#allocation2 + $0x44] sm:$0xff] }
 0x53f   :  { %v5164_v15 = vld [vmem:[#allocation2 + $0x5] sm:$0xff] }
 0x540   :  { %8681 = vmatmul.mubr.f32.gmra.mrb[34].mxu0 %v4339_v34  ;;  %v5224_v34 = vld [vmem:[#allocation9 + $0x1d8] sm:$0xff] }
 0x541   :  { %8683 = vmatprep.mubr.f32.mxu0 %v4340_v47  ;;  %9524 = vmatpush3.bf16.msra.mxu0 %v9521_v57  ;;  %v5221_v57 = vld [vmem:[#allocation9 + $0x1c0] sm:$0xff] }
 0x542   :  { %9526 = vmatprep.subr.bf16.mxu0 %v9525_v4  ;;  %v9549_v60 = vpack.c.bf16 %v5222_v26, %v5221_v57  ;;  %v4755_v47 = vld [vmem:[#allocation2 + $0x54] sm:$0xff] }
 0x543   :  { %v5166_v57 = vld [vmem:[#allocation2 + $0x15] sm:$0xff] }
 0x544   :  { %8684 = vmatmul.mubr.f32.gmra.mrb[36].mxu0 %v4341_v37  ;;  %v5226_v37 = vld [vmem:[#allocation9 + $0x1e8] sm:$0xff] }
 0x545   :  { %8686 = vmatprep.mubr.f32.mxu0 %v4342_v61  ;;  %9528 = vmatpush3.bf16.msra.mxu0 %v9525_v4  ;;  %v5223_v4 = vld [vmem:[#allocation9 + $0x1d0] sm:$0xff] }
 0x546   :  { %9530 = vmatprep.subr.bf16.mxu0 %v9529_v44  ;;  %v9553_v19 = vpack.c.bf16 %v5224_v34, %v5223_v4  ;;  %v4757_v61 = vld [vmem:[#allocation2 + $0x64] sm:$0xff] }
 0x547   :  { %v5168_v4 = vld [vmem:[#allocation2 + $0x25] sm:$0xff] }
 0x548   :  { %8687 = vmatmul.mubr.f32.gmra.mrb[38].mxu0 %v4343_v55  ;;  %v5228_v55 = vld [vmem:[#allocation9 + $0x1f8] sm:$0xff] }
 0x549   :  { %8689 = vmatprep.mubr.f32.mxu0 %v4344_v22  ;;  %9532 = vmatpush3.bf16.msra.mxu0 %v9529_v44  ;;  %v5225_v44 = vld [vmem:[#allocation9 + $0x1e0] sm:$0xff] }
 0x54a   :  { %9534 = vmatprep.subr.bf16.mxu0 %v11317_v41  ;;  %v9557_v11 = vpack.c.bf16 %v5226_v37, %v5225_v44  ;;  %v4758_v22 = vld [vmem:[#allocation2 + $0x74] sm:$0xff]  ;;  %v5170_v44 = vld [vmem:[#allocation2 + $0x3d] sm:$0xff] }
 0x54c   :  { %8690 = vmatmul.mubr.f32.gmra.mrb[40].mxu0 %v4345_v52 }
 0x54d   :  { %8692 = vmatprep.mubr.f32.mxu0 %v4346_v54  ;;  %v4759_v54 = vld [vmem:[#allocation2 + $0x7c] sm:$0xff] }
 0x550   :  { %8693 = vmatmul.mubr.f32.gmra.mrb[42].mxu0 %v4347_v10  ;;  %v5631_v10 = vld [vmem:[#allocation9 + $0x200] sm:$0xff] }
 0x551   :  { %8695 = vmatprep.mubr.f32.mxu0 %v4348_v18  ;;  %v5632_v18 = vld [vmem:[#allocation9 + $0x208] sm:$0xff] }
 0x554   :  { %8696 = vmatmul.mubr.f32.gmra.mrb[44].mxu0 %v4349_v46  ;;  %v4760_v46 = vld [vmem:[#allocation2 + $0x84] sm:$0xff] }
 0x555   :  { %8698 = vmatprep.mubr.f32.mxu0 %v4350_v51  ;;  %v11321_v51 = vpack.c.bf16 %v5632_v18, %v5631_v10  ;;  %v5174_v10 = vld [vmem:[#allocation2 + $0x5d] sm:$0xff] }
 0x558   :  { %8699 = vmatmul.mubr.f32.gmra.mrb[46].mxu0 %v4351_v58  ;;  %v4761_v58 = vld [vmem:[#allocation2 + $0x8c] sm:$0xff] }
 0x559   :  { %8701 = vmatprep.mubr.f32.mxu0 %v4352_v40  ;;  %v4762_v40 = vld [vmem:[#allocation2 + $0x94] sm:$0xff] }
 0x55c   :  { %8702 = vmatmul.mubr.f32.gmra.mrb[48].mxu0 %v4353_v35  ;;  %v4763_v35 = vld [vmem:[#allocation2 + $0x9c] sm:$0xff] }
 0x55d   :  { %8704 = vmatprep.mubr.f32.mxu0 %v4354_v48  ;;  %v4764_v48 = vld [vmem:[#allocation2 + $0xac] sm:$0xff] }
 0x560   :  { %8705 = vmatmul.mubr.f32.gmra.mrb[50].mxu0 %v4355_v20  ;;  %v4765_v20 = vld [vmem:[#allocation2 + $0xb4] sm:$0xff] }
 0x561   :  { %8707 = vmatprep.mubr.f32.mxu0 %v4356_v23  ;;  %v4766_v23 = vld [vmem:[#allocation2 + $0xbc] sm:$0xff] }
 0x564   :  { %8708 = vmatmul.mubr.f32.gmra.mrb[52].mxu0 %v4357_v2  ;;  %v4767_v2 = vld [vmem:[#allocation2 + $0xc4] sm:$0xff] }
 0x565   :  { %8710 = vmatprep.mubr.f32.mxu0 %v4358_v31  ;;  %v4768_v31 = vld [vmem:[#allocation2 + $0xcc] sm:$0xff] }
 0x568   :  { %8711 = vmatmul.mubr.f32.gmra.mrb[54].mxu0 %v4359_v27  ;;  %v4769_v27 = vld [vmem:[#allocation2 + $0xd4] sm:$0xff] }
 0x569   :  { %8713 = vmatprep.mubr.f32.mxu0 %v4360_v29  ;;  %v4770_v29 = vld [vmem:[#allocation2 + $0xe4] sm:$0xff] }
 0x56c   :  { %8714 = vmatmul.mubr.f32.gmra.mrb[56].mxu0 %v4361_v43  ;;  %v4771_v43 = vld [vmem:[#allocation2 + $0xec] sm:$0xff] }
 0x56d   :  { %8716 = vmatprep.mubr.f32.mxu0 %v4362_v8  ;;  %v4772_v8 = vld [vmem:[#allocation2 + $0xf4] sm:$0xff] }
 0x570   :  { %8717 = vmatmul.mubr.f32.gmra.mrb[58].mxu0 %v4363_v16  ;;  %v4773_v16 = vld [vmem:[#allocation2 + $0xfc] sm:$0xff] }
 0x571   :  { %8719 = vmatprep.mubr.f32.mxu0 %v4364_v25  ;;  %v4774_v25 = vld [vmem:[#allocation2 + $0x104] sm:$0xff] }
 0x574   :  { %8720 = vmatmul.mubr.f32.gmra.mrb[60].mxu0 %v4365_v5  ;;  %v4775_v5 = vld [vmem:[#allocation2 + $0x10c] sm:$0xff] }
 0x575   :  { %8722 = vmatprep.mubr.f32.mxu0 %v4366_v17  ;;  %v4776_v17 = vld [vmem:[#allocation2 + $0x11c] sm:$0xff] }
 0x578   :  { %8723 = vmatmul.mubr.f32.gmra.mrb[62].mxu0 %v4367_v53  ;;  %v4777_v53 = vld [vmem:[#allocation2 + $0x124] sm:$0xff] }
 0x579   :  { %8725 = vmatprep.mubr.f32.mxu0 %v4368_v59  ;;  %v4778_v59 = vld [vmem:[#allocation2 + $0x12c] sm:$0xff] }
 0x57c   :  { %8726 = vmatmul.mubr.f32.gmra.mrb[64].mxu0 %v4369_v21  ;;  %v4779_v21 = vld [vmem:[#allocation2 + $0x134] sm:$0xff] }
 0x57d   :  { %8728 = vmatprep.mubr.f32.mxu0 %v4370_v45  ;;  %v4780_v45 = vld [vmem:[#allocation2 + $0x13c] sm:$0xff] }
 0x580   :  { %8729 = vmatmul.mubr.f32.gmra.mrb[66].mxu0 %v4371_v49  ;;  %v4781_v49 = vld [vmem:[#allocation2 + $0x144] sm:$0xff] }
 0x581   :  { %8731 = vmatprep.mubr.f32.mxu0 %v4372_v50  ;;  %v4782_v50 = vld [vmem:[#allocation2 + $0x154] sm:$0xff] }
 0x584   :  { %8732 = vmatmul.mubr.f32.gmra.mrb[68].mxu0 %v4373_v30  ;;  %v4783_v30 = vld [vmem:[#allocation2 + $0x15c] sm:$0xff] }
 0x585   :  { %8734 = vmatprep.mubr.f32.mxu0 %v4374_v3  ;;  %v4784_v3 = vld [vmem:[#allocation2 + $0x164] sm:$0xff] }
 0x588   :  { %8735 = vmatmul.mubr.f32.gmra.mrb[70].mxu0 %v4375_v13  ;;  %v4785_v13 = vld [vmem:[#allocation2 + $0x16c] sm:$0xff] }
 0x589   :  { %8769 = vmatprep.mubr.f32.mxu0 %v4746_v12  ;;  %v4788_v12 = vld [vmem:[#allocation2 + $0x18c] sm:$0xff] }
 0x58c   :  { %8770 = vmatmul.mubr.f32.vlgmr.msra.gmra.mrb[24].mxu0 %v4747_v38  ;;  %v4790_v38 = vld [vmem:[#allocation2 + $0x19c] sm:$0xff] }
 0x58d   :  { %9536 = vmatpush3.bf16.msra.mxu0 %v11317_v41  ;;  %8772 = vmatprep.mubr.f32.mxu0 %v4748_v32  ;;  %v5227_v41 = vld [vmem:[#allocation9 + $0x1f0] sm:$0xff]  ;;  %v4793_v32 = vld [vmem:[#allocation2 + $0x1b4] sm:$0xff] }
 0x58e   :  { %9538 = vmatprep.subr.bf16.mxu0 %v9537_v36  ;;  %v9561_v52 = vpack.c.bf16 %v5228_v55, %v5227_v41  ;;  %v5172_v41 = vld [vmem:[#allocation2 + $0x4d] sm:$0xff] }
 0x590   :  { %8773 = vmatmul.mubr.f32.gmra.mrb[26].mxu0 %v4749_v9  ;;  %v5634_v9 = vld [vmem:[#allocation9 + $0x218] sm:$0xff] }
 0x591   :  { %8775 = vmatprep.mubr.f32.mxu0 %v4750_v14  ;;  %9540 = vmatpush3.bf16.msra.mxu0 %v9537_v36  ;;  %v4789_v36 = vld [vmem:[#allocation2 + $0x194] sm:$0xff] }
 0x592   :  { %9542 = vmatprep.subr.bf16.mxu0 %v9541_v56  ;;  %v5165_v14 = vld [vmem:[#allocation2 + $0xd] sm:$0xff] }
 0x594   :  { %8776 = vmatmul.mubr.f32.gmra.mrb[28].mxu0 %v4751_v33  ;;  %v5636_v33 = vld [vmem:[#allocation9 + $0x228] sm:$0xff] }
 0x595   :  { %8778 = vmatprep.mubr.f32.mxu0 %v4752_v0  ;;  %9544 = vmatpush3.bf16.msra.mxu0 %v9541_v56  ;;  %v5633_v56 = vld [vmem:[#allocation9 + $0x210] sm:$0xff] }
 0x596   :  { %9546 = vmatprep.subr.bf16.mxu0 %v9545_v7  ;;  %v9569_v28 = vpack.c.bf16 %v5634_v9, %v5633_v56  ;;  %v5167_v0 = vld [vmem:[#allocation2 + $0x1d] sm:$0xff]  ;;  %v5204_v56 = vld [vmem:[#allocation2 + $0x175] sm:$0xff] }
 0x597   :  { %v5205_v9 = vld [vmem:[#allocation2 + $0x17d] sm:$0xff] }
 0x598   :  { %8779 = vmatmul.mubr.f32.gmra.mrb[30].mxu0 %v4753_v42  ;;  %v5638_v42 = vld [vmem:[#allocation9 + $0x238] sm:$0xff] }
 0x599   :  { %8781 = vmatprep.mubr.f32.mxu0 %v4754_v6  ;;  %9548 = vmatpush3.bf16.msra.mxu0 %v9545_v7  ;;  %v5635_v7 = vld [vmem:[#allocation9 + $0x220] sm:$0xff] }
 0x59a   :  { %9550 = vmatprep.subr.bf16.mxu0 %v9549_v60  ;;  %v9573_v26 = vpack.c.bf16 %v5636_v33, %v5635_v7  ;;  %v5169_v6 = vld [vmem:[#allocation2 + $0x2d] sm:$0xff]  ;;  %v5209_v7 = vld [vmem:[#allocation2 + $0x1a5] sm:$0xff] }
 0x59b   :  { %v5210_v33 = vld [vmem:[#allocation2 + $0x1ad] sm:$0xff] }
 0x59c   :  { %8782 = vmatmul.mubr.f32.gmra.mrb[32].mxu0 %v4755_v47  ;;  %v5640_v47 = vld [vmem:[#allocation9 + $0x248] sm:$0xff] }
 0x59d   :  { %8784 = vmatprep.mubr.f32.mxu0 %v4756_v63  ;;  %9552 = vmatpush3.bf16.msra.mxu0 %v9549_v60  ;;  %v5637_v60 = vld [vmem:[#allocation9 + $0x230] sm:$0xff] }
 0x59e   :  { %9554 = vmatprep.subr.bf16.mxu0 %v9553_v19  ;;  %v9577_v34 = vpack.c.bf16 %v5638_v42, %v5637_v60  ;;  %v5171_v63 = vld [vmem:[#allocation2 + $0x45] sm:$0xff] }
 0x59f   :  { %v5582_v60 = vld [vmem:[#allocation2 + $0x6] sm:$0xff] }
 0x5a0   :  { %8785 = vmatmul.mubr.f32.gmra.mrb[34].mxu0 %v4757_v61  ;;  %v5642_v61 = vld [vmem:[#allocation9 + $0x258] sm:$0xff] }
 0x5a1   :  { %8787 = vmatprep.mubr.f32.mxu0 %v4758_v22  ;;  %9556 = vmatpush3.bf16.msra.mxu0 %v9553_v19  ;;  %v5639_v19 = vld [vmem:[#allocation9 + $0x240] sm:$0xff] }
 0x5a2   :  { %9558 = vmatprep.subr.bf16.mxu0 %v9557_v11  ;;  %v9581_v37 = vpack.c.bf16 %v5640_v47, %v5639_v19  ;;  %v5173_v22 = vld [vmem:[#allocation2 + $0x55] sm:$0xff] }
 0x5a3   :  { %v5584_v19 = vld [vmem:[#allocation2 + $0x16] sm:$0xff] }
 0x5a4   :  { %8788 = vmatmul.mubr.f32.gmra.mrb[36].mxu0 %v4759_v54  ;;  %v5644_v54 = vld [vmem:[#allocation9 + $0x268] sm:$0xff] }
 0x5a5   :  { %8790 = vmatprep.mubr.f32.mxu0 %v4760_v46  ;;  %9560 = vmatpush3.bf16.msra.mxu0 %v9557_v11  ;;  %v5641_v11 = vld [vmem:[#allocation9 + $0x250] sm:$0xff] }
 0x5a6   :  { %9562 = vmatprep.subr.bf16.mxu0 %v9561_v52  ;;  %v9585_v55 = vpack.c.bf16 %v5642_v61, %v5641_v11  ;;  %v5175_v46 = vld [vmem:[#allocation2 + $0x65] sm:$0xff] }
 0x5a7   :  { %v5586_v11 = vld [vmem:[#allocation2 + $0x26] sm:$0xff] }
 0x5a8   :  { %8791 = vmatmul.mubr.f32.gmra.mrb[38].mxu0 %v4761_v58  ;;  %v5646_v58 = vld [vmem:[#allocation9 + $0x278] sm:$0xff] }
 0x5a9   :  { %8793 = vmatprep.mubr.f32.mxu0 %v4762_v40  ;;  %9564 = vmatpush3.bf16.msra.mxu0 %v9561_v52  ;;  %v5643_v52 = vld [vmem:[#allocation9 + $0x260] sm:$0xff] }
 0x5aa   :  { %9566 = vmatprep.subr.bf16.mxu0 %v11321_v51  ;;  %v9589_v18 = vpack.c.bf16 %v5644_v54, %v5643_v52  ;;  %v5176_v40 = vld [vmem:[#allocation2 + $0x75] sm:$0xff]  ;;  %v5588_v52 = vld [vmem:[#allocation2 + $0x3e] sm:$0xff] }
 0x5ac   :  { %8794 = vmatmul.mubr.f32.gmra.mrb[40].mxu0 %v4763_v35 }
 0x5ad   :  { %8796 = vmatprep.mubr.f32.mxu0 %v4764_v48  ;;  %v5177_v48 = vld [vmem:[#allocation2 + $0x7d] sm:$0xff] }
 0x5b0   :  { %8797 = vmatmul.mubr.f32.gmra.mrb[42].mxu0 %v4765_v20  ;;  %v6049_v20 = vld [vmem:[#allocation9 + $0x280] sm:$0xff] }
 0x5b1   :  { %8799 = vmatprep.mubr.f32.mxu0 %v4766_v23  ;;  %v6050_v23 = vld [vmem:[#allocation9 + $0x288] sm:$0xff] }
 0x5b4   :  { %8800 = vmatmul.mubr.f32.gmra.mrb[44].mxu0 %v4767_v2  ;;  %v5178_v2 = vld [vmem:[#allocation2 + $0x85] sm:$0xff] }
 0x5b5   :  { %8802 = vmatprep.mubr.f32.mxu0 %v4768_v31  ;;  %v11325_v31 = vpack.c.bf16 %v6050_v23, %v6049_v20  ;;  %v5592_v20 = vld [vmem:[#allocation2 + $0x5e] sm:$0xff] }
 0x5b8   :  { %8803 = vmatmul.mubr.f32.gmra.mrb[46].mxu0 %v4769_v27  ;;  %v5179_v27 = vld [vmem:[#allocation2 + $0x8d] sm:$0xff] }
 0x5b9   :  { %8805 = vmatprep.mubr.f32.mxu0 %v4770_v29  ;;  %v5180_v29 = vld [vmem:[#allocation2 + $0x95] sm:$0xff] }
 0x5bc   :  { %8806 = vmatmul.mubr.f32.gmra.mrb[48].mxu0 %v4771_v43  ;;  %v5181_v43 = vld [vmem:[#allocation2 + $0x9d] sm:$0xff] }
 0x5bd   :  { %8808 = vmatprep.mubr.f32.mxu0 %v4772_v8  ;;  %v5182_v8 = vld [vmem:[#allocation2 + $0xad] sm:$0xff] }
 0x5c0   :  { %8809 = vmatmul.mubr.f32.gmra.mrb[50].mxu0 %v4773_v16  ;;  %v5183_v16 = vld [vmem:[#allocation2 + $0xb5] sm:$0xff] }
 0x5c1   :  { %8811 = vmatprep.mubr.f32.mxu0 %v4774_v25  ;;  %v5184_v25 = vld [vmem:[#allocation2 + $0xbd] sm:$0xff] }
 0x5c4   :  { %8812 = vmatmul.mubr.f32.gmra.mrb[52].mxu0 %v4775_v5  ;;  %v5185_v5 = vld [vmem:[#allocation2 + $0xc5] sm:$0xff] }
 0x5c5   :  { %8814 = vmatprep.mubr.f32.mxu0 %v4776_v17  ;;  %v5186_v17 = vld [vmem:[#allocation2 + $0xcd] sm:$0xff] }
 0x5c8   :  { %8815 = vmatmul.mubr.f32.gmra.mrb[54].mxu0 %v4777_v53  ;;  %v5187_v53 = vld [vmem:[#allocation2 + $0xd5] sm:$0xff] }
 0x5c9   :  { %8817 = vmatprep.mubr.f32.mxu0 %v4778_v59  ;;  %v5188_v59 = vld [vmem:[#allocation2 + $0xe5] sm:$0xff] }
 0x5cc   :  { %8818 = vmatmul.mubr.f32.gmra.mrb[56].mxu0 %v4779_v21  ;;  %v5189_v21 = vld [vmem:[#allocation2 + $0xed] sm:$0xff] }
 0x5cd   :  { %8820 = vmatprep.mubr.f32.mxu0 %v4780_v45  ;;  %v5190_v45 = vld [vmem:[#allocation2 + $0xf5] sm:$0xff] }
 0x5d0   :  { %8821 = vmatmul.mubr.f32.gmra.mrb[58].mxu0 %v4781_v49  ;;  %v5191_v49 = vld [vmem:[#allocation2 + $0xfd] sm:$0xff] }
 0x5d1   :  { %8823 = vmatprep.mubr.f32.mxu0 %v4782_v50  ;;  %v5192_v50 = vld [vmem:[#allocation2 + $0x105] sm:$0xff] }
 0x5d4   :  { %8824 = vmatmul.mubr.f32.gmra.mrb[60].mxu0 %v4783_v30  ;;  %v5193_v30 = vld [vmem:[#allocation2 + $0x10d] sm:$0xff] }
 0x5d5   :  { %8826 = vmatprep.mubr.f32.mxu0 %v4784_v3  ;;  %v5194_v3 = vld [vmem:[#allocation2 + $0x11d] sm:$0xff] }
 0x5d8   :  { %8827 = vmatmul.mubr.f32.gmra.mrb[62].mxu0 %v4785_v13  ;;  %v5195_v13 = vld [vmem:[#allocation2 + $0x125] sm:$0xff] }
 0x5d9   :  { %8829 = vmatprep.mubr.f32.mxu0 %v4786_v39  ;;  %v5196_v39 = vld [vmem:[#allocation2 + $0x12d] sm:$0xff] }
 0x5dc   :  { %8830 = vmatmul.mubr.f32.gmra.mrb[64].mxu0 %v4787_v62  ;;  %v5197_v62 = vld [vmem:[#allocation2 + $0x135] sm:$0xff] }
 0x5dd   :  { %8832 = vmatprep.mubr.f32.mxu0 %v4788_v12  ;;  %v5198_v12 = vld [vmem:[#allocation2 + $0x13d] sm:$0xff] }
 0x5e0   :  { %8833 = vmatmul.mubr.f32.gmra.mrb[66].mxu0 %v4789_v36  ;;  %v5199_v36 = vld [vmem:[#allocation2 + $0x145] sm:$0xff] }
 0x5e1   :  { %8835 = vmatprep.mubr.f32.mxu0 %v4790_v38  ;;  %v5200_v38 = vld [vmem:[#allocation2 + $0x155] sm:$0xff] }
 0x5e4   :  { %8836 = vmatmul.mubr.f32.gmra.mrb[68].mxu0 %v4791_v24  ;;  %v5201_v24 = vld [vmem:[#allocation2 + $0x15d] sm:$0xff] }
 0x5e5   :  { %8838 = vmatprep.mubr.f32.mxu0 %v4792_v1  ;;  %v5202_v1 = vld [vmem:[#allocation2 + $0x165] sm:$0xff] }
 0x5e8   :  { %8839 = vmatmul.mubr.f32.gmra.mrb[70].mxu0 %v4793_v32  ;;  %v5203_v32 = vld [vmem:[#allocation2 + $0x16d] sm:$0xff] }
 0x5e9   :  { %8873 = vmatprep.mubr.f32.mxu0 %v5164_v15  ;;  %v5206_v15 = vld [vmem:[#allocation2 + $0x18d] sm:$0xff] }
 0x5ec   :  { %8874 = vmatmul.mubr.f32.vlgmr.msra.gmra.mrb[24].mxu0 %v5165_v14  ;;  %v5208_v14 = vld [vmem:[#allocation2 + $0x19d] sm:$0xff] }
 0x5ed   :  { %9568 = vmatpush3.bf16.msra.mxu0 %v11321_v51  ;;  %8876 = vmatprep.mubr.f32.mxu0 %v5166_v57  ;;  %v5645_v51 = vld [vmem:[#allocation9 + $0x270] sm:$0xff]  ;;  %v5211_v57 = vld [vmem:[#allocation2 + $0x1b5] sm:$0xff] }
 0x5ee   :  { %9570 = vmatprep.subr.bf16.mxu0 %v9569_v28  ;;  %v9593_v35 = vpack.c.bf16 %v5646_v58, %v5645_v51  ;;  %v5590_v51 = vld [vmem:[#allocation2 + $0x4e] sm:$0xff] }
 0x5f0   :  { %8877 = vmatmul.mubr.f32.gmra.mrb[26].mxu0 %v5167_v0  ;;  %v6052_v0 = vld [vmem:[#allocation9 + $0x298] sm:$0xff] }
 0x5f1   :  { %8879 = vmatprep.mubr.f32.mxu0 %v5168_v4  ;;  %9572 = vmatpush3.bf16.msra.mxu0 %v9569_v28  ;;  %v5207_v28 = vld [vmem:[#allocation2 + $0x195] sm:$0xff] }
 0x5f2   :  { %9574 = vmatprep.subr.bf16.mxu0 %v9573_v26  ;;  %v5583_v4 = vld [vmem:[#allocation2 + $0xe] sm:$0xff] }
 0x5f4   :  { %8880 = vmatmul.mubr.f32.gmra.mrb[28].mxu0 %v5169_v6  ;;  %v6054_v6 = vld [vmem:[#allocation9 + $0x2a8] sm:$0xff] }
 0x5f5   :  { %8882 = vmatprep.mubr.f32.mxu0 %v5170_v44  ;;  %9576 = vmatpush3.bf16.msra.mxu0 %v9573_v26  ;;  %v6051_v26 = vld [vmem:[#allocation9 + $0x290] sm:$0xff] }
 0x5f6   :  { %9578 = vmatprep.subr.bf16.mxu0 %v9577_v34  ;;  %v9601_v42 = vpack.c.bf16 %v6052_v0, %v6051_v26  ;;  %v5585_v44 = vld [vmem:[#allocation2 + $0x1e] sm:$0xff]  ;;  %v5625_v26 = vld [vmem:[#allocation2 + $0x196] sm:$0xff] }
 0x5f7   :  { %v5626_v0 = vld [vmem:[#allocation2 + $0x19e] sm:$0xff] }
 0x5f8   :  { %8883 = vmatmul.mubr.f32.gmra.mrb[30].mxu0 %v5171_v63  ;;  %v6056_v63 = vld [vmem:[#allocation9 + $0x2b8] sm:$0xff] }
 0x5f9   :  { %8885 = vmatprep.mubr.f32.mxu0 %v5172_v41  ;;  %9580 = vmatpush3.bf16.msra.mxu0 %v9577_v34  ;;  %v6053_v34 = vld [vmem:[#allocation9 + $0x2a0] sm:$0xff] }
 0x5fa   :  { %9582 = vmatprep.subr.bf16.mxu0 %v9581_v37  ;;  %v9605_v47 = vpack.c.bf16 %v6054_v6, %v6053_v34  ;;  %v5587_v41 = vld [vmem:[#allocation2 + $0x2e] sm:$0xff] }
 0x5fb   :  { %v6000_v34 = vld [vmem:[#allocation2 + $0x7] sm:$0xff]  ;;  %v6001_v6 = vld [vmem:[#allocation2 + $0xf] sm:$0xff] }
 0x5fc   :  { %8886 = vmatmul.mubr.f32.gmra.mrb[32].mxu0 %v5173_v22  ;;  %v6058_v22 = vld [vmem:[#allocation9 + $0x2c8] sm:$0xff] }
 0x5fd   :  { %8888 = vmatprep.mubr.f32.mxu0 %v5174_v10  ;;  %9584 = vmatpush3.bf16.msra.mxu0 %v9581_v37  ;;  %v6055_v37 = vld [vmem:[#allocation9 + $0x2b0] sm:$0xff] }
 0x5fe   :  { %9586 = vmatprep.subr.bf16.mxu0 %v9585_v55  ;;  %v9609_v61 = vpack.c.bf16 %v6056_v63, %v6055_v37  ;;  %v5589_v10 = vld [vmem:[#allocation2 + $0x46] sm:$0xff]  ;;  %v6005_v37 = vld [vmem:[#allocation2 + $0x2f] sm:$0xff] }
 0x5ff   :  { %v6006_v63 = vld [vmem:[#allocation2 + $0x3f] sm:$0xff] }
 0x600   :  { %8889 = vmatmul.mubr.f32.gmra.mrb[34].mxu0 %v5175_v46  ;;  %v6060_v46 = vld [vmem:[#allocation9 + $0x2d8] sm:$0xff] }
 0x601   :  { %8891 = vmatprep.mubr.f32.mxu0 %v5176_v40  ;;  %9588 = vmatpush3.bf16.msra.mxu0 %v9585_v55  ;;  %v6057_v55 = vld [vmem:[#allocation9 + $0x2c0] sm:$0xff] }
 0x602   :  { %9590 = vmatprep.subr.bf16.mxu0 %v9589_v18  ;;  %v9613_v54 = vpack.c.bf16 %v6058_v22, %v6057_v55  ;;  %v5591_v40 = vld [vmem:[#allocation2 + $0x56] sm:$0xff]  ;;  %v6010_v55 = vld [vmem:[#allocation2 + $0x5f] sm:$0xff]  ;;  %v6011_v22 = vld [vmem:[#allocation2 + $0x67] sm:$0xff] }
 0x604   :  { %8892 = vmatmul.mubr.f32.gmra.mrb[36].mxu0 %v5177_v48  ;;  %v6062_v48 = vld [vmem:[#allocation9 + $0x2e8] sm:$0xff] }
 0x605   :  { %8894 = vmatprep.mubr.f32.mxu0 %v5178_v2  ;;  %9592 = vmatpush3.bf16.msra.mxu0 %v9589_v18  ;;  %v6059_v18 = vld [vmem:[#allocation9 + $0x2d0] sm:$0xff] }
 0x606   :  { %9594 = vmatprep.subr.bf16.mxu0 %v9593_v35  ;;  %v9617_v58 = vpack.c.bf16 %v6060_v46, %v6059_v18  ;;  %v5593_v2 = vld [vmem:[#allocation2 + $0x66] sm:$0xff]  ;;  %v6015_v18 = vld [vmem:[#allocation2 + $0x8f] sm:$0xff]  ;;  %v6016_v46 = vld [vmem:[#allocation2 + $0x97] sm:$0xff] }
 0x608   :  { %8895 = vmatmul.mubr.f32.gmra.mrb[38].mxu0 %v5179_v27  ;;  %v6064_v27 = vld [vmem:[#allocation9 + $0x2f8] sm:$0xff] }
 0x609   :  { %8897 = vmatprep.mubr.f32.mxu0 %v5180_v29  ;;  %9596 = vmatpush3.bf16.msra.mxu0 %v9593_v35  ;;  %v6061_v35 = vld [vmem:[#allocation9 + $0x2e0] sm:$0xff] }
 0x60a   :  { %9598 = vmatprep.subr.bf16.mxu0 %v11325_v31  ;;  %v9621_v23 = vpack.c.bf16 %v6062_v48, %v6061_v35  ;;  %v5594_v29 = vld [vmem:[#allocation2 + $0x76] sm:$0xff]  ;;  %v6020_v35 = vld [vmem:[#allocation2 + $0xbf] sm:$0xff]  ;;  %v6021_v48 = vld [vmem:[#allocation2 + $0xc7] sm:$0xff] }
 0x60c   :  { %8898 = vmatmul.mubr.f32.gmra.mrb[40].mxu0 %v5181_v43 }
 0x60d   :  { %8900 = vmatprep.mubr.f32.mxu0 %v5182_v8  ;;  %v5595_v8 = vld [vmem:[#allocation2 + $0x7e] sm:$0xff] }
 0x610   :  { %8901 = vmatmul.mubr.f32.gmra.mrb[42].mxu0 %v5183_v16  ;;  %v5596_v16 = vld [vmem:[#allocation2 + $0x86] sm:$0xff] }
 0x611   :  { %8903 = vmatprep.mubr.f32.mxu0 %v5184_v25  ;;  %v5597_v25 = vld [vmem:[#allocation2 + $0x8e] sm:$0xff] }
 0x614   :  { %8904 = vmatmul.mubr.f32.gmra.mrb[44].mxu0 %v5185_v5  ;;  %v5598_v5 = vld [vmem:[#allocation2 + $0x96] sm:$0xff] }
 0x615   :  { %8906 = vmatprep.mubr.f32.mxu0 %v5186_v17  ;;  %v5599_v17 = vld [vmem:[#allocation2 + $0x9e] sm:$0xff] }
 0x618   :  { %8907 = vmatmul.mubr.f32.gmra.mrb[46].mxu0 %v5187_v53  ;;  %v5600_v53 = vld [vmem:[#allocation2 + $0xae] sm:$0xff] }
 0x619   :  { %8909 = vmatprep.mubr.f32.mxu0 %v5188_v59  ;;  %v5601_v59 = vld [vmem:[#allocation2 + $0xb6] sm:$0xff] }
 0x61c   :  { %8910 = vmatmul.mubr.f32.gmra.mrb[48].mxu0 %v5189_v21  ;;  %v5602_v21 = vld [vmem:[#allocation2 + $0xbe] sm:$0xff] }
 0x61d   :  { %8912 = vmatprep.mubr.f32.mxu0 %v5190_v45  ;;  %v5603_v45 = vld [vmem:[#allocation2 + $0xc6] sm:$0xff] }
 0x620   :  { %8913 = vmatmul.mubr.f32.gmra.mrb[50].mxu0 %v5191_v49  ;;  %v5604_v49 = vld [vmem:[#allocation2 + $0xce] sm:$0xff] }
 0x621   :  { %8915 = vmatprep.mubr.f32.mxu0 %v5192_v50  ;;  %v5605_v50 = vld [vmem:[#allocation2 + $0xd6] sm:$0xff] }
 0x624   :  { %8916 = vmatmul.mubr.f32.gmra.mrb[52].mxu0 %v5193_v30  ;;  %v5606_v30 = vld [vmem:[#allocation2 + $0xe6] sm:$0xff] }
 0x625   :  { %8918 = vmatprep.mubr.f32.mxu0 %v5194_v3  ;;  %v5607_v3 = vld [vmem:[#allocation2 + $0xee] sm:$0xff] }
 0x628   :  { %8919 = vmatmul.mubr.f32.gmra.mrb[54].mxu0 %v5195_v13  ;;  %v5608_v13 = vld [vmem:[#allocation2 + $0xf6] sm:$0xff] }
 0x629   :  { %8921 = vmatprep.mubr.f32.mxu0 %v5196_v39  ;;  %v5609_v39 = vld [vmem:[#allocation2 + $0xfe] sm:$0xff] }
 0x62c   :  { %8922 = vmatmul.mubr.f32.gmra.mrb[56].mxu0 %v5197_v62  ;;  %v5610_v62 = vld [vmem:[#allocation2 + $0x106] sm:$0xff] }
 0x62d   :  { %8924 = vmatprep.mubr.f32.mxu0 %v5198_v12  ;;  %v5611_v12 = vld [vmem:[#allocation2 + $0x10e] sm:$0xff] }
 0x630   :  { %8925 = vmatmul.mubr.f32.gmra.mrb[58].mxu0 %v5199_v36  ;;  %v5612_v36 = vld [vmem:[#allocation2 + $0x11e] sm:$0xff] }
 0x631   :  { %8927 = vmatprep.mubr.f32.mxu0 %v5200_v38  ;;  %v5613_v38 = vld [vmem:[#allocation2 + $0x126] sm:$0xff] }
 0x634   :  { %8928 = vmatmul.mubr.f32.gmra.mrb[60].mxu0 %v5201_v24  ;;  %v5614_v24 = vld [vmem:[#allocation2 + $0x12e] sm:$0xff] }
 0x635   :  { %8930 = vmatprep.mubr.f32.mxu0 %v5202_v1  ;;  %v5615_v1 = vld [vmem:[#allocation2 + $0x136] sm:$0xff] }
 0x638   :  { %8931 = vmatmul.mubr.f32.gmra.mrb[62].mxu0 %v5203_v32  ;;  %v5616_v32 = vld [vmem:[#allocation2 + $0x13e] sm:$0xff] }
 0x639   :  { %8933 = vmatprep.mubr.f32.mxu0 %v5204_v56  ;;  %v5617_v56 = vld [vmem:[#allocation2 + $0x146] sm:$0xff] }
 0x63c   :  { %8934 = vmatmul.mubr.f32.gmra.mrb[64].mxu0 %v5205_v9  ;;  %v5618_v9 = vld [vmem:[#allocation2 + $0x156] sm:$0xff] }
 0x63d   :  { %8936 = vmatprep.mubr.f32.mxu0 %v5206_v15  ;;  %v5619_v15 = vld [vmem:[#allocation2 + $0x15e] sm:$0xff] }
 0x640   :  { %8937 = vmatmul.mubr.f32.gmra.mrb[66].mxu0 %v5207_v28  ;;  %v5620_v28 = vld [vmem:[#allocation2 + $0x166] sm:$0xff] }
 0x641   :  { %8939 = vmatprep.mubr.f32.mxu0 %v5208_v14  ;;  %v5621_v14 = vld [vmem:[#allocation2 + $0x16e] sm:$0xff] }
 0x644   :  { %8940 = vmatmul.mubr.f32.gmra.mrb[68].mxu0 %v5209_v7  ;;  %v5622_v7 = vld [vmem:[#allocation2 + $0x176] sm:$0xff] }
 0x645   :  { %8942 = vmatprep.mubr.f32.mxu0 %v5210_v33  ;;  %v5623_v33 = vld [vmem:[#allocation2 + $0x17e] sm:$0xff] }
 0x648   :  { %8943 = vmatmul.mubr.f32.gmra.mrb[70].mxu0 %v5211_v57  ;;  %v5624_v57 = vld [vmem:[#allocation2 + $0x18e] sm:$0xff] }
 0x649   :  { %8977 = vmatprep.mubr.f32.mxu0 %v5582_v60  ;;  %v5627_v60 = vld [vmem:[#allocation2 + $0x1a6] sm:$0xff] }
 0x64c   :  { %8978 = vmatmul.mubr.f32.vlgmr.msra.gmra.mrb[24].mxu0 %v5583_v4  ;;  %v5629_v4 = vld [vmem:[#allocation2 + $0x1b6] sm:$0xff] }
 0x64d   :  { %9600 = vmatpush3.bf16.msra.mxu0 %v11325_v31  ;;  %8980 = vmatprep.mubr.f32.mxu0 %v5584_v19  ;;  %v6063_v31 = vld [vmem:[#allocation9 + $0x2f0] sm:$0xff]  ;;  %v6002_v19 = vld [vmem:[#allocation2 + $0x17] sm:$0xff] }
 0x64e   :  { %9602 = vmatprep.subr.bf16.mxu0 %v9601_v42  ;;  %v9625_v43 = vpack.c.bf16 %v6064_v27, %v6063_v31  ;;  %v6025_v31 = vld [vmem:[#allocation2 + $0xef] sm:$0xff]  ;;  %v6026_v27 = vld [vmem:[#allocation2 + $0xf7] sm:$0xff] }
 0x650   :  { %8981 = vmatmul.mubr.f32.gmra.mrb[26].mxu0 %v5585_v44  ;;  %v6004_v44 = vld [vmem:[#allocation2 + $0x27] sm:$0xff] }
 0x651   :  { %8983 = vmatprep.mubr.f32.mxu0 %v5586_v11  ;;  %9604 = vmatpush3.bf16.msra.mxu0 %v9601_v42  ;;  %v5628_v42 = vld [vmem:[#allocation2 + $0x1ae] sm:$0xff] }
 0x652   :  { %9606 = vmatprep.subr.bf16.mxu0 %v9605_v47  ;;  %v6007_v11 = vld [vmem:[#allocation2 + $0x47] sm:$0xff] }
 0x654   :  { %8984 = vmatmul.mubr.f32.gmra.mrb[28].mxu0 %v5587_v41  ;;  %v6009_v41 = vld [vmem:[#allocation2 + $0x57] sm:$0xff] }
 0x655   :  { %8986 = vmatprep.mubr.f32.mxu0 %v5588_v52  ;;  %9608 = vmatpush3.bf16.msra.mxu0 %v9605_v47  ;;  %v6003_v47 = vld [vmem:[#allocation2 + $0x1f] sm:$0xff]  ;;  %v6012_v52 = vld [vmem:[#allocation2 + $0x77] sm:$0xff] }
 0x656   :  { %9610 = vmatprep.subr.bf16.mxu0 %v9609_v61 }
 0x658   :  { %8987 = vmatmul.mubr.f32.gmra.mrb[30].mxu0 %v5589_v10  ;;  %v6014_v10 = vld [vmem:[#allocation2 + $0x87] sm:$0xff] }
 0x659   :  { %8989 = vmatprep.mubr.f32.mxu0 %v5590_v51  ;;  %9612 = vmatpush3.bf16.msra.mxu0 %v9609_v61  ;;  %v6008_v61 = vld [vmem:[#allocation2 + $0x4f] sm:$0xff]  ;;  %v6017_v51 = vld [vmem:[#allocation2 + $0x9f] sm:$0xff] }
 0x65a   :  { %9614 = vmatprep.subr.bf16.mxu0 %v9613_v54 }
 0x65c   :  { %8990 = vmatmul.mubr.f32.gmra.mrb[32].mxu0 %v5591_v40  ;;  %v6019_v40 = vld [vmem:[#allocation2 + $0xb7] sm:$0xff] }
 0x65d   :  { %8992 = vmatprep.mubr.f32.mxu0 %v5592_v20  ;;  %9616 = vmatpush3.bf16.msra.mxu0 %v9613_v54  ;;  %v6013_v54 = vld [vmem:[#allocation2 + $0x7f] sm:$0xff]  ;;  %v6022_v20 = vld [vmem:[#allocation2 + $0xcf] sm:$0xff] }
 0x65e   :  { %9618 = vmatprep.subr.bf16.mxu0 %v9617_v58 }
 0x660   :  { %8993 = vmatmul.mubr.f32.gmra.mrb[34].mxu0 %v5593_v2  ;;  %v6024_v2 = vld [vmem:[#allocation2 + $0xe7] sm:$0xff] }
 0x661   :  { %8995 = vmatprep.mubr.f32.mxu0 %v5594_v29  ;;  %9620 = vmatpush3.bf16.msra.mxu0 %v9617_v58  ;;  %v6018_v58 = vld [vmem:[#allocation2 + $0xaf] sm:$0xff]  ;;  %v6027_v29 = vld [vmem:[#allocation2 + $0xff] sm:$0xff] }
 0x662   :  { %9622 = vmatprep.subr.bf16.mxu0 %v9621_v23 }
 0x664   :  { %8996 = vmatmul.mubr.f32.gmra.mrb[36].mxu0 %v5595_v8  ;;  %v6029_v8 = vld [vmem:[#allocation2 + $0x10f] sm:$0xff] }
 0x665   :  { %8998 = vmatprep.mubr.f32.mxu0 %v5596_v16  ;;  %9624 = vmatpush3.bf16.msra.mxu0 %v9621_v23  ;;  %v6023_v23 = vld [vmem:[#allocation2 + $0xd7] sm:$0xff]  ;;  %v6030_v16 = vld [vmem:[#allocation2 + $0x11f] sm:$0xff] }
 0x666   :  { %9626 = vmatprep.subr.bf16.mxu0 %v9625_v43 }
 0x668   :  { %8999 = vmatmul.mubr.f32.gmra.mrb[38].mxu0 %v5597_v25  ;;  %v6031_v25 = vld [vmem:[#allocation2 + $0x127] sm:$0xff] }
 0x669   :  { %9001 = vmatprep.mubr.f32.mxu0 %v5598_v5  ;;  %9628 = vmatpush3.bf16.msra.mxu0 %v9625_v43  ;;  %v6028_v43 = vld [vmem:[#allocation2 + $0x107] sm:$0xff]  ;;  %v6032_v5 = vld [vmem:[#allocation2 + $0x12f] sm:$0xff] }
 0x66c   :  { %9002 = vmatmul.mubr.f32.gmra.mrb[40].mxu0 %v5599_v17  ;;  %v6033_v17 = vld [vmem:[#allocation2 + $0x137] sm:$0xff] }
 0x66d   :  { %9004 = vmatprep.mubr.f32.mxu0 %v5600_v53  ;;  %v6034_v53 = vld [vmem:[#allocation2 + $0x13f] sm:$0xff] }
 0x670   :  { %9005 = vmatmul.mubr.f32.gmra.mrb[42].mxu0 %v5601_v59  ;;  %v6035_v59 = vld [vmem:[#allocation2 + $0x147] sm:$0xff] }
 0x671   :  { %9007 = vmatprep.mubr.f32.mxu0 %v5602_v21  ;;  %v6036_v21 = vld [vmem:[#allocation2 + $0x157] sm:$0xff] }
 0x674   :  { %9008 = vmatmul.mubr.f32.gmra.mrb[44].mxu0 %v5603_v45  ;;  %v6037_v45 = vld [vmem:[#allocation2 + $0x15f] sm:$0xff] }
 0x675   :  { %9010 = vmatprep.mubr.f32.mxu0 %v5604_v49  ;;  %v6038_v49 = vld [vmem:[#allocation2 + $0x167] sm:$0xff] }
 0x678   :  { %9011 = vmatmul.mubr.f32.gmra.mrb[46].mxu0 %v5605_v50  ;;  %v6039_v50 = vld [vmem:[#allocation2 + $0x16f] sm:$0xff] }
 0x679   :  { %9013 = vmatprep.mubr.f32.mxu0 %v5606_v30  ;;  %v6040_v30 = vld [vmem:[#allocation2 + $0x177] sm:$0xff] }
 0x67c   :  { %9014 = vmatmul.mubr.f32.gmra.mrb[48].mxu0 %v5607_v3  ;;  %v6041_v3 = vld [vmem:[#allocation2 + $0x17f] sm:$0xff] }
 0x67d   :  { %9016 = vmatprep.mubr.f32.mxu0 %v5608_v13  ;;  %v6042_v13 = vld [vmem:[#allocation2 + $0x18f] sm:$0xff] }
 0x680   :  { %9017 = vmatmul.mubr.f32.gmra.mrb[50].mxu0 %v5609_v39  ;;  %v6043_v39 = vld [vmem:[#allocation2 + $0x197] sm:$0xff] }
 0x681   :  { %9019 = vmatprep.mubr.f32.mxu0 %v5610_v62  ;;  %v6044_v62 = vld [vmem:[#allocation2 + $0x19f] sm:$0xff] }
 0x684   :  { %9020 = vmatmul.mubr.f32.gmra.mrb[52].mxu0 %v5611_v12  ;;  %v6045_v12 = vld [vmem:[#allocation2 + $0x1a7] sm:$0xff] }
 0x685   :  { %9022 = vmatprep.mubr.f32.mxu0 %v5612_v36  ;;  %v6046_v36 = vld [vmem:[#allocation2 + $0x1af] sm:$0xff] }
 0x688   :  { %9023 = vmatmul.mubr.f32.gmra.mrb[54].mxu0 %v5613_v38  ;;  %v6047_v38 = vld [vmem:[#allocation2 + $0x1b7] sm:$0xff] }
 0x689   :  { %9025 = vmatprep.mubr.f32.mxu0 %v5614_v24  ;;  %v11332_v24 = vld [vmem:[%s11403_s6] ss:$0 sm:$0xff]  ;;  %s10352_s6 = smov [#allocation11]  }
 0x68a   :  { %s6574_s30 = sshll.u32 %s10352_s6, 4  ;;  %s6575_s30 = int_to_ptr.vmem [resolvable:$true] %s6574_s30 }
 0x68b   :  { %s10315_s8 = scalar_lea.vmem %s6575_s30, 6144  ;;  %p10320_p5 = scmp.lt.s32.totalorder %s6575_s30, %s6575_s30 }
 0x68c   :  { %9026 = vmatmul.mubr.f32.gmra.mrb[56].mxu0 %v5615_v1  ;;  %p10316_p4 = scmp.ne.s32.totalorder %s6575_s30, %s10315_s8  ;;  %p10321_p6 = scmp.lt.s32.totalorder %s10315_s8, %s10315_s8 }
 0x68d   :  { %9028 = vmatprep.mubr.f32.mxu0 %v5616_v32 }
 0x68e   :  { %p10322_p7 = por %p10321_p6, %p10320_p5 }
 0x690   :  { %9029 = vmatmul.mubr.f32.gmra.mrb[58].mxu0 %v5617_v56  ;;  %p10323_p8 = pnand %p10322_p7, %p10316_p4 }
 0x691   :  { %9031 = vmatprep.mubr.f32.mxu0 %v5618_v9 }
 0x694   :  { %9032 = vmatmul.mubr.f32.gmra.mrb[60].mxu0 %v5619_v15 }
 0x695   :  { %9034 = vmatprep.mubr.f32.mxu0 %v5620_v28 }
 0x698   :  { %9035 = vmatmul.mubr.f32.gmra.mrb[62].mxu0 %v5621_v14 }
 0x699   :  { %9037 = vmatprep.mubr.f32.mxu0 %v5622_v7 }
 0x69c   :  { %9038 = vmatmul.mubr.f32.gmra.mrb[64].mxu0 %v5623_v33 }
 0x69d   :  { %9040 = vmatprep.mubr.f32.mxu0 %v5624_v57 }
 0x6a0   :  { %9041 = vmatmul.mubr.f32.gmra.mrb[66].mxu0 %v5625_v26 }
 0x6a1   :  { %9043 = vmatprep.mubr.f32.mxu0 %v5626_v0 }
 0x6a4   :  { %9044 = vmatmul.mubr.f32.gmra.mrb[68].mxu0 %v5627_v60 }
 0x6a5   :  { %9046 = vmatprep.mubr.f32.mxu0 %v5628_v42 }
 0x6a8   :  { %9047 = vmatmul.mubr.f32.gmra.mrb[70].mxu0 %v5629_v4 }
 0x6a9   :  { %9081 = vmatprep.mubr.f32.mxu0 %v6000_v34 }
 0x6ac   :  { %9082 = vmatmul.mubr.f32.vlgmr.msra.gmra.mrb[24].mxu0 %v6001_v6 }
 0x6ad   :  { %9084 = vmatprep.mubr.f32.mxu0 %v6002_v19 }
 0x6b0   :  { %9085 = vmatmul.mubr.f32.gmra.mrb[26].mxu0 %v6003_v47 }
 0x6b1   :  { %9087 = vmatprep.mubr.f32.mxu0 %v6004_v44 }
 0x6b4   :  { %9088 = vmatmul.mubr.f32.gmra.mrb[28].mxu0 %v6005_v37 }
 0x6b5   :  { %9090 = vmatprep.mubr.f32.mxu0 %v6006_v63 }
 0x6b8   :  { %9091 = vmatmul.mubr.f32.gmra.mrb[30].mxu0 %v6007_v11 }
 0x6b9   :  { %9093 = vmatprep.mubr.f32.mxu0 %v6008_v61 }
 0x6bc   :  { %9094 = vmatmul.mubr.f32.gmra.mrb[32].mxu0 %v6009_v41 }
 0x6bd   :  { %9096 = vmatprep.mubr.f32.mxu0 %v6010_v55 }
 0x6c0   :  { %9097 = vmatmul.mubr.f32.gmra.mrb[34].mxu0 %v6011_v22 }
 0x6c1   :  { %9099 = vmatprep.mubr.f32.mxu0 %v6012_v52 }
 0x6c4   :  { %9100 = vmatmul.mubr.f32.gmra.mrb[36].mxu0 %v6013_v54 }
 0x6c5   :  { %9102 = vmatprep.mubr.f32.mxu0 %v6014_v10 }
 0x6c8   :  { %9103 = vmatmul.mubr.f32.gmra.mrb[38].mxu0 %v6015_v18 }
 0x6c9   :  { %9105 = vmatprep.mubr.f32.mxu0 %v6016_v46 }
 0x6cc   :  { %9106 = vmatmul.mubr.f32.gmra.mrb[40].mxu0 %v6017_v51 }
 0x6cd   :  { %9108 = vmatprep.mubr.f32.mxu0 %v6018_v58 }
 0x6d0   :  { %9109 = vmatmul.mubr.f32.gmra.mrb[42].mxu0 %v6019_v40 }
 0x6d1   :  { %9111 = vmatprep.mubr.f32.mxu0 %v6020_v35 }
 0x6d4   :  { %9112 = vmatmul.mubr.f32.gmra.mrb[44].mxu0 %v6021_v48 }
 0x6d5   :  { %9114 = vmatprep.mubr.f32.mxu0 %v6022_v20 }
 0x6d8   :  { %9115 = vmatmul.mubr.f32.gmra.mrb[46].mxu0 %v6023_v23 }
 0x6d9   :  { %9117 = vmatprep.mubr.f32.mxu0 %v6024_v2 }
 0x6dc   :  { %9118 = vmatmul.mubr.f32.gmra.mrb[48].mxu0 %v6025_v31 }
 0x6dd   :  { %9120 = vmatprep.mubr.f32.mxu0 %v6026_v27 }
 0x6e0   :  { %9121 = vmatmul.mubr.f32.gmra.mrb[50].mxu0 %v6027_v29 }
 0x6e1   :  { %9123 = vmatprep.mubr.f32.mxu0 %v6028_v43 }
 0x6e4   :  { %9124 = vmatmul.mubr.f32.gmra.mrb[52].mxu0 %v6029_v8 }
 0x6e5   :  { %9126 = vmatprep.mubr.f32.mxu0 %v6030_v16 }
 0x6e8   :  { %9127 = vmatmul.mubr.f32.gmra.mrb[54].mxu0 %v6031_v25 }
 0x6e9   :  { %9129 = vmatprep.mubr.f32.mxu0 %v6032_v5 }
 0x6ec   :  { %9130 = vmatmul.mubr.f32.gmra.mrb[56].mxu0 %v6033_v17 }
 0x6ed   :  { %9132 = vmatprep.mubr.f32.mxu0 %v6034_v53 }
 0x6f0   :  { %9133 = vmatmul.mubr.f32.gmra.mrb[58].mxu0 %v6035_v59 }
 0x6f1   :  { %9135 = vmatprep.mubr.f32.mxu0 %v6036_v21 }
 0x6f4   :  { %9136 = vmatmul.mubr.f32.gmra.mrb[60].mxu0 %v6037_v45 }
 0x6f5   :  { %9138 = vmatprep.mubr.f32.mxu0 %v6038_v49 }
 0x6f8   :  { %9139 = vmatmul.mubr.f32.gmra.mrb[62].mxu0 %v6039_v50 }
 0x6f9   :  { %9141 = vmatprep.mubr.f32.mxu0 %v6040_v30 }
 0x6fc   :  { %9142 = vmatmul.mubr.f32.gmra.mrb[64].mxu0 %v6041_v3 }
 0x6fd   :  { %9144 = vmatprep.mubr.f32.mxu0 %v6042_v13 }
 0x700   :  { %9145 = vmatmul.mubr.f32.gmra.mrb[66].mxu0 %v6043_v39 }
 0x701   :  { %9147 = vmatprep.mubr.f32.mxu0 %v6044_v62 }
 0x704   :  { %9148 = vmatmul.mubr.f32.gmra.mrb[68].mxu0 %v6045_v12 }
 0x705   :  { %9150 = vmatprep.mubr.f32.mxu0 %v6046_v36 }
 0x708   :  { %9151 = vmatmul.mubr.f32.gmra.mrb[70].mxu0 %v6047_v38 }
 0x77f   :  { %v9083_v1 = vpop.f32.mrb[24].mxu0 }
 0x780   :  { %v6426_v32 = vadd.f32 %v9083_v1, %v11332_v24  ;;  %v6131_v56 = vpop.f32.mrb[25].mxu0 }
 0x781   :  { %v6425_v9 = vadd.f32 %v11332_v24, %v6131_v56 }
 0x782   :  { %v6474_v15 = vmax.f32 %v6426_v32, 0.0 }
 0x783   :  { %v6473_v28 = vmax.f32 %v6425_v9, 0.0  ;;  %v9086_v14 = vpop.f32.mrb[26].mxu0 }
 0x784   :  { %6522 = vst [vmem:[#allocation11 + $0x8] sm:$0xff] %v6474_v15  ;;  %v6428_v7 = vadd.f32 %v9086_v14, %v11332_v24  ;;  %v6141_v33 = vpop.f32.mrb[27].mxu0 }
 0x785   :  { %6521 = vst [vmem:[#allocation11] sm:$0xff] %v6473_v28  ;;  %v6427_v57 = vadd.f32 %v11332_v24, %v6141_v33 }
 0x786   :  { %v6476_v26 = vmax.f32 %v6428_v7, 0.0 }
 0x787   :  { %v6475_v0 = vmax.f32 %v6427_v57, 0.0  ;;  %v9089_v60 = vpop.f32.mrb[28].mxu0 }
 0x788   :  { %6524 = vst [vmem:[#allocation11 + $0x18] sm:$0xff] %v6476_v26  ;;  %v6430_v42 = vadd.f32 %v9089_v60, %v11332_v24  ;;  %v6151_v4 = vpop.f32.mrb[29].mxu0 }
 0x789   :  { %6523 = vst [vmem:[#allocation11 + $0x10] sm:$0xff] %v6475_v0  ;;  %v6429_v34 = vadd.f32 %v11332_v24, %v6151_v4 }
 0x78a   :  { %v6478_v6 = vmax.f32 %v6430_v42, 0.0 }
 0x78b   :  { %v6477_v19 = vmax.f32 %v6429_v34, 0.0  ;;  %v9092_v47 = vpop.f32.mrb[30].mxu0 }
 0x78c   :  { %6526 = vst [vmem:[#allocation11 + $0x28] sm:$0xff] %v6478_v6  ;;  %v6432_v44 = vadd.f32 %v9092_v47, %v11332_v24  ;;  %v6161_v37 = vpop.f32.mrb[31].mxu0 }
 0x78d   :  { %6525 = vst [vmem:[#allocation11 + $0x20] sm:$0xff] %v6477_v19  ;;  %v6431_v63 = vadd.f32 %v11332_v24, %v6161_v37 }
 0x78e   :  { %v6480_v11 = vmax.f32 %v6432_v44, 0.0 }
 0x78f   :  { %v6479_v61 = vmax.f32 %v6431_v63, 0.0  ;;  %v9095_v41 = vpop.f32.mrb[32].mxu0 }
 0x790   :  { %6528 = vst [vmem:[#allocation11 + $0x38] sm:$0xff] %v6480_v11  ;;  %v6434_v55 = vadd.f32 %v9095_v41, %v11332_v24  ;;  %v6171_v22 = vpop.f32.mrb[33].mxu0 }
 0x791   :  { %6527 = vst [vmem:[#allocation11 + $0x30] sm:$0xff] %v6479_v61  ;;  %v6433_v52 = vadd.f32 %v11332_v24, %v6171_v22 }
 0x792   :  { %v6482_v54 = vmax.f32 %v6434_v55, 0.0 }
 0x793   :  { %v6481_v10 = vmax.f32 %v6433_v52, 0.0  ;;  %v9098_v18 = vpop.f32.mrb[34].mxu0 }
 0x794   :  { %6530 = vst [vmem:[#allocation11 + $0x48] sm:$0xff] %v6482_v54  ;;  %v6436_v46 = vadd.f32 %v9098_v18, %v11332_v24  ;;  %v6181_v51 = vpop.f32.mrb[35].mxu0 }
 0x795   :  { %6529 = vst [vmem:[#allocation11 + $0x40] sm:$0xff] %v6481_v10  ;;  %v6435_v58 = vadd.f32 %v11332_v24, %v6181_v51 }
 0x796   :  { %v6484_v40 = vmax.f32 %v6436_v46, 0.0 }
 0x797   :  { %v6483_v35 = vmax.f32 %v6435_v58, 0.0  ;;  %v9101_v48 = vpop.f32.mrb[36].mxu0 }
 0x798   :  { %6532 = vst [vmem:[#allocation11 + $0x58] sm:$0xff] %v6484_v40  ;;  %v6438_v20 = vadd.f32 %v9101_v48, %v11332_v24  ;;  %v6191_v23 = vpop.f32.mrb[37].mxu0 }
 0x799   :  { %6531 = vst [vmem:[#allocation11 + $0x50] sm:$0xff] %v6483_v35  ;;  %v6437_v2 = vadd.f32 %v11332_v24, %v6191_v23 }
 0x79a   :  { %v6486_v31 = vmax.f32 %v6438_v20, 0.0 }
 0x79b   :  { %v6485_v27 = vmax.f32 %v6437_v2, 0.0  ;;  %v9104_v29 = vpop.f32.mrb[38].mxu0 }
 0x79c   :  { %6534 = vst [vmem:[#allocation11 + $0x68] sm:$0xff] %v6486_v31  ;;  %v6440_v43 = vadd.f32 %v9104_v29, %v11332_v24  ;;  %v6201_v8 = vpop.f32.mrb[39].mxu0 }
 0x79d   :  { %6533 = vst [vmem:[#allocation11 + $0x60] sm:$0xff] %v6485_v27  ;;  %v6439_v16 = vadd.f32 %v11332_v24, %v6201_v8 }
 0x79e   :  { %v6488_v25 = vmax.f32 %v6440_v43, 0.0 }
 0x79f   :  { %v6487_v5 = vmax.f32 %v6439_v16, 0.0  ;;  %v9107_v17 = vpop.f32.mrb[40].mxu0 }
 0x7a0   :  { %6536 = vst [vmem:[#allocation11 + $0x78] sm:$0xff] %v6488_v25  ;;  %v6442_v53 = vadd.f32 %v9107_v17, %v11332_v24  ;;  %v6211_v59 = vpop.f32.mrb[41].mxu0 }
 0x7a1   :  { %6535 = vst [vmem:[#allocation11 + $0x70] sm:$0xff] %v6487_v5  ;;  %v6441_v21 = vadd.f32 %v11332_v24, %v6211_v59 }
 0x7a2   :  { %v6490_v45 = vmax.f32 %v6442_v53, 0.0 }
 0x7a3   :  { %v6489_v49 = vmax.f32 %v6441_v21, 0.0  ;;  %v9110_v50 = vpop.f32.mrb[42].mxu0 }
 0x7a4   :  { %6538 = vst [vmem:[#allocation11 + $0x88] sm:$0xff] %v6490_v45  ;;  %v6444_v30 = vadd.f32 %v9110_v50, %v11332_v24  ;;  %v6221_v3 = vpop.f32.mrb[43].mxu0 }
 0x7a5   :  { %6537 = vst [vmem:[#allocation11 + $0x80] sm:$0xff] %v6489_v49  ;;  %v6443_v13 = vadd.f32 %v11332_v24, %v6221_v3 }
 0x7a6   :  { %v6492_v39 = vmax.f32 %v6444_v30, 0.0 }
 0x7a7   :  { %v6491_v62 = vmax.f32 %v6443_v13, 0.0  ;;  %v9113_v12 = vpop.f32.mrb[44].mxu0 }
 0x7a8   :  { %6540 = vst [vmem:[#allocation11 + $0x98] sm:$0xff] %v6492_v39  ;;  %v6446_v36 = vadd.f32 %v9113_v12, %v11332_v24  ;;  %v6231_v38 = vpop.f32.mrb[45].mxu0 }
 0x7a9   :  { %6539 = vst [vmem:[#allocation11 + $0x90] sm:$0xff] %v6491_v62  ;;  %v6445_v1 = vadd.f32 %v11332_v24, %v6231_v38 }
 0x7aa   :  { %v6494_v32 = vmax.f32 %v6446_v36, 0.0 }
 0x7ab   :  { %v6493_v56 = vmax.f32 %v6445_v1, 0.0  ;;  %v9116_v9 = vpop.f32.mrb[46].mxu0 }
 0x7ac   :  { %6542 = vst [vmem:[#allocation11 + $0xa8] sm:$0xff] %v6494_v32  ;;  %v6448_v15 = vadd.f32 %v9116_v9, %v11332_v24  ;;  %v6241_v28 = vpop.f32.mrb[47].mxu0 }
 0x7ad   :  { %6541 = vst [vmem:[#allocation11 + $0xa0] sm:$0xff] %v6493_v56  ;;  %v6447_v14 = vadd.f32 %v11332_v24, %v6241_v28 }
 0x7ae   :  { %v6496_v7 = vmax.f32 %v6448_v15, 0.0 }
 0x7af   :  { %v6495_v33 = vmax.f32 %v6447_v14, 0.0  ;;  %v9119_v57 = vpop.f32.mrb[48].mxu0 }
 0x7b0   :  { %6544 = vst [vmem:[#allocation11 + $0xb8] sm:$0xff] %v6496_v7  ;;  %v6450_v26 = vadd.f32 %v9119_v57, %v11332_v24  ;;  %v6251_v0 = vpop.f32.mrb[49].mxu0 }
 0x7b1   :  { %6543 = vst [vmem:[#allocation11 + $0xb0] sm:$0xff] %v6495_v33  ;;  %v6449_v60 = vadd.f32 %v11332_v24, %v6251_v0 }
 0x7b2   :  { %v6498_v42 = vmax.f32 %v6450_v26, 0.0 }
 0x7b3   :  { %v6497_v4 = vmax.f32 %v6449_v60, 0.0  ;;  %v9122_v34 = vpop.f32.mrb[50].mxu0 }
 0x7b4   :  { %6546 = vst [vmem:[#allocation11 + $0xc8] sm:$0xff] %v6498_v42  ;;  %v6452_v6 = vadd.f32 %v9122_v34, %v11332_v24  ;;  %v6261_v19 = vpop.f32.mrb[51].mxu0 }
 0x7b5   :  { %6545 = vst [vmem:[#allocation11 + $0xc0] sm:$0xff] %v6497_v4  ;;  %v6451_v47 = vadd.f32 %v11332_v24, %v6261_v19 }
 0x7b6   :  { %v6500_v44 = vmax.f32 %v6452_v6, 0.0 }
 0x7b7   :  { %v6499_v37 = vmax.f32 %v6451_v47, 0.0  ;;  %v9125_v63 = vpop.f32.mrb[52].mxu0 }
 0x7b8   :  { %6548 = vst [vmem:[#allocation11 + $0xd8] sm:$0xff] %v6500_v44  ;;  %v6454_v11 = vadd.f32 %v9125_v63, %v11332_v24  ;;  %v6271_v61 = vpop.f32.mrb[53].mxu0 }
 0x7b9   :  { %6547 = vst [vmem:[#allocation11 + $0xd0] sm:$0xff] %v6499_v37  ;;  %v6453_v41 = vadd.f32 %v11332_v24, %v6271_v61 }
 0x7ba   :  { %v6502_v55 = vmax.f32 %v6454_v11, 0.0 }
 0x7bb   :  { %v6501_v22 = vmax.f32 %v6453_v41, 0.0  ;;  %v9128_v52 = vpop.f32.mrb[54].mxu0 }
 0x7bc   :  { %6550 = vst [vmem:[#allocation11 + $0xe8] sm:$0xff] %v6502_v55  ;;  %v6456_v54 = vadd.f32 %v9128_v52, %v11332_v24  ;;  %v6281_v10 = vpop.f32.mrb[55].mxu0 }
 0x7bd   :  { %6549 = vst [vmem:[#allocation11 + $0xe0] sm:$0xff] %v6501_v22  ;;  %v6455_v18 = vadd.f32 %v11332_v24, %v6281_v10 }
 0x7be   :  { %v6504_v46 = vmax.f32 %v6456_v54, 0.0 }
 0x7bf   :  { %v6503_v51 = vmax.f32 %v6455_v18, 0.0  ;;  %v9131_v58 = vpop.f32.mrb[56].mxu0 }
 0x7c0   :  { %6552 = vst [vmem:[#allocation11 + $0xf8] sm:$0xff] %v6504_v46  ;;  %v6458_v40 = vadd.f32 %v9131_v58, %v11332_v24  ;;  %v6291_v35 = vpop.f32.mrb[57].mxu0 }
 0x7c1   :  { %6551 = vst [vmem:[#allocation11 + $0xf0] sm:$0xff] %v6503_v51  ;;  %v6457_v48 = vadd.f32 %v11332_v24, %v6291_v35 }
 0x7c2   :  { %v6506_v20 = vmax.f32 %v6458_v40, 0.0 }
 0x7c3   :  { %v6505_v23 = vmax.f32 %v6457_v48, 0.0  ;;  %v9134_v2 = vpop.f32.mrb[58].mxu0 }
 0x7c4   :  { %6554 = vst [vmem:[#allocation11 + $0x108] sm:$0xff] %v6506_v20  ;;  %v6460_v31 = vadd.f32 %v9134_v2, %v11332_v24  ;;  %v6301_v27 = vpop.f32.mrb[59].mxu0 }
 0x7c5   :  { %6553 = vst [vmem:[#allocation11 + $0x100] sm:$0xff] %v6505_v23  ;;  %v6459_v29 = vadd.f32 %v11332_v24, %v6301_v27 }
 0x7c6   :  { %v6508_v43 = vmax.f32 %v6460_v31, 0.0 }
 0x7c7   :  { %v6507_v8 = vmax.f32 %v6459_v29, 0.0  ;;  %v9137_v16 = vpop.f32.mrb[60].mxu0 }
 0x7c8   :  { %6556 = vst [vmem:[#allocation11 + $0x118] sm:$0xff] %v6508_v43  ;;  %v6462_v25 = vadd.f32 %v9137_v16, %v11332_v24  ;;  %v6311_v5 = vpop.f32.mrb[61].mxu0 }
 0x7c9   :  { %6555 = vst [vmem:[#allocation11 + $0x110] sm:$0xff] %v6507_v8  ;;  %v6461_v17 = vadd.f32 %v11332_v24, %v6311_v5 }
 0x7ca   :  { %v6510_v53 = vmax.f32 %v6462_v25, 0.0 }
 0x7cb   :  { %v6509_v59 = vmax.f32 %v6461_v17, 0.0  ;;  %v9140_v21 = vpop.f32.mrb[62].mxu0 }
 0x7cc   :  { %6558 = vst [vmem:[#allocation11 + $0x128] sm:$0xff] %v6510_v53  ;;  %v6464_v45 = vadd.f32 %v9140_v21, %v11332_v24  ;;  %v6321_v49 = vpop.f32.mrb[63].mxu0 }
 0x7cd   :  { %6557 = vst [vmem:[#allocation11 + $0x120] sm:$0xff] %v6509_v59  ;;  %v6463_v50 = vadd.f32 %v11332_v24, %v6321_v49 }
 0x7ce   :  { %v6512_v30 = vmax.f32 %v6464_v45, 0.0 }
 0x7cf   :  { %v6511_v3 = vmax.f32 %v6463_v50, 0.0  ;;  %v9143_v13 = vpop.f32.mrb[64].mxu0 }
 0x7d0   :  { %6560 = vst [vmem:[#allocation11 + $0x138] sm:$0xff] %v6512_v30  ;;  %v6466_v39 = vadd.f32 %v9143_v13, %v11332_v24  ;;  %v6331_v62 = vpop.f32.mrb[65].mxu0 }
 0x7d1   :  { %6559 = vst [vmem:[#allocation11 + $0x130] sm:$0xff] %v6511_v3  ;;  %v6465_v12 = vadd.f32 %v11332_v24, %v6331_v62 }
 0x7d2   :  { %v6514_v36 = vmax.f32 %v6466_v39, 0.0 }
 0x7d3   :  { %v6513_v38 = vmax.f32 %v6465_v12, 0.0  ;;  %v9146_v1 = vpop.f32.mrb[66].mxu0 }
 0x7d4   :  { %6562 = vst [vmem:[#allocation11 + $0x148] sm:$0xff] %v6514_v36  ;;  %v6468_v32 = vadd.f32 %v9146_v1, %v11332_v24  ;;  %v6341_v56 = vpop.f32.mrb[67].mxu0 }
 0x7d5   :  { %6561 = vst [vmem:[#allocation11 + $0x140] sm:$0xff] %v6513_v38  ;;  %v6467_v9 = vadd.f32 %v11332_v24, %v6341_v56 }
 0x7d6   :  { %v6516_v15 = vmax.f32 %v6468_v32, 0.0 }
 0x7d7   :  { %v6515_v28 = vmax.f32 %v6467_v9, 0.0  ;;  %v9149_v14 = vpop.f32.mrb[68].mxu0 }
 0x7d8   :  { %6564 = vst [vmem:[#allocation11 + $0x158] sm:$0xff] %v6516_v15  ;;  %v6470_v7 = vadd.f32 %v9149_v14, %v11332_v24  ;;  %v6351_v33 = vpop.f32.mrb[69].mxu0 }
 0x7d9   :  { %6563 = vst [vmem:[#allocation11 + $0x150] sm:$0xff] %v6515_v28  ;;  %v6469_v57 = vadd.f32 %v11332_v24, %v6351_v33 }
 0x7da   :  { %v6518_v26 = vmax.f32 %v6470_v7, 0.0 }
 0x7db   :  { %v6517_v0 = vmax.f32 %v6469_v57, 0.0  ;;  %v9152_v60 = vpop.f32.mrb[70].mxu0 }
 0x7dc   :  { %6566 = vst [vmem:[#allocation11 + $0x168] sm:$0xff] %v6518_v26  ;;  %v6472_v42 = vadd.f32 %v9152_v60, %v11332_v24  ;;  %v6361_v4 = vpop.f32.mrb[71].mxu0 }
 0x7dd   :  { %6565 = vst [vmem:[#allocation11 + $0x160] sm:$0xff] %v6517_v0  ;;  %v6471_v34 = vadd.f32 %v11332_v24, %v6361_v4 }
 0x7de   :  { %v6520_v6 = vmax.f32 %v6472_v42, 0.0 }
 0x7df   :  { %v6519_v19 = vmax.f32 %v6471_v34, 0.0 }
 0x7e0   :  { %6568 = vst [vmem:[#allocation11 + $0x178] sm:$0xff] %v6520_v6 }
 0x7e1   :  { %6567 = vst [vmem:[#allocation11 + $0x170] sm:$0xff] %v6519_v19 }
 0x7e2   :  { %10326 = shalt.err (!%p10323_p8)
}
 0x7e3   :  { %s10327_s11 = scalar_lea.hbm %s11404_s7, 6144 }
 0x7e4   :  { %p10328_p9 = scmp.ne.s32.totalorder %s11404_s7, %s10327_s11  ;;  %p10331_p10 = scmp.lt.u32.totalorder %s10327_s11, %s11404_s7 }
 0x7e6   :  { %p10333_p11 = pnand %p10331_p10, %p10328_p9 }
 0x7e8   :  { %10336 = shalt.err (!%p10333_p11)
}
 0x7e9   :  { %6580 = dma.vmem_to_hbm [thread:$0]  %s6575_s30, 6144, %s11404_s7, [#allocation5], %s10347_s13, %s10347_s13, %s10348_s14  }
 0x7ea   :  { %10343 = dma.done.wait [#allocation5], 6144  }
 0x7eb   :  { %10344 = vsyncadd [#allocation5], 4294961152 }
 0x7ec   :  { %6584 = vsyncpa [#allocation4], 1 }
 0x7ed   :  { %6585 = vsyncpa [#allocation7], 1 }
 0x7ee   :  { %6586 = vsyncpa [#allocation10], 1 }
 0x7ef   :  { %6587 = vsyncpa [#allocation5], 1 }

</bundles_post_ra>
